<compile_context>
chip_gen: v6e
topology: v6e:2x2x1
jax: 0.10.0
libtpu: 0.0.40
codegen_flags: <defaults>
</compile_context>

<pallas_src>
import functools
import math

import numpy as np
import jax
import jax.numpy as jnp
from jax import lax
from jax.experimental import pallas as pl
from jax.experimental.pallas import tpu as pltpu


def mha_kernel(x_ref, wq_ref, bq_ref, wk_ref, bk_ref, wv_ref, bv_ref, wo_ref, bo_ref,
               o_ref, kb_ref, vb_ref, *, num_heads, head_dim, q_tile):
    """One (batch, query-tile) grid step of fused multi-head self-attention."""
    compute_dtype = jnp.bfloat16
    qt = pl.program_id(1)
    d_model = num_heads * head_dim

    # --- K/V projections: computed ONCE per batch (qt == 0) into bf16 VMEM scratch
    # and reused across all query tiles of this batch (qt grid axis is 'arbitrary').
    @pl.when(qt == 0)
    def _():
        xs = x_ref[0]                                                        # (S, D) bf16
        k = jnp.dot(xs, wk_ref[...], preferred_element_type=jnp.float32) + bk_ref[...]
        kb_ref[...] = k.astype(kb_ref.dtype)     # cast right after bias add: no lingering f32 (S, D)
        v = jnp.dot(xs, wv_ref[...], preferred_element_type=jnp.float32) + bv_ref[...]
        vb_ref[...] = v.astype(vb_ref.dtype)

    # --- Q projection for this query tile, sliced out of the already-resident
    # full-sequence block (no duplicate per-tile x input / DMA).
    q_start = pl.multiple_of(qt * q_tile, q_tile)
    xq = x_ref[0, pl.ds(q_start, q_tile), :]                                 # (TQ, D) bf16
    q = jnp.dot(xq, wq_ref[...], preferred_element_type=jnp.float32) + bq_ref[...]
    # Fold 1/sqrt(head_dim) into Q: O(TQ*D) work instead of O(TQ*S) per head.
    qb = (q * (1.0 / math.sqrt(head_dim))).astype(compute_dtype)             # (TQ, D)

    # --- Per-head attention; accumulate head_out @ Wo[h] directly into one f32
    # (TQ, D) accumulator: identical to "concat heads then Linear", but without
    # the lane-relayout concat and without keeping all H partial results live.
    acc = jnp.zeros((q_tile, d_model), jnp.float32)
    for h in range(num_heads):
        sl = slice(h * head_dim, (h + 1) * head_dim)
        q_h = qb[:, sl]                                                      # (TQ, Hd)
        k_h = kb_ref[:, sl]                                                  # (S,  Hd) from scratch
        v_h = vb_ref[:, sl]                                                  # (S,  Hd) from scratch

        # Contract the Hd axes of q and k directly (no explicit K^T / XLU transpose).
        s = lax.dot_general(q_h, k_h, (((1,), (1,)), ((), ())),
                            preferred_element_type=jnp.float32)              # (TQ, S)
        s = s - jnp.max(s, axis=-1, keepdims=True)
        p = jnp.exp(s)
        inv = pl.reciprocal(jnp.sum(p, axis=-1, keepdims=True), approx=True)
        w = (p * inv).astype(compute_dtype)                                  # softmax (EUP recip)

        # TODO(synk): dropout / head_dropout omitted -- p=0.0 default => identity at inference.
        head_out = jnp.dot(w, v_h, preferred_element_type=jnp.float32)       # (TQ, Hd)
        acc = acc + jnp.dot(head_out.astype(compute_dtype), wo_ref[sl, :],
                            preferred_element_type=jnp.float32)              # (TQ, D)

    # TODO(synk): for long S, switch the (TQ, S) full-score path to a KV-tiled
    # online (flash) softmax with f32 running m/l scratch to bound VMEM on v7x.
    o_ref[0] = (acc + bo_ref[...]).astype(o_ref.dtype)


def multi_head_attention(x, wq, bq, wk, bk, wv, bv, wo, bo, *, num_heads,
                         q_tile=None, out_dtype=jnp.bfloat16):
    """x: (B, S, D); wq/wk/wv: (H, D, Hd) stacked; bq/bk/bv: (H, 1, Hd); wo: (D, D); bo: (1, D).

    NOTE: weights follow the "x @ W" (in, out) convention of the JAX reference; raw
    torch nn.Linear state_dict weights are (out, in) and must be transposed on import.
    """
    B, S, D = x.shape
    head_dim = D // num_heads
    if q_tile is None:
        # v6e/v7x want a large M to fill the 2x256^2 MXU; v5e is already full at 128-256.
        q_tile = min(S, 256)
    assert S % q_tile == 0 and q_tile % 8 == 0, "q_tile must divide S and be a multiple of 8"
    n_qt = S // q_tile

    compute_dtype = jnp.bfloat16

    # Fuse per-head (H, D, Hd) weight stacks into single (D, H*Hd) = (D, D) matrices
    # (and (1, D) biases) so each projection is one full-width MXU matmul.
    def fuse_w(w):
        return jnp.transpose(w, (1, 0, 2)).reshape(D, D).astype(compute_dtype)

    def fuse_b(b):
        return b.reshape(1, D).astype(jnp.float32)

    args = (x.astype(compute_dtype),
            fuse_w(wq), fuse_b(bq),
            fuse_w(wk), fuse_b(bk),
            fuse_w(wv), fuse_b(bv),
            wo.astype(compute_dtype), bo.reshape(1, D).astype(jnp.float32))

    kernel = functools.partial(mha_kernel, num_heads=num_heads, head_dim=head_dim,
                               q_tile=q_tile)

    # Weight / bias blocks have constant index maps, so Pallas only DMAs them once.
    # TODO(synk): pipeline_mode=pl.Buffered(1) on these specs would also drop their
    # unused second pipeline buffer -- a VMEM saving that matters at large D on v7x.
    full_w_spec = pl.BlockSpec((D, D), lambda b, qt: (0, 0))
    bias_spec = pl.BlockSpec((1, D), lambda b, qt: (0, 0))

    # Generation-aware scoped-VMEM budget: ~64 MiB on 128-MiB parts (v5e/v6e),
    # ~48 MiB on v7x (64 MiB physical per TensorCore).
    try:
        vmem_cap = pltpu.get_tpu_info().vmem_capacity_bytes
    except Exception:
        vmem_cap = 128 * 1024 * 1024
    vmem_limit = int(min(64 * 1024 * 1024, (vmem_cap * 3) // 4))

    # Advisory cost estimate so XLA schedules neighbors around the custom call well.
    flops = B * (8 * S * D * D + 4 * S * S * D)          # 4 projections + QK^T + PV
    transcendentals = B * num_heads * S * S               # softmax exps
    bytes_accessed = (B * S * D * 2                        # x (bf16)
                      + 4 * D * D * 2 + 4 * D * 4          # fused weights + biases
                      + B * S * D * np.dtype(out_dtype).itemsize)

    return pl.pallas_call(
        kernel,
        out_shape=jax.ShapeDtypeStruct((B, S, D), out_dtype),
        grid=(B, n_qt),
        in_specs=[
            pl.BlockSpec((1, S, D), lambda b, qt: (b, 0, 0)),   # x: full sequence (Q slice + K/V source)
            full_w_spec, bias_spec,                             # Wq fused, bq fused
            full_w_spec, bias_spec,                             # Wk fused, bk fused
            full_w_spec, bias_spec,                             # Wv fused, bv fused
            full_w_spec, bias_spec,                             # W_o, b_o
        ],
        out_specs=pl.BlockSpec((1, q_tile, D), lambda b, qt: (b, qt, 0)),
        scratch_shapes=[
            pltpu.VMEM((S, D), compute_dtype),   # cached K projection (recomputed per batch)
            pltpu.VMEM((S, D), compute_dtype),   # cached V projection (recomputed per batch)
        ],
        compiler_params=pltpu.CompilerParams(
            # batch axis 'parallel' (keeps both v7x TensorCores busy when B >= 2);
            # query-tile axis 'arbitrary' so the K/V scratch cache is valid across tiles.
            dimension_semantics=("parallel", "arbitrary"),
            vmem_limit_bytes=vmem_limit,
        ),
        cost_estimate=pl.CostEstimate(flops=flops, transcendentals=transcendentals,
                                      bytes_accessed=bytes_accessed),
    )(*args)


def reference(x, wq, bq, wk, bk, wv, bv, wo, bo, *, num_heads):
    """Plain-JAX (f32) reimplementation of the PyTorch forward for verification."""
    B, S, D = x.shape
    head_dim = D // num_heads
    outs = []
    for h in range(num_heads):
        q = x @ wq[h] + bq[h][0]
        k = x @ wk[h] + bk[h][0]
        v = x @ wv[h] + bv[h][0]
        s = jnp.einsum("bqd,bkd->bqk", q, k) / math.sqrt(head_dim)
        w = jax.nn.softmax(s, axis=-1)
        outs.append(jnp.einsum("bqk,bkd->bqd", w, v))
    cat = jnp.concatenate(outs, axis=-1)
    return cat @ wo + bo[0]


if __name__ == "__main__":
    # Small but lane-friendly shapes (last dims multiples of 128 / 8).
    B, S, D, H = 2, 256, 128, 4
    Hd = D // H

    key = jax.random.PRNGKey(0)
    ks = jax.random.split(key, 9)
    scale = 1.0 / math.sqrt(D)
    x  = jax.random.normal(ks[0], (B, S, D), jnp.float32)
    wq = jax.random.normal(ks[1], (H, D, Hd), jnp.float32) * scale
    bq = jax.random.normal(ks[2], (H, 1, Hd), jnp.float32) * scale
    wk = jax.random.normal(ks[3], (H, D, Hd), jnp.float32) * scale
    bk = jax.random.normal(ks[4], (H, 1, Hd), jnp.float32) * scale
    wv = jax.random.normal(ks[5], (H, D, Hd), jnp.float32) * scale
    bv = jax.random.normal(ks[6], (H, 1, Hd), jnp.float32) * scale
    wo = jax.random.normal(ks[7], (D, D), jnp.float32) * scale
    bo = jax.random.normal(ks[8], (1, D), jnp.float32) * scale

    # q_tile=128 -> grid (2, 2): batch axis gives 2 parallel iterations (megacore/v7x),
    # and 2 query tiles per batch exercise the cached-K/V reuse path (qt > 0).
    out = multi_head_attention(x, wq, bq, wk, bk, wv, bv, wo, bo,
                               num_heads=H, q_tile=128)
    out = jax.block_until_ready(out)

    ref = reference(x, wq, bq, wk, bk, wv, bv, wo, bo, num_heads=H)
    assert out.shape == (B, S, D)
    out_f32 = out.astype(jnp.float32)
    # bf16 matmuls / bf16 output + approx reciprocal => bf16-appropriate tolerances.
    max_err = float(jnp.max(jnp.abs(out_f32 - ref)))
    assert jnp.allclose(out_f32, ref, atol=5e-2, rtol=5e-2), \
        f"mismatch vs reference, max_err={max_err}"
    print("KERNEL_OK")
</pallas_src>

<mosaic_0001>
module attributes {stable_mosaic.version = 11 : i64} {
  func.func @mha_kernel(%arg0: i32, %arg1: i32, %arg2: memref<1x256x128xbf16, #tpu.memory_space<vmem>>, %arg3: memref<128x128xbf16, #tpu.memory_space<vmem>>, %arg4: memref<1x128xf32, #tpu.memory_space<vmem>>, %arg5: memref<128x128xbf16, #tpu.memory_space<vmem>>, %arg6: memref<1x128xf32, #tpu.memory_space<vmem>>, %arg7: memref<128x128xbf16, #tpu.memory_space<vmem>>, %arg8: memref<1x128xf32, #tpu.memory_space<vmem>>, %arg9: memref<128x128xbf16, #tpu.memory_space<vmem>>, %arg10: memref<1x128xf32, #tpu.memory_space<vmem>>, %arg11: memref<1x128x128xbf16, #tpu.memory_space<vmem>>, %arg12: memref<256x128xbf16, #tpu.memory_space<vmem>>, %arg13: memref<256x128xbf16, #tpu.memory_space<vmem>>) attributes {dimension_semantics = [#tpu.dimension_semantics<parallel>, #tpu.dimension_semantics<arbitrary>], iteration_bounds = array<i64: 2, 2>, scalar_prefetch = 0 : i64, scratch_operands = 2 : i64, tpu.core_type = #tpu.core_type<tc>, window_params = [{transform_indices = @transform_0, window_bounds = array<i64: 1, 256, 128>}, {pipeline_mode = #tpu.pipeline_mode<synchronous>, transform_indices = @transform_1, window_bounds = array<i64: 128, 128>}, {pipeline_mode = #tpu.pipeline_mode<synchronous>, transform_indices = @transform_2, window_bounds = array<i64: 1, 128>}, {pipeline_mode = #tpu.pipeline_mode<synchronous>, transform_indices = @transform_3, window_bounds = array<i64: 128, 128>}, {pipeline_mode = #tpu.pipeline_mode<synchronous>, transform_indices = @transform_4, window_bounds = array<i64: 1, 128>}, {pipeline_mode = #tpu.pipeline_mode<synchronous>, transform_indices = @transform_5, window_bounds = array<i64: 128, 128>}, {pipeline_mode = #tpu.pipeline_mode<synchronous>, transform_indices = @transform_6, window_bounds = array<i64: 1, 128>}, {pipeline_mode = #tpu.pipeline_mode<synchronous>, transform_indices = @transform_7, window_bounds = array<i64: 128, 128>}, {pipeline_mode = #tpu.pipeline_mode<synchronous>, transform_indices = @transform_8, window_bounds = array<i64: 1, 128>}, {transform_indices = @transform_9, window_bounds = array<i64: 1, 128, 128>}]} {
    %c0_i32 = arith.constant 0 : i32
    %0 = arith.cmpi eq, %arg1, %c0_i32 : i32
    %1 = arith.extui %0 : i1 to i32
    %c0_i32_0 = arith.constant 0 : i32
    %2 = arith.cmpi ne, %1, %c0_i32_0 : i32
    scf.if %2 {
      %c0_54 = arith.constant 0 : index
      %c0_55 = arith.constant 0 : index
      %c0_56 = arith.constant 0 : index
      %104 = vector.load %arg2[%c0_54, %c0_55, %c0_56] : memref<1x256x128xbf16, #tpu.memory_space<vmem>>, vector<1x256x128xbf16>
      %105 = vector.shape_cast %104 : vector<1x256x128xbf16> to vector<256x128xbf16>
      %c0_57 = arith.constant 0 : index
      %c0_58 = arith.constant 0 : index
      %106 = vector.load %arg5[%c0_57, %c0_58] : memref<128x128xbf16, #tpu.memory_space<vmem>>, vector<128x128xbf16>
      %cst_59 = arith.constant dense<0.000000e+00> : vector<256x128xf32>
      %107 = tpu.matmul %105, %106, %cst_59 {dimension_numbers = #tpu.dot_dimension_numbers<[1], [0], [0], [1], [0, 0, 1, 1], [], []>} : vector<256x128xbf16>, vector<128x128xbf16>, vector<256x128xf32> -> vector<256x128xf32>
      %c0_60 = arith.constant 0 : index
      %c0_61 = arith.constant 0 : index
      %108 = vector.load %arg6[%c0_60, %c0_61] : memref<1x128xf32, #tpu.memory_space<vmem>>, vector<1x128xf32>
      %109 = vector.broadcast %108 : vector<1x128xf32> to vector<256x128xf32>
      %110 = arith.addf %107, %109 : vector<256x128xf32>
      %111 = arith.truncf %110 : vector<256x128xf32> to vector<256x128xbf16>
      %c0_62 = arith.constant 0 : index
      %c0_63 = arith.constant 0 : index
      %112 = vector.load %arg12[%c0_62, %c0_63] : memref<256x128xbf16, #tpu.memory_space<vmem>>, vector<256x128xbf16>
      tpu.vector_store %arg12[%c0_62, %c0_63], %111 {strides = array<i32>} : memref<256x128xbf16, #tpu.memory_space<vmem>>, vector<256x128xbf16>,
      %c0_64 = arith.constant 0 : index
      %c0_65 = arith.constant 0 : index
      %113 = vector.load %arg7[%c0_64, %c0_65] : memref<128x128xbf16, #tpu.memory_space<vmem>>, vector<128x128xbf16>
      %cst_66 = arith.constant dense<0.000000e+00> : vector<256x128xf32>
      %114 = tpu.matmul %105, %113, %cst_66 {dimension_numbers = #tpu.dot_dimension_numbers<[1], [0], [0], [1], [0, 0, 1, 1], [], []>} : vector<256x128xbf16>, vector<128x128xbf16>, vector<256x128xf32> -> vector<256x128xf32>
      %c0_67 = arith.constant 0 : index
      %c0_68 = arith.constant 0 : index
      %115 = vector.load %arg8[%c0_67, %c0_68] : memref<1x128xf32, #tpu.memory_space<vmem>>, vector<1x128xf32>
      %116 = vector.broadcast %115 : vector<1x128xf32> to vector<256x128xf32>
      %117 = arith.addf %114, %116 : vector<256x128xf32>
      %118 = arith.truncf %117 : vector<256x128xf32> to vector<256x128xbf16>
      %c0_69 = arith.constant 0 : index
      %c0_70 = arith.constant 0 : index
      %119 = vector.load %arg13[%c0_69, %c0_70] : memref<256x128xbf16, #tpu.memory_space<vmem>>, vector<256x128xbf16>
      tpu.vector_store %arg13[%c0_69, %c0_70], %118 {strides = array<i32>} : memref<256x128xbf16, #tpu.memory_space<vmem>>, vector<256x128xbf16>,
    } else {
    }
    %c128_i32 = arith.constant 128 : i32
    %3 = arith.muli %arg1, %c128_i32 : i32
    %4 = tpu.assume_multiple %3, 128 : i32
    %c0 = arith.constant 0 : index
    %5 = arith.index_cast %4 : i32 to index
    %c0_1 = arith.constant 0 : index
    %6 = vector.load %arg2[%c0, %5, %c0_1] : memref<1x256x128xbf16, #tpu.memory_space<vmem>>, vector<1x128x128xbf16>
    %7 = vector.shape_cast %6 : vector<1x128x128xbf16> to vector<128x128xbf16>
    %c0_2 = arith.constant 0 : index
    %c0_3 = arith.constant 0 : index
    %8 = vector.load %arg3[%c0_2, %c0_3] : memref<128x128xbf16, #tpu.memory_space<vmem>>, vector<128x128xbf16>
    %cst = arith.constant dense<0.000000e+00> : vector<128x128xf32>
    %9 = tpu.matmul %7, %8, %cst {dimension_numbers = #tpu.dot_dimension_numbers<[1], [0], [0], [1], [0, 0, 1, 1], [], []>} : vector<128x128xbf16>, vector<128x128xbf16>, vector<128x128xf32> -> vector<128x128xf32>
    %c0_4 = arith.constant 0 : index
    %c0_5 = arith.constant 0 : index
    %10 = vector.load %arg4[%c0_4, %c0_5] : memref<1x128xf32, #tpu.memory_space<vmem>>, vector<1x128xf32>
    %11 = vector.broadcast %10 : vector<1x128xf32> to vector<128x128xf32>
    %12 = arith.addf %9, %11 : vector<128x128xf32>
    %cst_6 = arith.constant 0.176776692 : f32
    %13 = vector.broadcast %cst_6 : f32 to vector<128x128xf32>
    %14 = arith.mulf %12, %13 : vector<128x128xf32>
    %15 = arith.truncf %14 : vector<128x128xf32> to vector<128x128xbf16>
    %cst_7 = arith.constant 0.000000e+00 : f32
    %16 = vector.broadcast %cst_7 : f32 to vector<128x128xf32>
    %17 = vector.extract_strided_slice %15 {offsets = [0, 0], sizes = [128, 32], strides = [1, 1]} : vector<128x128xbf16> to vector<128x32xbf16>
    %c0_8 = arith.constant 0 : index
    %c0_9 = arith.constant 0 : index
    %18 = vector.load %arg12[%c0_8, %c0_9] : memref<256x128xbf16, #tpu.memory_space<vmem>>, vector<256x32xbf16>
    %c0_10 = arith.constant 0 : index
    %c0_11 = arith.constant 0 : index
    %19 = vector.load %arg13[%c0_10, %c0_11] : memref<256x128xbf16, #tpu.memory_space<vmem>>, vector<256x32xbf16>
    %cst_12 = arith.constant dense<0.000000e+00> : vector<128x256xf32>
    %20 = tpu.matmul %17, %18, %cst_12 {dimension_numbers = #tpu.dot_dimension_numbers<[1], [1], [0], [0], [0, 0, 1, 0], [], []>} : vector<128x32xbf16>, vector<256x32xbf16>, vector<128x256xf32> -> vector<128x256xf32>
    %cst_13 = arith.constant dense<0xFF800000> : vector<128xf32>
    %21 = vector.multi_reduction <maximumf>, %20, %cst_13 [1] : vector<128x256xf32> to vector<128xf32>
    %22 = vector.shape_cast %21 : vector<128xf32> to vector<128x1xf32>
    %23 = vector.broadcast %22 : vector<128x1xf32> to vector<128x256xf32>
    %24 = arith.subf %20, %23 : vector<128x256xf32>
    %25 = math.exp %24 : vector<128x256xf32>
    %cst_14 = arith.constant dense<0.000000e+00> : vector<128xf32>
    %26 = vector.multi_reduction <add>, %25, %cst_14 [1] : vector<128x256xf32> to vector<128xf32>
    %27 = vector.shape_cast %26 : vector<128xf32> to vector<128x1xf32>
    %28 = tpu.reciprocal %27 {approx = true} : vector<128x1xf32> -> vector<128x1xf32>
    %29 = vector.broadcast %28 : vector<128x1xf32> to vector<128x256xf32>
    %30 = arith.mulf %25, %29 : vector<128x256xf32>
    %31 = arith.truncf %30 : vector<128x256xf32> to vector<128x256xbf16>
    %cst_15 = arith.constant dense<0.000000e+00> : vector<128x32xf32>
    %32 = tpu.matmul %31, %19, %cst_15 {dimension_numbers = #tpu.dot_dimension_numbers<[1], [0], [0], [1], [0, 0, 1, 1], [], []>} : vector<128x256xbf16>, vector<256x32xbf16>, vector<128x32xf32> -> vector<128x32xf32>
    %33 = arith.truncf %32 : vector<128x32xf32> to vector<128x32xbf16>
    %c0_16 = arith.constant 0 : index
    %c0_17 = arith.constant 0 : index
    %34 = vector.load %arg9[%c0_16, %c0_17] : memref<128x128xbf16, #tpu.memory_space<vmem>>, vector<32x128xbf16>
    %cst_18 = arith.constant dense<0.000000e+00> : vector<128x128xf32>
    %35 = tpu.matmul %33, %34, %cst_18 {dimension_numbers = #tpu.dot_dimension_numbers<[1], [0], [0], [1], [0, 0, 1, 1], [], []>} : vector<128x32xbf16>, vector<32x128xbf16>, vector<128x128xf32> -> vector<128x128xf32>
    %36 = arith.addf %16, %35 : vector<128x128xf32>
    %37 = vector.extract_strided_slice %15 {offsets = [0, 32], sizes = [128, 32], strides = [1, 1]} : vector<128x128xbf16> to vector<128x32xbf16>
    %c0_19 = arith.constant 0 : index
    %c32 = arith.constant 32 : index
    %38 = vector.load %arg12[%c0_19, %c32] : memref<256x128xbf16, #tpu.memory_space<vmem>>, vector<256x32xbf16>
    %c0_20 = arith.constant 0 : index
    %c32_21 = arith.constant 32 : index
    %39 = vector.load %arg13[%c0_20, %c32_21] : memref<256x128xbf16, #tpu.memory_space<vmem>>, vector<256x32xbf16>
    %cst_22 = arith.constant dense<0.000000e+00> : vector<128x256xf32>
    %40 = tpu.matmul %37, %38, %cst_22 {dimension_numbers = #tpu.dot_dimension_numbers<[1], [1], [0], [0], [0, 0, 1, 0], [], []>} : vector<128x32xbf16>, vector<256x32xbf16>, vector<128x256xf32> -> vector<128x256xf32>
    %cst_23 = arith.constant dense<0xFF800000> : vector<128xf32>
    %41 = vector.multi_reduction <maximumf>, %40, %cst_23 [1] : vector<128x256xf32> to vector<128xf32>
    %42 = vector.shape_cast %41 : vector<128xf32> to vector<128x1xf32>
    %43 = vector.broadcast %42 : vector<128x1xf32> to vector<128x256xf32>
    %44 = arith.subf %40, %43 : vector<128x256xf32>
    %45 = math.exp %44 : vector<128x256xf32>
    %cst_24 = arith.constant dense<0.000000e+00> : vector<128xf32>
    %46 = vector.multi_reduction <add>, %45, %cst_24 [1] : vector<128x256xf32> to vector<128xf32>
    %47 = vector.shape_cast %46 : vector<128xf32> to vector<128x1xf32>
    %48 = tpu.reciprocal %47 {approx = true} : vector<128x1xf32> -> vector<128x1xf32>
    %49 = vector.broadcast %48 : vector<128x1xf32> to vector<128x256xf32>
    %50 = arith.mulf %45, %49 : vector<128x256xf32>
    %51 = arith.truncf %50 : vector<128x256xf32> to vector<128x256xbf16>
    %cst_25 = arith.constant dense<0.000000e+00> : vector<128x32xf32>
    %52 = tpu.matmul %51, %39, %cst_25 {dimension_numbers = #tpu.dot_dimension_numbers<[1], [0], [0], [1], [0, 0, 1, 1], [], []>} : vector<128x256xbf16>, vector<256x32xbf16>, vector<128x32xf32> -> vector<128x32xf32>
    %53 = arith.truncf %52 : vector<128x32xf32> to vector<128x32xbf16>
    %c32_26 = arith.constant 32 : index
    %c0_27 = arith.constant 0 : index
    %54 = vector.load %arg9[%c32_26, %c0_27] : memref<128x128xbf16, #tpu.memory_space<vmem>>, vector<32x128xbf16>
    %cst_28 = arith.constant dense<0.000000e+00> : vector<128x128xf32>
    %55 = tpu.matmul %53, %54, %cst_28 {dimension_numbers = #tpu.dot_dimension_numbers<[1], [0], [0], [1], [0, 0, 1, 1], [], []>} : vector<128x32xbf16>, vector<32x128xbf16>, vector<128x128xf32> -> vector<128x128xf32>
    %56 = arith.addf %36, %55 : vector<128x128xf32>
    %57 = vector.extract_strided_slice %15 {offsets = [0, 64], sizes = [128, 32], strides = [1, 1]} : vector<128x128xbf16> to vector<128x32xbf16>
    %c0_29 = arith.constant 0 : index
    %c64 = arith.constant 64 : index
    %58 = vector.load %arg12[%c0_29, %c64] : memref<256x128xbf16, #tpu.memory_space<vmem>>, vector<256x32xbf16>
    %c0_30 = arith.constant 0 : index
    %c64_31 = arith.constant 64 : index
    %59 = vector.load %arg13[%c0_30, %c64_31] : memref<256x128xbf16, #tpu.memory_space<vmem>>, vector<256x32xbf16>
    %cst_32 = arith.constant dense<0.000000e+00> : vector<128x256xf32>
    %60 = tpu.matmul %57, %58, %cst_32 {dimension_numbers = #tpu.dot_dimension_numbers<[1], [1], [0], [0], [0, 0, 1, 0], [], []>} : vector<128x32xbf16>, vector<256x32xbf16>, vector<128x256xf32> -> vector<128x256xf32>
    %cst_33 = arith.constant dense<0xFF800000> : vector<128xf32>
    %61 = vector.multi_reduction <maximumf>, %60, %cst_33 [1] : vector<128x256xf32> to vector<128xf32>
    %62 = vector.shape_cast %61 : vector<128xf32> to vector<128x1xf32>
    %63 = vector.broadcast %62 : vector<128x1xf32> to vector<128x256xf32>
    %64 = arith.subf %60, %63 : vector<128x256xf32>
    %65 = math.exp %64 : vector<128x256xf32>
    %cst_34 = arith.constant dense<0.000000e+00> : vector<128xf32>
    %66 = vector.multi_reduction <add>, %65, %cst_34 [1] : vector<128x256xf32> to vector<128xf32>
    %67 = vector.shape_cast %66 : vector<128xf32> to vector<128x1xf32>
    %68 = tpu.reciprocal %67 {approx = true} : vector<128x1xf32> -> vector<128x1xf32>
    %69 = vector.broadcast %68 : vector<128x1xf32> to vector<128x256xf32>
    %70 = arith.mulf %65, %69 : vector<128x256xf32>
    %71 = arith.truncf %70 : vector<128x256xf32> to vector<128x256xbf16>
    %cst_35 = arith.constant dense<0.000000e+00> : vector<128x32xf32>
    %72 = tpu.matmul %71, %59, %cst_35 {dimension_numbers = #tpu.dot_dimension_numbers<[1], [0], [0], [1], [0, 0, 1, 1], [], []>} : vector<128x256xbf16>, vector<256x32xbf16>, vector<128x32xf32> -> vector<128x32xf32>
    %73 = arith.truncf %72 : vector<128x32xf32> to vector<128x32xbf16>
    %c64_36 = arith.constant 64 : index
    %c0_37 = arith.constant 0 : index
    %74 = vector.load %arg9[%c64_36, %c0_37] : memref<128x128xbf16, #tpu.memory_space<vmem>>, vector<32x128xbf16>
    %cst_38 = arith.constant dense<0.000000e+00> : vector<128x128xf32>
    %75 = tpu.matmul %73, %74, %cst_38 {dimension_numbers = #tpu.dot_dimension_numbers<[1], [0], [0], [1], [0, 0, 1, 1], [], []>} : vector<128x32xbf16>, vector<32x128xbf16>, vector<128x128xf32> -> vector<128x128xf32>
    %76 = arith.addf %56, %75 : vector<128x128xf32>
    %77 = vector.extract_strided_slice %15 {offsets = [0, 96], sizes = [128, 32], strides = [1, 1]} : vector<128x128xbf16> to vector<128x32xbf16>
    %c0_39 = arith.constant 0 : index
    %c96 = arith.constant 96 : index
    %78 = vector.load %arg12[%c0_39, %c96] : memref<256x128xbf16, #tpu.memory_space<vmem>>, vector<256x32xbf16>
    %c0_40 = arith.constant 0 : index
    %c96_41 = arith.constant 96 : index
    %79 = vector.load %arg13[%c0_40, %c96_41] : memref<256x128xbf16, #tpu.memory_space<vmem>>, vector<256x32xbf16>
    %cst_42 = arith.constant dense<0.000000e+00> : vector<128x256xf32>
    %80 = tpu.matmul %77, %78, %cst_42 {dimension_numbers = #tpu.dot_dimension_numbers<[1], [1], [0], [0], [0, 0, 1, 0], [], []>} : vector<128x32xbf16>, vector<256x32xbf16>, vector<128x256xf32> -> vector<128x256xf32>
    %cst_43 = arith.constant dense<0xFF800000> : vector<128xf32>
    %81 = vector.multi_reduction <maximumf>, %80, %cst_43 [1] : vector<128x256xf32> to vector<128xf32>
    %82 = vector.shape_cast %81 : vector<128xf32> to vector<128x1xf32>
    %83 = vector.broadcast %82 : vector<128x1xf32> to vector<128x256xf32>
    %84 = arith.subf %80, %83 : vector<128x256xf32>
    %85 = math.exp %84 : vector<128x256xf32>
    %cst_44 = arith.constant dense<0.000000e+00> : vector<128xf32>
    %86 = vector.multi_reduction <add>, %85, %cst_44 [1] : vector<128x256xf32> to vector<128xf32>
    %87 = vector.shape_cast %86 : vector<128xf32> to vector<128x1xf32>
    %88 = tpu.reciprocal %87 {approx = true} : vector<128x1xf32> -> vector<128x1xf32>
    %89 = vector.broadcast %88 : vector<128x1xf32> to vector<128x256xf32>
    %90 = arith.mulf %85, %89 : vector<128x256xf32>
    %91 = arith.truncf %90 : vector<128x256xf32> to vector<128x256xbf16>
    %cst_45 = arith.constant dense<0.000000e+00> : vector<128x32xf32>
    %92 = tpu.matmul %91, %79, %cst_45 {dimension_numbers = #tpu.dot_dimension_numbers<[1], [0], [0], [1], [0, 0, 1, 1], [], []>} : vector<128x256xbf16>, vector<256x32xbf16>, vector<128x32xf32> -> vector<128x32xf32>
    %93 = arith.truncf %92 : vector<128x32xf32> to vector<128x32xbf16>
    %c96_46 = arith.constant 96 : index
    %c0_47 = arith.constant 0 : index
    %94 = vector.load %arg9[%c96_46, %c0_47] : memref<128x128xbf16, #tpu.memory_space<vmem>>, vector<32x128xbf16>
    %cst_48 = arith.constant dense<0.000000e+00> : vector<128x128xf32>
    %95 = tpu.matmul %93, %94, %cst_48 {dimension_numbers = #tpu.dot_dimension_numbers<[1], [0], [0], [1], [0, 0, 1, 1], [], []>} : vector<128x32xbf16>, vector<32x128xbf16>, vector<128x128xf32> -> vector<128x128xf32>
    %96 = arith.addf %76, %95 : vector<128x128xf32>
    %c0_49 = arith.constant 0 : index
    %c0_50 = arith.constant 0 : index
    %97 = vector.load %arg10[%c0_49, %c0_50] : memref<1x128xf32, #tpu.memory_space<vmem>>, vector<1x128xf32>
    %98 = vector.broadcast %97 : vector<1x128xf32> to vector<128x128xf32>
    %99 = arith.addf %96, %98 : vector<128x128xf32>
    %100 = arith.truncf %99 : vector<128x128xf32> to vector<128x128xbf16>
    %c0_51 = arith.constant 0 : index
    %c0_52 = arith.constant 0 : index
    %c0_53 = arith.constant 0 : index
    %101 = vector.load %arg11[%c0_51, %c0_52, %c0_53] : memref<1x128x128xbf16, #tpu.memory_space<vmem>>, vector<1x128x128xbf16>
    %102 = vector.shape_cast %101 : vector<1x128x128xbf16> to vector<128x128xbf16>
    %103 = vector.shape_cast %100 : vector<128x128xbf16> to vector<1x128x128xbf16>
    tpu.vector_store %arg11[%c0_51, %c0_52, %c0_53], %103 {strides = array<i32>} : memref<1x128x128xbf16, #tpu.memory_space<vmem>>, vector<1x128x128xbf16>,
    return
  }
  func.func @transform_0(%arg0: i32, %arg1: i32) -> (i32, i32, i32) {
    %c0_i32 = arith.constant 0 : i32
    %c0_i32_0 = arith.constant 0 : i32
    %c0_i32_1 = arith.constant 0 : i32
    return %arg0, %c0_i32, %c0_i32_0 : i32, i32, i32
  }
  func.func @transform_1(%arg0: i32, %arg1: i32) -> (i32, i32) {
    %c0_i32 = arith.constant 0 : i32
    %c0_i32_0 = arith.constant 0 : i32
    %c0_i32_1 = arith.constant 0 : i32
    return %c0_i32, %c0_i32_0 : i32, i32
  }
  func.func @transform_2(%arg0: i32, %arg1: i32) -> (i32, i32) {
    %c0_i32 = arith.constant 0 : i32
    %c0_i32_0 = arith.constant 0 : i32
    %c0_i32_1 = arith.constant 0 : i32
    return %c0_i32, %c0_i32_0 : i32, i32
  }
  func.func @transform_3(%arg0: i32, %arg1: i32) -> (i32, i32) {
    %c0_i32 = arith.constant 0 : i32
    %c0_i32_0 = arith.constant 0 : i32
    %c0_i32_1 = arith.constant 0 : i32
    return %c0_i32, %c0_i32_0 : i32, i32
  }
  func.func @transform_4(%arg0: i32, %arg1: i32) -> (i32, i32) {
    %c0_i32 = arith.constant 0 : i32
    %c0_i32_0 = arith.constant 0 : i32
    %c0_i32_1 = arith.constant 0 : i32
    return %c0_i32, %c0_i32_0 : i32, i32
  }
  func.func @transform_5(%arg0: i32, %arg1: i32) -> (i32, i32) {
    %c0_i32 = arith.constant 0 : i32
    %c0_i32_0 = arith.constant 0 : i32
    %c0_i32_1 = arith.constant 0 : i32
    return %c0_i32, %c0_i32_0 : i32, i32
  }
  func.func @transform_6(%arg0: i32, %arg1: i32) -> (i32, i32) {
    %c0_i32 = arith.constant 0 : i32
    %c0_i32_0 = arith.constant 0 : i32
    %c0_i32_1 = arith.constant 0 : i32
    return %c0_i32, %c0_i32_0 : i32, i32
  }
  func.func @transform_7(%arg0: i32, %arg1: i32) -> (i32, i32) {
    %c0_i32 = arith.constant 0 : i32
    %c0_i32_0 = arith.constant 0 : i32
    %c0_i32_1 = arith.constant 0 : i32
    return %c0_i32, %c0_i32_0 : i32, i32
  }
  func.func @transform_8(%arg0: i32, %arg1: i32) -> (i32, i32) {
    %c0_i32 = arith.constant 0 : i32
    %c0_i32_0 = arith.constant 0 : i32
    %c0_i32_1 = arith.constant 0 : i32
    return %c0_i32, %c0_i32_0 : i32, i32
  }
  func.func @transform_9(%arg0: i32, %arg1: i32) -> (i32, i32, i32) {
    %c0_i32 = arith.constant 0 : i32
    %c0_i32_0 = arith.constant 0 : i32
    return %arg0, %arg1, %c0_i32 : i32, i32, i32
  }
}

</mosaic_0001>

<bundles_post_ra>
// kernel: tpu_custom_call.1
= control target key start
LH: loop header
LB: loop body
LE: loop exit
PB: predicated region body
PF: predicated region fallthrough
CT: control target
= control target key end

     0   :  { %s9679_s0 = inlined_call_operand.hbm [shape: bf16[2,256,128], index: 0, kind: input, shape index: {}]   ;;  %s9680_s1 = inlined_call_operand.hbm [shape: bf16[128,128], index: 1, kind: input, shape index: {}]   ;;  %s9681_s2 = inlined_call_operand.vmem [shape: f32[1,128], index: 2, kind: input, shape index: {}]   ;;  %s9682_s3 = inlined_call_operand.hbm [shape: bf16[128,128], index: 3, kind: input, shape index: {}]   ;;  %s9683_s4 = inlined_call_operand.vmem [shape: f32[1,128], index: 4, kind: input, shape index: {}]   ;;  %s9684_s5 = inlined_call_operand.hbm [shape: bf16[128,128], index: 5, kind: input, shape index: {}]   ;;  %s9685_s6 = inlined_call_operand.vmem [shape: f32[1,128], index: 6, kind: input, shape index: {}]   ;;  %s9686_s7 = inlined_call_operand.hbm [shape: bf16[128,128], index: 7, kind: input, shape index: {}]   ;;  %s9687_s8 = inlined_call_operand.vmem [shape: f32[1,128], index: 8, kind: input, shape index: {}]   ;;  %s9688_s9 = inlined_call_operand.hbm [shape: bf16[2,256,128], index: 9, kind: output, shape index: {}]  }
   0x1   :  { %9741 = sst [smem:[#allocation59_spill]] %s9680_s1 }
   0x2   :  { %9742 = sst [smem:[#allocation60_spill]] %s9681_s2 }
   0x3   :  { %9743 = sst [smem:[#allocation61_spill]] %s9682_s3 }
   0x4   :  { %9744 = sst [smem:[#allocation62_spill]] %s9684_s5 }
   0x5   :  { %9745 = sst [smem:[#allocation63_spill]] %s9686_s7 }
   0x6   :  { %9746 = sst [smem:[#allocation64_spill]] %s9687_s8 }
   0x7   :  { %9747 = sst [smem:[#allocation65_spill]] %s9688_s9 }
   0x8   :  { %14 = vsyncpa [#allocation5], 0 }
   0x9   :  { %16 = vsyncpa [#allocation5 + $0x1], 0 }
   0xa   :  { %17 = vsyncpa [#allocation8], 0 }
   0xb   :  { %18 = vsyncpa [#allocation11], 0 }
   0xc   :  { %19 = vsyncpa [#allocation6], 0 }
   0xd   :  { %21 = vsyncpa [#allocation6 + $0x1], 0  ;;  %s7454_s30 = smov 0   ;;  %s7456_s10 = smov 0  }
   0xe   :  { %s7458_s11 = smov 0   ;;  %s7460_s12 = smov 0  }
   0xf   :  { %s7462_s13 = smov 0   ;;  %s7464_s14 = smov 0  }
  0x10   :  { %s7466_s15 = smov 0   ;;  %s7468_s16 = smov 0  }
  0x11   :  { %s7470_s17 = smov 0   ;;  %s7472_s18 = smov 0  }
  0x12   :  { %s7474_s19 = smov 0  }
  0x13 LB: > { %9748 = sst [smem:[#allocation18_spill]] %s7350_s30  ;;  %s5149_s20 = sadd.s32 4294967295, %s7390_s19   ;;  %s7390_s19 = sphi %s7474_s19, %s27_s19   ;;  %s7386_s18 = sphi %s7472_s18, %s9943_s18   ;;  %s7382_s17 = sphi %s7470_s17, %s9934_s17   ;;  %s7378_s16 = sphi %s7468_s16, %s9942_s16   ;;  %s7374_s15 = sphi %s7466_s15, %s9933_s15   ;;  %s7370_s14 = sphi %s7464_s14, %s9941_s14   ;;  %s7366_s13 = sphi %s7462_s13, %s9940_s13   ;;  %s7362_s12 = sphi %s7460_s12, %s9939_s12   ;;  %s7358_s11 = sphi %s7458_s11, %s9938_s11   ;;  %s7354_s10 = sphi %s7456_s10, %s9937_s10   ;;  %s7350_s30 = sphi %s7454_s30, %s9936_s30  }
  0x14   : > { %9749 = sst [smem:[#allocation19_spill]] %s7378_s16  ;;  %s5150_s21 = sadd.s32 4294967294, %s7390_s19  }
  0x15   : > { %9750 = sst [smem:[#allocation20_spill]] %s7382_s17  ;;  %p59_p0 = scmp.ne.s32.totalorder %s7366_s13, %s7362_s12 }
  0x16   : > { %p7510_p1 = scmp.eq.s32.totalorder %s5149_s20, 0  ;;  %p252_p2 = scmp.ne.s32.totalorder %s7358_s11, %s7354_s10 }
  0x17   : > { %p253_p3 = scmp.eq.s32.totalorder %s5149_s20, 3  ;;  %p258_p5 = scmp.ne.s32.totalorder %s7354_s10, %s7350_s30 }
  0x18   : > { %p7518_p4 = por %p7510_p1, %p59_p0  ;;  %p259_p7 = scmp.eq.s32.totalorder %s5150_s21, 3 }
  0x19   : > { %p7524_p6 = por %p253_p3, %p252_p2  ;;  %p5151_p8 = scmp.ge.s32.totalorder %s7390_s19, 1 }
  0x1a   : > { %p266_p9 = scmp.lt.s32.totalorder %s7390_s19, 5  ;;  %p7530_p10 = por %p259_p7, %p258_p5 }
  0x1b   : > { %s9753_s24 = scalar_select %p7524_p6, 1, 0 }
  0x1c   : > { %s9755_s25 = scalar_select %p7530_p10, 1, 0 }
  0x1d   : > { %9754 = sst [smem:[#allocation21_spill]] %s9753_s24  ;;  %p7534_p11 = pnand %p5151_p8, %p266_p9 }
  0x1e   : > { %9756 = sst [smem:[#allocation22_spill]] %s9755_s25  ;;  %s7392_s27 = smov [#allocation7]  }
  0x1f   : > { %s278_s28 = sshll.u32 %s7392_s27, 4  ;;  %p6482_p12 = pneg %p7534_p11  ;;  %s279_s28 = int_to_ptr.vmem [resolvable:$true] %s278_s28 }
  0x20   : > { %s7393_s12 = smov [#allocation10]   ;;  %s7141_s21 = scalar_lea.vmem %s279_s28, 1024 }
  0x21   : > { %p7542_p13 = pnand %p6482_p12, %p7510_p1  ;;  %s310_s20 = sshll.u32 %s7393_s12, 4  ;;  %s311_s20 = int_to_ptr.vmem [resolvable:$true] %s310_s20 }
  0x22   : > { %p7142_p2 = scmp.ne.s32.totalorder %s279_s28, %s7141_s21  ;;  %p7149_p7 = scmp.lt.s32.totalorder %s279_s28, %s279_s28 }
  0x23   : > { %p7132_p0 = pneg %p7542_p13  ;;  %p7150_p8 = scmp.lt.s32.totalorder %s7141_s21, %s7141_s21 }
  0x25   : > { %p7144_p3 = pnand %p7142_p2, %p7132_p0  ;;  %p7151_p9 = por %p7150_p8, %p7149_p7 }
  0x27   : > { %p7145_p5 = pneg %p7144_p3 }
  0x29   : > { %p7152_p12 = pnand %p7151_p9, %p7145_p5 }
  0x2b   : > { %7155 = shalt.err (!%p7152_p12)
}
  0x2c   : > { %s9694_s27 = smov 64   ;;  %s9695_s25 = smov 4  }
  0x2d   : > { %s9759_s1 = sld [smem:[#allocation59_spill]]  ;;  %s7167_s9 = scalar_lea.vmem %s311_s20, 1024 }
  0x2e   : > { %p7168_p2 = scmp.ne.s32.totalorder %s311_s20, %s7167_s9  ;;  %p7175_p5 = scmp.lt.s32.totalorder %s311_s20, %s311_s20 }
  0x2f   : > { %p7176_p8 = scmp.lt.s32.totalorder %s7167_s9, %s7167_s9 }
  0x30   : > { %p7170_p3 = pnand %p7168_p2, %p7132_p0 }
  0x31   : > { %p7177_p9 = por %p7176_p8, %p7175_p5 }
  0x32   : > { %p7171_p7 = pneg %p7170_p3 }
  0x33   : > { %6485 = dma.hbm_to_vmem [thread:$0]  (!%p7542_p13), %s9759_s1, 1024, %s279_s28, [#allocation8], %s9694_s27, %s9694_s27, %s9695_s25  }
  0x34   : > { %p7178_p12 = pnand %p7177_p9, %p7171_p7 }
  0x36   : > { %7181 = shalt.err (!%p7178_p12)
}
  0x37   : > { %s9760_s5 = sld [smem:[#allocation62_spill]]  ;;  %s7396_s30 = smov [#allocation9]  }
  0x38   : > { %s294_s28 = sshll.u32 %s7396_s30, 4  ;;  %s7397_s12 = smov [#allocation12]   ;;  %s295_s28 = int_to_ptr.vmem [resolvable:$true] %s294_s28 }
  0x39   : > { %s326_s1 = sshll.u32 %s7397_s12, 4  ;;  %s7193_s16 = scalar_lea.vmem %s295_s28, 1024  ;;  %s327_s1 = int_to_ptr.vmem [resolvable:$true] %s326_s1 }
  0x3a   : > { %p7194_p2 = scmp.ne.s32.totalorder %s295_s28, %s7193_s16  ;;  %p7201_p5 = scmp.lt.s32.totalorder %s295_s28, %s295_s28 }
  0x3b   : > { %p7202_p8 = scmp.lt.s32.totalorder %s7193_s16, %s7193_s16 }
  0x3c   : > { %p7196_p3 = pnand %p7194_p2, %p7132_p0 }
  0x3d   : > { %6491 = dma.hbm_to_vmem [thread:$0]  (!%p7542_p13), %s9760_s5, 1024, %s311_s20, [#allocation11], %s9694_s27, %s9694_s27, %s9695_s25  }
  0x3e   : > { %p7197_p7 = pneg %p7196_p3  ;;  %p7203_p9 = por %p7202_p8, %p7201_p5 }
  0x40   : > { %p7204_p12 = pnand %p7203_p9, %p7197_p7 }
  0x42   : > { %7207 = shalt.err (!%p7204_p12)
}
  0x43   : > { %s9761_s3 = sld [smem:[#allocation61_spill]]  ;;  %s7219_s20 = scalar_lea.vmem %s327_s1, 1024 }
  0x44   : > { %p7220_p10 = scmp.ne.s32.totalorder %s327_s1, %s7219_s20  ;;  %p7227_p5 = scmp.lt.s32.totalorder %s327_s1, %s327_s1 }
  0x45   : > { %p7228_p7 = scmp.lt.s32.totalorder %s7219_s20, %s7219_s20 }
  0x46   : > { %p7222_p2 = pnand %p7220_p10, %p7132_p0 }
  0x47   : > { %p7229_p8 = por %p7228_p7, %p7227_p5 }
  0x48   : > { %p7223_p3 = pneg %p7222_p2 }
  0x49   : > { %6488 = dma.hbm_to_vmem [thread:$0]  (!%p7542_p13), %s9761_s3, 1024, %s295_s28, [#allocation8], %s9694_s27, %s9694_s27, %s9695_s25  }
  0x4a   : > { %p7230_p9 = pnand %p7229_p8, %p7223_p3 }
  0x4c   : > { %7233 = shalt.err (!%p7230_p9)
}
  0x4d   : > { %s9762_s7 = sld [smem:[#allocation63_spill]]  ;;  %s36_s29 = sadd.s32 1, %s7382_s17 }
  0x4e   : > { %p37_p10 = scmp.ge.s32.totalorder %s36_s29, 2  ;;  %s39_s30 = sadd.s32 1, %s7386_s18 }
  0x4f   : > { %s46_s28 = sadd.s32 1, %s7370_s14  ;;  %p53_p0 = scmp.ne.s32.totalorder %s7370_s14, %s7366_s13 }
  0x50   : > { %s9945_s29 = smov (%p37_p10, %s36_s29), 0  ;;  %s9947_s30 = smov (!%p37_p10, %s39_s30), %s7386_s18 }
  0x51   : > { %9763 = sst [smem:[#allocation23_spill]] %s9945_s29  ;;  %p54_p12 = scmp.eq.s32.totalorder %s7390_s19, 0 }
  0x52   : > { %s238_s12 = ssub.s32 %s7382_s17, %s9945_s29  ;;  %p41_p2 = scmp.ge.s32.totalorder %s9947_s30, 2 }
  0x53   : > { %6494 = dma.hbm_to_vmem [thread:$0]  (!%p7542_p13), %s9762_s7, 1024, %s327_s1, [#allocation11], %s9694_s27, %s9694_s27, %s9695_s25  }
  0x54   : > { %s242_s9 = sadd.s32 1, %s7358_s11  ;;  %p7604_p3 = por %p54_p12, %p53_p0 }
  0x55   : > { %p6507_p13 = scmp.lt.s32.totalorder %s7390_s19, 4  ;;  %s9949_s30 = smov (%p41_p2, %s9947_s30), 0 }
  0x56   : > { %s343_s24 = sand.u32 1, %s7370_s14   ;;  %s5412_s20 = sshll.u32 %s7386_s18, 11 }
  0x57   : > { %s43_s16 = ssub.s32 %s7386_s18, %s9949_s30  ;;  %s5157_s27 = sshll.u32 %s343_s24, 7 }
  0x58   : > { %p44_p5 = scmp.eq.s32.totalorder %s43_s16, 0  ;;  %s239_s21 = sor.u32 %s238_s12, %s43_s16 }
  0x59   : > { %p240_p7 = scmp.eq.s32.totalorder %s239_s21, 0  ;;  %s353_s29 = scalar_lea.hbm %s9679_s0, %s5412_s20 }
  0x5a   : > { %s7616_s25 = scalar_select %p44_p5, %s7370_s14, %s46_s28  }
  0x5b   : > { %s7619_s3 = scalar_select %p240_p7, %s7358_s11, %s242_s9  }
  0x5c   : > { %s347_s17 = scalar_lea.vmem [#allocation4], %s5157_s27  ;;  %p7628_p8 = pnand %p6507_p13, %p7604_p3 }
  0x5d   : > { %s354_s8 = sshll.u32 %s347_s17, 4  ;;  %s344_s12 = scalar_lea.sflag [#allocation5], %s343_s24  ;;  %s355_s8 = int_to_ptr.vmem [resolvable:$true] %s354_s8 }
  0x5e   : > { %p7236_p9 = pneg %p7628_p8  ;;  %s7247_s28 = scalar_lea.vmem %s355_s8, 2048 }
  0x5f   : > { %p7248_p10 = scmp.ne.s32.totalorder %s355_s8, %s7247_s28  ;;  %s7398_s9 = smov [#allocation4]  }
  0x60   : > { %s7252_s5 = sshll.u32 %s7398_s9, 4  ;;  %s7253_s5 = int_to_ptr.vmem [resolvable:$false] %s7252_s5 }
  0x61   : > { %p7250_p0 = pnand %p7248_p10, %p7236_p9  ;;  %s7254_s7 = scalar_lea.vmem %s7253_s5, 4096 }
  0x62   : > { %p7255_p2 = scmp.lt.s32.totalorder %s355_s8, %s7253_s5  ;;  %p7256_p5 = scmp.lt.s32.totalorder %s7254_s7, %s7247_s28 }
  0x63   : > { %p7251_p12 = pneg %p7250_p0 }
  0x64   : > { %p7257_p7 = por %p7256_p5, %p7255_p2 }
  0x66   : > { %p7258_p3 = pnand %p7257_p7, %p7251_p12 }
  0x68   : > { %7261 = shalt.err (!%p7258_p3)
}
  0x69   : > { %s9766_s17 = smov 4   ;;  %s9767_s27 = smov 64  }
  0x6a   : > { %6498 = dma.hbm_to_vmem [thread:$0]  (!%p7628_p8), %s353_s29, 2048, %s355_s8, %s344_s12, %s9767_s27, %s9767_s27, %s9766_s17  }
  0x6b   : > { %366 = sbr.rel (%p7534_p11) target bundleno = 3427 (0xd63), region = 56 }
  0x70   : > { %s368_s1 = sand.u32 1, %s7366_s13  }
  0x71   : > { %s5161_s24 = sshll.u32 %s368_s1, 7  ;;  %s369_s20 = scalar_lea.sflag [#allocation5], %s368_s1 }
  0x72   : > { %s7642_s16 = scalar_lea.vmem [#allocation4], %s5161_s24 }
  0x73   : > { %7333 = dma.done.wait (%p7518_p4), %s369_s20, 2048  }
  0x74   : > { %7335 = vsyncadd (%p7518_p4), %s369_s20, 4294965248 }
  0x75   : > { %7337 = dma.done.wait (%p7510_p1), [#allocation8], 2048  }
  0x76   : > { %7339 = vsyncadd (%p7510_p1), [#allocation8], 4294965248 }
  0x77   : > { %7341 = dma.done.wait (%p7510_p1), [#allocation11], 2048  }
  0x78   : > { %7343 = vsyncadd (%p7510_p1), [#allocation11], 4294965248  ;;  %s420_s2 = sand.u32 1, %s7354_s10   ;;  %p5167_p4 = scmp.ne.s32.totalorder %s7374_s15, 0 }
  0x79   : > { %s5166_s8 = sshll.u32 %s420_s2, 6 }
  0x7a   : > { %s7659_s26 = scalar_lea.vmem [#allocation13], %s5166_s8  ;;  %428 = sbr.rel (%p5167_p4) target bundleno = 421 (0x1a5), region = 80 }
  0x7f   : > { %v6611_v0 = vld [vmem:[#allocation9 + $0x38] sm:$0xff]   ;;  %v6613_v2 = vld [vmem:[#allocation9 + $0x30] sm:$0xff]   ;;  %v6615_v4 = vld [vmem:[#allocation9 + $0x28] sm:$0xff]  }
  0x80   : > { %v6612_v1 = vld [vmem:[#allocation10 + $0x38] sm:$0xff]   ;;  %6218 = vmatprep.subr.bf16.mxu0 %v6611_v0  ;;  %v6614_v3 = vld [vmem:[#allocation10 + $0x30] sm:$0xff]   ;;  %v6616_v5 = vld [vmem:[#allocation10 + $0x28] sm:$0xff]  }
  0x81   : > { %6266 = vmatprep.subr.bf16.mxu1 %v6612_v1  ;;  %6219 = vmatpush3.bf16.msra.mxu0 %v6611_v0  ;;  %v6617_v6 = vld [vmem:[#allocation9 + $0x20] sm:$0xff]   ;;  %v6619_v8 = vld [vmem:[#allocation9 + $0x18] sm:$0xff]   ;;  %v6621_v10 = vld [vmem:[#allocation9 + $0x10] sm:$0xff]  }
  0x82   : > { %6267 = vmatpush3.bf16.msra.mxu1 %v6612_v1  ;;  %6220 = vmatprep.subr.bf16.mxu0 %v6613_v2  ;;  %v6618_v7 = vld [vmem:[#allocation10 + $0x20] sm:$0xff]   ;;  %v6620_v9 = vld [vmem:[#allocation10 + $0x18] sm:$0xff]   ;;  %v6622_v12 = vld [vmem:[#allocation10 + $0x10] sm:$0xff]  }
  0x83   : > { %6268 = vmatprep.subr.bf16.mxu1 %v6614_v3  ;;  %v6627_v11 = vld [vmem:[%s7642_s16] sm:$0xff]   ;;  %v6623_v13 = vld [vmem:[#allocation9 + $0x8] sm:$0xff]   ;;  %v6629_v18 = vld [vmem:[%s7642_s16 + $0x10] sm:$0xff]  }
  0x84   : > { %6234 = vmatprep.mubr.bf16.mxu0 %v6627_v11  ;;  %6282 = vmatprep.mubr.bf16.mxu1 %v6627_v11  ;;  %v6624_v14 = vld [vmem:[#allocation10 + $0x8] sm:$0xff]   ;;  %v6625_v15 = vld [vmem:[#allocation9] sm:$0xff]   ;;  %v6630_v19 = vld [vmem:[%s7642_s16 + $0x18] sm:$0xff]  }
  0x85   : > { %6221 = vmatpush3.bf16.msra.mxu0 %v6613_v2  ;;  %v6626_v16 = vld [vmem:[#allocation10] sm:$0xff]   ;;  %v6628_v17 = vld [vmem:[%s7642_s16 + $0x8] sm:$0xff]   ;;  %v6633_v22 = vld [vmem:[%s7642_s16 + $0x30] sm:$0xff]  }
  0x86   : > { %6269 = vmatpush3.bf16.msra.mxu1 %v6614_v3  ;;  %6222 = vmatprep.subr.bf16.mxu0 %v6615_v4  ;;  %v6631_v20 = vld [vmem:[%s7642_s16 + $0x20] sm:$0xff]   ;;  %v6632_v21 = vld [vmem:[%s7642_s16 + $0x28] sm:$0xff]   ;;  %v6634_v23 = vld [vmem:[%s7642_s16 + $0x38] sm:$0xff]  }
  0x87   : > { %6270 = vmatprep.subr.bf16.mxu1 %v6616_v5  ;;  %v6635_v24 = vld [vmem:[%s7642_s16 + $0x40] sm:$0xff]   ;;  %v6636_v25 = vld [vmem:[%s7642_s16 + $0x48] sm:$0xff]   ;;  %v6637_v26 = vld [vmem:[%s7642_s16 + $0x50] sm:$0xff]  }
  0x88   : > { %v6638_v27 = vld [vmem:[%s7642_s16 + $0x58] sm:$0xff]   ;;  %v6639_v28 = vld [vmem:[%s7642_s16 + $0x60] sm:$0xff]   ;;  %v6640_v29 = vld [vmem:[%s7642_s16 + $0x68] sm:$0xff]  }
  0x89   : > { %6223 = vmatpush3.bf16.msra.mxu0 %v6615_v4  ;;  %v6641_v30 = vld [vmem:[%s7642_s16 + $0x70] sm:$0xff]   ;;  %v6642_v31 = vld [vmem:[%s7642_s16 + $0x78] sm:$0xff]   ;;  %v7681_v34 = vld [vmem:[%s9683_s4] ss:$0 sm:$0xff] }
  0x8a   : > { %6271 = vmatpush3.bf16.msra.mxu1 %v6616_v5  ;;  %6224 = vmatprep.subr.bf16.mxu0 %v6617_v6  ;;  %v7686_v36 = vld [vmem:[%s9685_s6] ss:$0 sm:$0xff] }
  0x8b   : > { %6272 = vmatprep.subr.bf16.mxu1 %v6618_v7 }
  0x8d   : > { %6225 = vmatpush3.bf16.msra.mxu0 %v6617_v6 }
  0x8e   : > { %6273 = vmatpush3.bf16.msra.mxu1 %v6618_v7  ;;  %6226 = vmatprep.subr.bf16.mxu0 %v6619_v8 }
  0x8f   : > { %6274 = vmatprep.subr.bf16.mxu1 %v6620_v9 }
  0x91   : > { %6227 = vmatpush3.bf16.msra.mxu0 %v6619_v8 }
  0x92   : > { %6275 = vmatpush3.bf16.msra.mxu1 %v6620_v9  ;;  %6228 = vmatprep.subr.bf16.mxu0 %v6621_v10 }
  0x93   : > { %6276 = vmatprep.subr.bf16.mxu1 %v6622_v12 }
  0x95   : > { %6229 = vmatpush3.bf16.msra.mxu0 %v6621_v10 }
  0x96   : > { %6277 = vmatpush3.bf16.msra.mxu1 %v6622_v12  ;;  %6230 = vmatprep.subr.bf16.mxu0 %v6623_v13 }
  0x97   : > { %6278 = vmatprep.subr.bf16.mxu1 %v6624_v14 }
  0x99   : > { %6231 = vmatpush3.bf16.msra.mxu0 %v6623_v13 }
  0x9a   : > { %6279 = vmatpush3.bf16.msra.mxu1 %v6624_v14  ;;  %6232 = vmatprep.subr.bf16.mxu0 %v6625_v15 }
  0x9b   : > { %6280 = vmatprep.subr.bf16.mxu1 %v6626_v16 }
  0x9d   : > { %6233 = vmatpush3.bf16.msra.mxu0 %v6625_v15 }
  0x9e   : > { %6281 = vmatpush3.bf16.msra.mxu1 %v6626_v16 }
  0xa0   : > { %6235 = vmatmul.mubr.bf16.vlgmr.msra.gmra.mxu0 %v6628_v17 }
  0xa1   : > { %6283 = vmatmul.mubr.bf16.vlgmr.msra.gmra.mxu1 %v6628_v17  ;;  %6238 = vmatprep.mubr.bf16.mxu0 %v6629_v18 }
  0xa2   : > { %6286 = vmatprep.mubr.bf16.mxu1 %v6629_v18 }
  0xa8   : > { %6239 = vmatmul.mubr.bf16.gmra.mxu0 %v6630_v19 }
  0xa9   : > { %6287 = vmatmul.mubr.bf16.gmra.mxu1 %v6630_v19  ;;  %6242 = vmatprep.mubr.bf16.mxu0 %v6631_v20 }
  0xaa   : > { %6290 = vmatprep.mubr.bf16.mxu1 %v6631_v20 }
  0xb0   : > { %6243 = vmatmul.mubr.bf16.gmra.mxu0 %v6632_v21 }
  0xb1   : > { %6291 = vmatmul.mubr.bf16.gmra.mxu1 %v6632_v21  ;;  %6246 = vmatprep.mubr.bf16.mxu0 %v6633_v22 }
  0xb2   : > { %6294 = vmatprep.mubr.bf16.mxu1 %v6633_v22 }
  0xb8   : > { %6247 = vmatmul.mubr.bf16.gmra.mxu0 %v6634_v23 }
  0xb9   : > { %6295 = vmatmul.mubr.bf16.gmra.mxu1 %v6634_v23  ;;  %6250 = vmatprep.mubr.bf16.mxu0 %v6635_v24 }
  0xba   : > { %6298 = vmatprep.mubr.bf16.mxu1 %v6635_v24 }
  0xc0   : > { %6251 = vmatmul.mubr.bf16.gmra.mxu0 %v6636_v25 }
  0xc1   : > { %6299 = vmatmul.mubr.bf16.gmra.mxu1 %v6636_v25  ;;  %6254 = vmatprep.mubr.bf16.mxu0 %v6637_v26 }
  0xc2   : > { %6302 = vmatprep.mubr.bf16.mxu1 %v6637_v26 }
  0xc8   : > { %6255 = vmatmul.mubr.bf16.gmra.mxu0 %v6638_v27 }
  0xc9   : > { %6303 = vmatmul.mubr.bf16.gmra.mxu1 %v6638_v27  ;;  %6258 = vmatprep.mubr.bf16.mxu0 %v6639_v28 }
  0xca   : > { %6306 = vmatprep.mubr.bf16.mxu1 %v6639_v28 }
  0xd0   : > { %6259 = vmatmul.mubr.bf16.gmra.mxu0 %v6640_v29 }
  0xd1   : > { %6307 = vmatmul.mubr.bf16.gmra.mxu1 %v6640_v29  ;;  %6262 = vmatprep.mubr.bf16.mxu0 %v6641_v30 }
  0xd2   : > { %6310 = vmatprep.mubr.bf16.mxu1 %v6641_v30 }
  0xd8   : > { %6263 = vmatmul.mubr.bf16.gmra.mxu0 %v6642_v31 }
  0xd9   : > { %6311 = vmatmul.mubr.bf16.gmra.mxu1 %v6642_v31 }
 0x160   : > { %v6236_v32 = vpop.f32.mrf.mxu0 }
 0x161   : > { %v6284_v33 = vpop.f32.mrf.mxu1  ;;  %v671_v39 = vadd.f32 %v6236_v32, %v7681_v34 }
 0x162   : > { %v662_v35 = vpop.f32.mrf.mxu0  ;;  %v1063_v42 = vadd.f32 %v6284_v33, %v7686_v36 }
 0x163   : > { %v1054_v37 = vpop.f32.mrf.mxu1  ;;  %v663_v45 = vadd.f32 %v7681_v34, %v662_v35 }
 0x164   : > { %v6237_v38 = vpop.f32.mrf.mxu0  ;;  %v1055_v49 = vadd.f32 %v7686_v36, %v1054_v37 }
 0x165   : > { %v674_v40 = vadd.f32 %v6237_v38, %v7681_v34  ;;  %v6285_v41 = vpop.f32.mrf.mxu1 }
 0x166   : > { %v1066_v43 = vadd.f32 %v6285_v41, %v7686_v36  ;;  %v665_v44 = vpop.f32.mrf.mxu0 }
 0x167   : > { %v5501_v46 = vpack.c.bf16 %v674_v40, %v671_v39  ;;  %v666_v47 = vadd.f32 %v7681_v34, %v665_v44  ;;  %v1057_v48 = vpop.f32.mrf.mxu1 }
 0x168   : > { %v5581_v50 = vpack.c.bf16 %v1066_v43, %v1063_v42  ;;  %v1058_v51 = vadd.f32 %v7686_v36, %v1057_v48  ;;  %v6240_v52 = vpop.f32.mrf.mxu0 }
 0x169   : > { %5693 = vst [vmem:[#allocation2 + $0x8] sm:$0xff] %v5501_v46   ;;  %v5496_v53 = vpack.c.bf16 %v666_v47, %v663_v45  ;;  %v6288_v54 = vpop.f32.mrf.mxu1  ;;  %v687_v59 = vadd.f32 %v6240_v52, %v7681_v34 }
 0x16a   : > { %5708 = vst [vmem:[#allocation3 + $0x8] sm:$0xff] %v5581_v50   ;;  %v5576_v55 = vpack.c.bf16 %v1058_v51, %v1055_v49  ;;  %v678_v56 = vpop.f32.mrf.mxu0  ;;  %v1079_v62 = vadd.f32 %v6288_v54, %v7686_v36 }
 0x16b   : > { %5497 = vst [vmem:[#allocation2] sm:$0xff] %v5496_v53   ;;  %v1070_v57 = vpop.f32.mrf.mxu1  ;;  %v679_v1 = vadd.f32 %v7681_v34, %v678_v56 }
 0x16c   : > { %5577 = vst [vmem:[#allocation3] sm:$0xff] %v5576_v55   ;;  %v6241_v58 = vpop.f32.mrf.mxu0  ;;  %v1071_v5 = vadd.f32 %v7686_v36, %v1070_v57 }
 0x16d   : > { %v690_v60 = vadd.f32 %v6241_v58, %v7681_v34  ;;  %v6289_v61 = vpop.f32.mrf.mxu1 }
 0x16e   : > { %v1082_v63 = vadd.f32 %v6289_v61, %v7686_v36  ;;  %v681_v0 = vpop.f32.mrf.mxu0 }
 0x16f   : > { %v5511_v2 = vpack.c.bf16 %v690_v60, %v687_v59  ;;  %v682_v3 = vadd.f32 %v7681_v34, %v681_v0  ;;  %v1073_v4 = vpop.f32.mrf.mxu1 }
 0x170   : > { %v5591_v6 = vpack.c.bf16 %v1082_v63, %v1079_v62  ;;  %v1074_v7 = vadd.f32 %v7686_v36, %v1073_v4  ;;  %v6244_v8 = vpop.f32.mrf.mxu0 }
 0x171   : > { %5695 = vst [vmem:[#allocation2 + $0x18] sm:$0xff] %v5511_v2   ;;  %v5506_v9 = vpack.c.bf16 %v682_v3, %v679_v1  ;;  %v6292_v10 = vpop.f32.mrf.mxu1  ;;  %v703_v15 = vadd.f32 %v6244_v8, %v7681_v34 }
 0x172   : > { %5710 = vst [vmem:[#allocation3 + $0x18] sm:$0xff] %v5591_v6   ;;  %v5586_v11 = vpack.c.bf16 %v1074_v7, %v1071_v5  ;;  %v694_v12 = vpop.f32.mrf.mxu0  ;;  %v1095_v18 = vadd.f32 %v6292_v10, %v7686_v36 }
 0x173   : > { %5694 = vst [vmem:[#allocation2 + $0x10] sm:$0xff] %v5506_v9   ;;  %v1086_v13 = vpop.f32.mrf.mxu1  ;;  %v695_v21 = vadd.f32 %v7681_v34, %v694_v12 }
 0x174   : > { %5709 = vst [vmem:[#allocation3 + $0x10] sm:$0xff] %v5586_v11   ;;  %v6245_v14 = vpop.f32.mrf.mxu0  ;;  %v1087_v25 = vadd.f32 %v7686_v36, %v1086_v13 }
 0x175   : > { %v706_v16 = vadd.f32 %v6245_v14, %v7681_v34  ;;  %v6293_v17 = vpop.f32.mrf.mxu1 }
 0x176   : > { %v1098_v19 = vadd.f32 %v6293_v17, %v7686_v36  ;;  %v697_v20 = vpop.f32.mrf.mxu0 }
 0x177   : > { %v5521_v22 = vpack.c.bf16 %v706_v16, %v703_v15  ;;  %v698_v23 = vadd.f32 %v7681_v34, %v697_v20  ;;  %v1089_v24 = vpop.f32.mrf.mxu1 }
 0x178   : > { %v5601_v26 = vpack.c.bf16 %v1098_v19, %v1095_v18  ;;  %v1090_v27 = vadd.f32 %v7686_v36, %v1089_v24  ;;  %v6248_v28 = vpop.f32.mrf.mxu0 }
 0x179   : > { %5697 = vst [vmem:[#allocation2 + $0x28] sm:$0xff] %v5521_v22   ;;  %v5516_v29 = vpack.c.bf16 %v698_v23, %v695_v21  ;;  %v6296_v30 = vpop.f32.mrf.mxu1  ;;  %v719_v37 = vadd.f32 %v6248_v28, %v7681_v34 }
 0x17a   : > { %5712 = vst [vmem:[#allocation3 + $0x28] sm:$0xff] %v5601_v26   ;;  %v5596_v31 = vpack.c.bf16 %v1090_v27, %v1087_v25  ;;  %v710_v32 = vpop.f32.mrf.mxu0  ;;  %v1111_v40 = vadd.f32 %v6296_v30, %v7686_v36 }
 0x17b   : > { %5696 = vst [vmem:[#allocation2 + $0x20] sm:$0xff] %v5516_v29   ;;  %v1102_v33 = vpop.f32.mrf.mxu1  ;;  %v711_v43 = vadd.f32 %v7681_v34, %v710_v32 }
 0x17c   : > { %5711 = vst [vmem:[#allocation3 + $0x20] sm:$0xff] %v5596_v31   ;;  %v6249_v35 = vpop.f32.mrf.mxu0  ;;  %v1103_v47 = vadd.f32 %v7686_v36, %v1102_v33 }
 0x17d   : > { %v722_v38 = vadd.f32 %v6249_v35, %v7681_v34  ;;  %v6297_v39 = vpop.f32.mrf.mxu1 }
 0x17e   : > { %v1114_v41 = vadd.f32 %v6297_v39, %v7686_v36  ;;  %v713_v42 = vpop.f32.mrf.mxu0 }
 0x17f   : > { %v5531_v44 = vpack.c.bf16 %v722_v38, %v719_v37  ;;  %v714_v45 = vadd.f32 %v7681_v34, %v713_v42  ;;  %v1105_v46 = vpop.f32.mrf.mxu1 }
 0x180   : > { %v5611_v48 = vpack.c.bf16 %v1114_v41, %v1111_v40  ;;  %v1106_v49 = vadd.f32 %v7686_v36, %v1105_v46  ;;  %v6252_v50 = vpop.f32.mrf.mxu0 }
 0x181   : > { %5699 = vst [vmem:[#allocation2 + $0x38] sm:$0xff] %v5531_v44   ;;  %v5526_v51 = vpack.c.bf16 %v714_v45, %v711_v43  ;;  %v6300_v52 = vpop.f32.mrf.mxu1  ;;  %v735_v57 = vadd.f32 %v6252_v50, %v7681_v34 }
 0x182   : > { %5714 = vst [vmem:[#allocation3 + $0x38] sm:$0xff] %v5611_v48   ;;  %v5606_v53 = vpack.c.bf16 %v1106_v49, %v1103_v47  ;;  %v726_v54 = vpop.f32.mrf.mxu0  ;;  %v1127_v60 = vadd.f32 %v6300_v52, %v7686_v36 }
 0x183   : > { %5698 = vst [vmem:[#allocation2 + $0x30] sm:$0xff] %v5526_v51   ;;  %v1118_v55 = vpop.f32.mrf.mxu1  ;;  %v727_v63 = vadd.f32 %v7681_v34, %v726_v54 }
 0x184   : > { %5713 = vst [vmem:[#allocation3 + $0x30] sm:$0xff] %v5606_v53   ;;  %v6253_v56 = vpop.f32.mrf.mxu0  ;;  %v1119_v3 = vadd.f32 %v7686_v36, %v1118_v55 }
 0x185   : > { %v738_v58 = vadd.f32 %v6253_v56, %v7681_v34  ;;  %v6301_v59 = vpop.f32.mrf.mxu1 }
 0x186   : > { %v1130_v61 = vadd.f32 %v6301_v59, %v7686_v36  ;;  %v729_v62 = vpop.f32.mrf.mxu0 }
 0x187   : > { %v5541_v0 = vpack.c.bf16 %v738_v58, %v735_v57  ;;  %v730_v1 = vadd.f32 %v7681_v34, %v729_v62  ;;  %v1121_v2 = vpop.f32.mrf.mxu1 }
 0x188   : > { %v5621_v4 = vpack.c.bf16 %v1130_v61, %v1127_v60  ;;  %v1122_v5 = vadd.f32 %v7686_v36, %v1121_v2  ;;  %v6256_v6 = vpop.f32.mrf.mxu0 }
 0x189   : > { %5701 = vst [vmem:[#allocation2 + $0x48] sm:$0xff] %v5541_v0   ;;  %v5536_v7 = vpack.c.bf16 %v730_v1, %v727_v63  ;;  %v6304_v8 = vpop.f32.mrf.mxu1  ;;  %v751_v13 = vadd.f32 %v6256_v6, %v7681_v34 }
 0x18a   : > { %5716 = vst [vmem:[#allocation3 + $0x48] sm:$0xff] %v5621_v4   ;;  %v5616_v9 = vpack.c.bf16 %v1122_v5, %v1119_v3  ;;  %v742_v10 = vpop.f32.mrf.mxu0  ;;  %v1143_v16 = vadd.f32 %v6304_v8, %v7686_v36 }
 0x18b   : > { %5700 = vst [vmem:[#allocation2 + $0x40] sm:$0xff] %v5536_v7   ;;  %v1134_v11 = vpop.f32.mrf.mxu1  ;;  %v743_v19 = vadd.f32 %v7681_v34, %v742_v10 }
 0x18c   : > { %5715 = vst [vmem:[#allocation3 + $0x40] sm:$0xff] %v5616_v9   ;;  %v6257_v12 = vpop.f32.mrf.mxu0  ;;  %v1135_v23 = vadd.f32 %v7686_v36, %v1134_v11 }
 0x18d   : > { %v754_v14 = vadd.f32 %v6257_v12, %v7681_v34  ;;  %v6305_v15 = vpop.f32.mrf.mxu1 }
 0x18e   : > { %v1146_v17 = vadd.f32 %v6305_v15, %v7686_v36  ;;  %v745_v18 = vpop.f32.mrf.mxu0 }
 0x18f   : > { %v5551_v20 = vpack.c.bf16 %v754_v14, %v751_v13  ;;  %v746_v21 = vadd.f32 %v7681_v34, %v745_v18  ;;  %v1137_v22 = vpop.f32.mrf.mxu1 }
 0x190   : > { %v5631_v24 = vpack.c.bf16 %v1146_v17, %v1143_v16  ;;  %v1138_v25 = vadd.f32 %v7686_v36, %v1137_v22  ;;  %v6260_v26 = vpop.f32.mrf.mxu0 }
 0x191   : > { %5703 = vst [vmem:[#allocation2 + $0x58] sm:$0xff] %v5551_v20   ;;  %v5546_v27 = vpack.c.bf16 %v746_v21, %v743_v19  ;;  %v6308_v28 = vpop.f32.mrf.mxu1  ;;  %v767_v33 = vadd.f32 %v6260_v26, %v7681_v34 }
 0x192   : > { %5718 = vst [vmem:[#allocation3 + $0x58] sm:$0xff] %v5631_v24   ;;  %v5626_v29 = vpack.c.bf16 %v1138_v25, %v1135_v23  ;;  %v758_v30 = vpop.f32.mrf.mxu0  ;;  %v1159_v38 = vadd.f32 %v6308_v28, %v7686_v36 }
 0x193   : > { %5702 = vst [vmem:[#allocation2 + $0x50] sm:$0xff] %v5546_v27   ;;  %v1150_v31 = vpop.f32.mrf.mxu1  ;;  %v759_v41 = vadd.f32 %v7681_v34, %v758_v30 }
 0x194   : > { %5717 = vst [vmem:[#allocation3 + $0x50] sm:$0xff] %v5626_v29   ;;  %v6261_v32 = vpop.f32.mrf.mxu0  ;;  %v1151_v45 = vadd.f32 %v7686_v36, %v1150_v31 }
 0x195   : > { %v770_v35 = vadd.f32 %v6261_v32, %v7681_v34  ;;  %v6309_v37 = vpop.f32.mrf.mxu1 }
 0x196   : > { %v1162_v39 = vadd.f32 %v6309_v37, %v7686_v36  ;;  %v761_v40 = vpop.f32.mrf.mxu0 }
 0x197   : > { %v5561_v42 = vpack.c.bf16 %v770_v35, %v767_v33  ;;  %v762_v43 = vadd.f32 %v7681_v34, %v761_v40  ;;  %v1153_v44 = vpop.f32.mrf.mxu1 }
 0x198   : > { %v5641_v46 = vpack.c.bf16 %v1162_v39, %v1159_v38  ;;  %v1154_v47 = vadd.f32 %v7686_v36, %v1153_v44  ;;  %v6264_v48 = vpop.f32.mrf.mxu0 }
 0x199   : > { %5705 = vst [vmem:[#allocation2 + $0x68] sm:$0xff] %v5561_v42   ;;  %v5556_v49 = vpack.c.bf16 %v762_v43, %v759_v41  ;;  %v6312_v50 = vpop.f32.mrf.mxu1  ;;  %v783_v55 = vadd.f32 %v6264_v48, %v7681_v34 }
 0x19a   : > { %5720 = vst [vmem:[#allocation3 + $0x68] sm:$0xff] %v5641_v46   ;;  %v5636_v51 = vpack.c.bf16 %v1154_v47, %v1151_v45  ;;  %v774_v52 = vpop.f32.mrf.mxu0  ;;  %v1175_v58 = vadd.f32 %v6312_v50, %v7686_v36 }
 0x19b   : > { %5704 = vst [vmem:[#allocation2 + $0x60] sm:$0xff] %v5556_v49   ;;  %v1166_v53 = vpop.f32.mrf.mxu1  ;;  %v775_v61 = vadd.f32 %v7681_v34, %v774_v52 }
 0x19c   : > { %5719 = vst [vmem:[#allocation3 + $0x60] sm:$0xff] %v5636_v51   ;;  %v6265_v54 = vpop.f32.mrf.mxu0  ;;  %v1167_v1 = vadd.f32 %v7686_v36, %v1166_v53 }
 0x19d   : > { %v786_v56 = vadd.f32 %v6265_v54, %v7681_v34  ;;  %v6313_v57 = vpop.f32.mrf.mxu1 }
 0x19e   : > { %v1178_v59 = vadd.f32 %v6313_v57, %v7686_v36  ;;  %v777_v60 = vpop.f32.mrf.mxu0 }
 0x19f   : > { %v5571_v62 = vpack.c.bf16 %v786_v56, %v783_v55  ;;  %v778_v63 = vadd.f32 %v7681_v34, %v777_v60  ;;  %v1169_v0 = vpop.f32.mrf.mxu1 }
 0x1a0   : > { %v5651_v2 = vpack.c.bf16 %v1178_v59, %v1175_v58  ;;  %v1170_v3 = vadd.f32 %v7686_v36, %v1169_v0 }
 0x1a1   : > { %5707 = vst [vmem:[#allocation2 + $0x78] sm:$0xff] %v5571_v62   ;;  %v5566_v4 = vpack.c.bf16 %v778_v63, %v775_v61 }
 0x1a2   : > { %5722 = vst [vmem:[#allocation3 + $0x78] sm:$0xff] %v5651_v2   ;;  %v5646_v5 = vpack.c.bf16 %v1170_v3, %v1167_v1 }
 0x1a3   : > { %5706 = vst [vmem:[#allocation2 + $0x70] sm:$0xff] %v5566_v4  }
 0x1a4   : > { %5721 = vst [vmem:[#allocation3 + $0x70] sm:$0xff] %v5646_v5  }
 0x1a5 PF: > { %v6643_v6 = vld [vmem:[#allocation7 + $0x38] sm:$0xff]   ;;  %s5266_s12 = sshll.u32 %s7374_s15, 7  ;;  %v6644_v7 = vld [vmem:[#allocation7 + $0x30] sm:$0xff]   ;;  %v6645_v34 = vld [vmem:[#allocation7 + $0x28] sm:$0xff]   ;;  %vm1746_vm0 = vcmask 261120   ;;  %s7399_s7 = smov 96  }
 0x1a6   : > { %s1342_s28 = sshra.s32 %s5266_s12, 3  ;;  %6314 = vmatprep.subr.bf16.mxu0 %v6643_v6  ;;  %v6646_v36 = vld [vmem:[#allocation7 + $0x20] sm:$0xff]   ;;  %v6647_v9 = vld [vmem:[#allocation7 + $0x18] sm:$0xff]   ;;  %v6648_v10 = vld [vmem:[#allocation7 + $0x10] sm:$0xff]   ;;  %s9768_s1 = sld [smem:[#allocation60_spill]] }
 0x1a7   : > { %s5267_s9 = sshll.u32 %s1342_s28, 2  ;;  %6315 = vmatpush3.bf16.msra.mxu0 %v6643_v6  ;;  %v6660_v12 = vld [vmem:[#allocation2 + $0x38] sm:$0xff]   ;;  %v6649_v15 = vld [vmem:[#allocation7 + $0x8] sm:$0xff]   ;;  %v6662_v16 = vld [vmem:[#allocation2 + $0x30] sm:$0xff]   ;;  %s7400_s24 = smov 64  }
 0x1a8   : > { %6316 = vmatprep.subr.bf16.mxu0 %v6644_v7  ;;  %s7754_s5 = scalar_lea.vmem %s7642_s16, %s5267_s9 [#allocation4]  ;;  %v7757_v11 = vld [vmem:[#allocation2 + $0x78] sm:$0xff]   ;;  %v1793_v14 = vsel %vm1746_vm0, %v6660_v12, 0  ;;  %v6650_v17 = vld [vmem:[#allocation7] sm:$0xff]   ;;  %v1790_v18 = vsel %vm1746_vm0, %v6662_v16, 0  ;;  %v6663_v19 = vld [vmem:[#allocation2 + $0x68] sm:$0xff]   ;;  %2431 = vrot.lane.b32.xlu0 %v6660_v12, %s7399_s7  ;;  %s7401_s20 = smov 32  }
 0x1a9   : > { %v6651_v8 = vld [vmem:[%s7754_s5] sm:$0xff]   ;;  %6430 = vmatprep.subr.msk.bf16.mxu1 %vm1746_vm0, %v7757_v11  ;;  %v6664_v20 = vld [vmem:[#allocation2 + $0x28] sm:$0xff]   ;;  %v6653_v23 = vld [vmem:[%s7754_s5 + $0x10] sm:$0xff]   ;;  %2447 = vrot.lane.b32.xlu1 %v7757_v11, %s7399_s7  ;;  %s9925_s22 = sld [smem:[#allocation64_spill]]  ;;  %s5407_s29 = sshll.u32 %s7374_s15, 4 }
 0x1aa   : > { %6330 = vmatprep.mubr.bf16.mxu0 %v6651_v8  ;;  %v7761_v13 = vld [vmem:[#allocation2 + $0x70] sm:$0xff]   ;;  %5795 = vmatpush3.bf16.xpose.msra.mxu1 %v1793_v14  ;;  %v6666_v21 = vld [vmem:[#allocation2 + $0x20] sm:$0xff]   ;;  %v6652_v22 = vld [vmem:[%s7754_s5 + $0x8] sm:$0xff]   ;;  %v1787_v24 = vsel %vm1746_vm0, %v6664_v20, 0  ;;  %s9926_s23 = sld [smem:[#allocation19_spill]]  ;;  %s5022_s15 = sshll.u32 %s7659_s26, 4  ;;  %s9606_s15 = int_to_ptr.vmem [resolvable:$true] %s5022_s15 }
 0x1ab   : > { %6317 = vmatpush3.bf16.msra.mxu0 %v6644_v7  ;;  %6431 = vmatprep.subr.msk.bf16.mxu1 %vm1746_vm0, %v7761_v13  ;;  %v6665_v25 = vld [vmem:[#allocation2 + $0x60] sm:$0xff]   ;;  %v1784_v26 = vsel %vm1746_vm0, %v6666_v21, 0  ;;  %v6654_v27 = vld [vmem:[%s7754_s5 + $0x18] sm:$0xff]   ;;  %v6656_v31 = vld [vmem:[%s7754_s5 + $0x28] sm:$0xff]   ;;  %s9928_s17 = sld [smem:[#allocation65_spill]]  ;;  %s7262_s16 = scalar_lea.vmem %s9606_s15, 1024 }
 0x1ac   : > { %6318 = vmatprep.subr.bf16.mxu0 %v6645_v34  ;;  %v6655_v28 = vld [vmem:[%s7754_s5 + $0x20] sm:$0xff]   ;;  %v7775_v29 = vld [vmem:[#allocation2 + $0x58] sm:$0xff]   ;;  %v6657_v32 = vld [vmem:[%s7754_s5 + $0x30] sm:$0xff]   ;;  %2429 = vrot.lane.b32.xlu0 %v6662_v16, %s7399_s7  ;;  %p7263_p1 = scmp.ne.s32.totalorder %s9606_s15, %s7262_s16  ;;  %s7402_s8 = smov [#allocation13]  }
 0x1ad   : > { %v7777_v30 = vld [vmem:[#allocation2 + $0x18] sm:$0xff]   ;;  %v7785_v35 = vld [vmem:[#allocation2 + $0x50] sm:$0xff]   ;;  %v7794_v40 = vld [vmem:[#allocation2 + $0x48] sm:$0xff]   ;;  %2445 = vrot.lane.b32.xlu1 %v7761_v13, %s7399_s7 }
 0x1ae   : > { %v1781_v33 = vsel %vm1746_vm0, %v7777_v30, 0  ;;  %v7789_v37 = vld [vmem:[#allocation2 + $0x10] sm:$0xff]   ;;  %v6658_v38 = vld [vmem:[%s7754_s5 + $0x38] sm:$0xff]   ;;  %v7798_v41 = vld [vmem:[#allocation2 + $0x8] sm:$0xff]   ;;  %p7264_p11 = pnand %p7263_p1, %p7524_p6 }
 0x1af   : > { %6319 = vmatpush3.bf16.msra.mxu0 %v6645_v34  ;;  %v1778_v39 = vsel %vm1746_vm0, %v7789_v37, 0  ;;  %v1775_v42 = vsel %vm1746_vm0, %v7798_v41, 0  ;;  %v7802_v43 = vld [vmem:[#allocation2 + $0x40] sm:$0xff]  }
 0x1b0   : > { %6320 = vmatprep.subr.bf16.mxu0 %v6646_v36  ;;  %v7804_v44 = vld [vmem:[#allocation2] sm:$0xff]   ;;  %2427 = vrot.lane.b32.xlu0 %v6664_v20, %s7399_s7  ;;  %s5408_s21 = sshll.u32 %s9926_s23, 5  ;;  %p7265_p13 = pneg %p7264_p11 }
 0x1b1   : > { %v1772_v45 = vsel %vm1746_vm0, %v7804_v44, 0  ;;  %2443 = vrot.lane.b32.xlu1 %v6663_v19, %s7399_s7  ;;  %v5268_v48 = vld [vmem:[%s9768_s1] ss:$0 sm:$0xff]  ;;  %s5019_s12 = sadd.s32 %s5408_s21, %s5407_s29  ;;  %s9929_s27 = smov %s9928_s17 }
 0x1b2   : > { %5797 = vmatpush3.bf16.xpose.msra.mxu1 %v1790_v18  ;;  %s5409_s9 = sshll.u32 %s5019_s12, 6 }
 0x1b3   : > { %6321 = vmatpush3.bf16.msra.mxu0 %v6646_v36  ;;  %6432 = vmatprep.subr.msk.bf16.mxu1 %vm1746_vm0, %v6663_v19  ;;  %s9612_s1 = scalar_lea.hbm %s9928_s17, %s5409_s9 }
 0x1b4   : > { %6322 = vmatprep.subr.bf16.mxu0 %v6647_v9  ;;  %2425 = vrot.lane.b32.xlu0 %v6666_v21, %s7399_s7 }
 0x1b5   : > { %2441 = vrot.lane.b32.xlu1 %v6665_v25, %s7399_s7 }
 0x1b7   : > { %6323 = vmatpush3.bf16.msra.mxu0 %v6647_v9 }
 0x1b8   : > { %6324 = vmatprep.subr.bf16.mxu0 %v6648_v10 }
 0x1ba   : > { %5799 = vmatpush3.bf16.xpose.msra.mxu1 %v1787_v24 }
 0x1bb   : > { %6325 = vmatpush3.bf16.msra.mxu0 %v6648_v10  ;;  %6433 = vmatprep.subr.msk.bf16.mxu1 %vm1746_vm0, %v6665_v25 }
 0x1bc   : > { %6326 = vmatprep.subr.bf16.mxu0 %v6649_v15 }
 0x1bf   : > { %6327 = vmatpush3.bf16.msra.mxu0 %v6649_v15 }
 0x1c0   : > { %6328 = vmatprep.subr.bf16.mxu0 %v6650_v17 }
 0x1c2   : > { %5801 = vmatpush3.bf16.xpose.msra.mxu1 %v1784_v26 }
 0x1c3   : > { %6329 = vmatpush3.bf16.msra.mxu0 %v6650_v17  ;;  %6434 = vmatprep.subr.msk.bf16.mxu1 %vm1746_vm0, %v7775_v29 }
 0x1c6   : > { %6331 = vmatmul.mubr.bf16.vlgmr.msra.gmra.mxu0 %v6652_v22 }
 0x1c7   : > { %6334 = vmatprep.mubr.bf16.mxu0 %v6653_v23 }
 0x1ca   : > { %5803 = vmatpush3.bf16.xpose.msra.mxu1 %v1781_v33 }
 0x1cb   : > { %6435 = vmatprep.subr.msk.bf16.mxu1 %vm1746_vm0, %v7785_v35 }
 0x1ce   : > { %6335 = vmatmul.mubr.bf16.gmra.mxu0 %v6654_v27 }
 0x1cf   : > { %6338 = vmatprep.mubr.bf16.mxu0 %v6655_v28 }
 0x1d2   : > { %5805 = vmatpush3.bf16.xpose.msra.mxu1 %v1778_v39 }
 0x1d3   : > { %6436 = vmatprep.subr.msk.bf16.mxu1 %vm1746_vm0, %v7794_v40 }
 0x1d6   : > { %6339 = vmatmul.mubr.bf16.gmra.mxu0 %v6656_v31 }
 0x1d7   : > { %6342 = vmatprep.mubr.bf16.mxu0 %v6657_v32 }
 0x1da   : > { %5807 = vmatpush3.bf16.xpose.msra.mxu1 %v1775_v42 }
 0x1db   : > { %6437 = vmatprep.subr.msk.bf16.mxu1 %vm1746_vm0, %v7802_v43 }
 0x1de   : > { %6343 = vmatmul.mubr.bf16.gmra.mxu0 %v6658_v38 }
 0x1e2   : > { %5809 = vmatpush3.bf16.xpose.msra.mxu1 %v1772_v45 }
 0x286   : > { %v6332_v46 = vpop.f32.mrf.mxu0 }
 0x287   : > { %v1524_v53 = vadd.f32 %v6332_v46, %v5268_v48 }
 0x288   : > { %v1515_v47 = vpop.f32.mrf.mxu0 }
 0x289   : > { %v1516_v50 = vadd.f32 %v5268_v48, %v1515_v47  ;;  %v1580_v60 = vmul.f32 0.17677669, %v1524_v53  ;;  %v7871_v47 = vld [vmem:[#allocation3 + $0x78] sm:$0xff]   ;;  %v7888_v53 = vld [vmem:[#allocation3 + $0x60] sm:$0xff]  }
 0x28a   : > { %v6333_v49 = vpop.f32.mrf.mxu0  ;;  %5826 = vmatprep.subr.bf16.mxu0 %v7871_v47 }
 0x28b   : > { %v1527_v51 = vadd.f32 %v6333_v49, %v5268_v48  ;;  %v1578_v56 = vmul.f32 0.17677669, %v1516_v50  ;;  %v7875_v49 = vld [vmem:[#allocation3 + $0x70] sm:$0xff]  }
 0x28c   : > { %v1518_v52 = vpop.f32.mrf.mxu0  ;;  %v7880_v50 = vld [vmem:[#allocation3 + $0x30] sm:$0xff]  }
 0x28d   : > { %v1519_v54 = vadd.f32 %v5268_v48, %v1518_v52  ;;  %v1581_v57 = vmul.f32 0.17677669, %v1527_v51  ;;  %v7882_v51 = vld [vmem:[#allocation3 + $0x68] sm:$0xff]  }
 0x28e   : > { %v6336_v55 = vpop.f32.mrf.mxu0  ;;  %9769 = vst [vmem:[#allocation24_spill] sm:$0xff] %v7882_v51  ;;  %v7886_v52 = vld [vmem:[#allocation3 + $0x28] sm:$0xff]  }
 0x28f   : > { %v1579_v58 = vmul.f32 0.17677669, %v1519_v54  ;;  %v7825_v0 = vpack.c.bf16 %v1581_v57, %v1580_v60  ;;  %v1540_v36 = vadd.f32 %v6336_v55, %v5268_v48  ;;  %9770 = vst [vmem:[#allocation25_spill] sm:$0xff] %v7886_v52  ;;  %v7891_v54 = vld [vmem:[#allocation3 + $0x20] sm:$0xff]   ;;  %v7894_v55 = vld [vmem:[#allocation3 + $0x58] sm:$0xff]   ;;  %v7900_v57 = vld [vmem:[#allocation3 + $0x50] sm:$0xff]  }
 0x290   : > { %v1531_v59 = vpop.f32.mrf.mxu0  ;;  %9771 = vst [vmem:[#allocation26_spill] sm:$0xff] %v7894_v55  ;;  %9772 = vst [vmem:[#allocation27_spill] sm:$0xff] %v7900_v57  ;;  %v6688_v60 = vld [vmem:[#allocation3 + $0x8] sm:$0xff]  }
 0x291   : > { %v7823_v61 = vpack.c.bf16 %v1579_v58, %v1578_v56  ;;  %v1532_v62 = vadd.f32 %v5268_v48, %v1531_v59  ;;  %v1584_v10 = vmul.f32 0.17677669, %v1540_v36  ;;  %v7897_v56 = vld [vmem:[#allocation3 + $0x18] sm:$0xff]   ;;  %v7903_v58 = vld [vmem:[#allocation3 + $0x10] sm:$0xff]   ;;  %v6687_v59 = vld [vmem:[#allocation3 + $0x48] sm:$0xff]  }
 0x292   : > { %v6337_v63 = vpop.f32.mrf.mxu0  ;;  %9773 = vst [vmem:[#allocation28_spill] sm:$0xff] %v7903_v58 }
 0x293   : > { %5810 = vmatprep.mubr.msk.bf16.mxu1 %vm1746_vm0, %v7823_v61  ;;  %v1582_v2 = vmul.f32 0.17677669, %v1532_v62  ;;  %v1543_v8 = vadd.f32 %v6337_v63, %v5268_v48  ;;  %v6689_v62 = vld [vmem:[#allocation3 + $0x40] sm:$0xff]  }
 0x294   : > { %5811 = vmatmul.mubr.msk.bf16.vlgmr.msra.gmra.mxu1 %vm1746_vm0, %v7823_v61  ;;  %v1534_v1 = vpop.f32.mrf.mxu0  ;;  %v6690_v63 = vld [vmem:[#allocation3] sm:$0xff]  }
 0x295   : > { %5812 = vmatprep.mubr.msk.bf16.mxu1 %vm1746_vm0, %v7825_v0  ;;  %v1535_v3 = vadd.f32 %v5268_v48, %v1534_v1  ;;  %v1585_v11 = vmul.f32 0.17677669, %v1543_v8  ;;  %v2448_v1 = vpop.permute.xlu1 %2447 }
 0x296   : > { %v6340_v4 = vpop.f32.mrf.mxu0 }
 0x297   : > { %v1583_v5 = vmul.f32 0.17677669, %v1535_v3  ;;  %v7839_v15 = vpack.c.bf16 %v1585_v11, %v1584_v10  ;;  %v1556_v21 = vadd.f32 %v6340_v4, %v5268_v48 }
 0x298   : > { %v1547_v6 = vpop.f32.mrf.mxu0 }
 0x299   : > { %v7833_v7 = vpack.c.bf16 %v1583_v5, %v1582_v2  ;;  %v1548_v12 = vadd.f32 %v5268_v48, %v1547_v6  ;;  %v1588_v24 = vmul.f32 0.17677669, %v1556_v21 }
 0x29a   : > { %v6341_v34 = vpop.f32.mrf.mxu0 }
 0x29b   : > { %v1586_v16 = vmul.f32 0.17677669, %v1548_v12  ;;  %v1559_v22 = vadd.f32 %v6341_v34, %v5268_v48 }
 0x29c   : > { %5813 = vmatmul.mubr.msk.bf16.gmra.mxu1 %vm1746_vm0, %v7825_v0  ;;  %v1550_v9 = vpop.f32.mrf.mxu0 }
 0x29d   : > { %5814 = vmatprep.mubr.msk.bf16.mxu1 %vm1746_vm0, %v7833_v7  ;;  %v1551_v13 = vadd.f32 %v5268_v48, %v1550_v9  ;;  %v1589_v25 = vmul.f32 0.17677669, %v1559_v22 }
 0x29e   : > { %v6344_v14 = vpop.f32.mrf.mxu0 }
 0x29f   : > { %v1587_v17 = vmul.f32 0.17677669, %v1551_v13  ;;  %v7851_v28 = vpack.c.bf16 %v1589_v25, %v1588_v24  ;;  %v1572_v38 = vadd.f32 %v6344_v14, %v5268_v48 }
 0x2a0   : > { %v1563_v18 = vpop.f32.mrf.mxu0 }
 0x2a1   : > { %v7845_v19 = vpack.c.bf16 %v1587_v17, %v1586_v16  ;;  %v1564_v26 = vadd.f32 %v5268_v48, %v1563_v18  ;;  %v1592_v42 = vmul.f32 0.17677669, %v1572_v38 }
 0x2a2   : > { %v6345_v20 = vpop.f32.mrf.mxu0 }
 0x2a3   : > { %v1590_v31 = vmul.f32 0.17677669, %v1564_v26  ;;  %v1575_v39 = vadd.f32 %v6345_v20, %v5268_v48 }
 0x2a4   : > { %5815 = vmatmul.mubr.msk.bf16.gmra.mxu1 %vm1746_vm0, %v7833_v7  ;;  %v1566_v23 = vpop.f32.mrf.mxu0 }
 0x2a5   : > { %5816 = vmatprep.mubr.msk.bf16.mxu1 %vm1746_vm0, %v7839_v15  ;;  %v1567_v27 = vadd.f32 %v5268_v48, %v1566_v23  ;;  %v1593_v45 = vmul.f32 0.17677669, %v1575_v39  ;;  %v7873_v48 = vld [vmem:[#allocation3 + $0x38] sm:$0xff]  }
 0x2a6   : > { %5827 = vmatpush3.bf16.msra.mxu0 %v7873_v48 }
 0x2a7   : > { %v1591_v32 = vmul.f32 0.17677669, %v1567_v27  ;;  %v7863_v46 = vpack.c.bf16 %v1593_v45, %v1592_v42  ;;  %5828 = vmatprep.subr.bf16.mxu0 %v7875_v49 }
 0x2a9   : > { %v7857_v33 = vpack.c.bf16 %v1591_v32, %v1590_v31 }
 0x2aa   : > { %5829 = vmatpush3.bf16.msra.mxu0 %v7880_v50 }
 0x2ab   : > { %5830 = vmatprep.subr.bf16.mxu0 %v7882_v51 }
 0x2ac   : > { %5817 = vmatmul.mubr.msk.bf16.gmra.mxu1 %vm1746_vm0, %v7839_v15 }
 0x2ad   : > { %5818 = vmatprep.mubr.msk.bf16.mxu1 %vm1746_vm0, %v7845_v19 }
 0x2ae   : > { %5831 = vmatpush3.bf16.msra.mxu0 %v7886_v52 }
 0x2af   : > { %5832 = vmatprep.subr.bf16.mxu0 %v7888_v53 }
 0x2b2   : > { %5833 = vmatpush3.bf16.msra.mxu0 %v7891_v54 }
 0x2b3   : > { %5834 = vmatprep.subr.bf16.mxu0 %v7894_v55 }
 0x2b4   : > { %5819 = vmatmul.mubr.msk.bf16.gmra.mxu1 %vm1746_vm0, %v7845_v19 }
 0x2b5   : > { %5820 = vmatprep.mubr.msk.bf16.mxu1 %vm1746_vm0, %v7851_v28 }
 0x2b6   : > { %5835 = vmatpush3.bf16.msra.mxu0 %v7897_v56 }
 0x2b7   : > { %5836 = vmatprep.subr.bf16.mxu0 %v7900_v57 }
 0x2ba   : > { %5837 = vmatpush3.bf16.msra.mxu0 %v7903_v58 }
 0x2bb   : > { %5838 = vmatprep.subr.bf16.mxu0 %v6687_v59 }
 0x2bc   : > { %5821 = vmatmul.mubr.msk.bf16.gmra.mxu1 %vm1746_vm0, %v7851_v28 }
 0x2bd   : > { %5822 = vmatprep.mubr.msk.bf16.mxu1 %vm1746_vm0, %v7857_v33 }
 0x2be   : > { %5839 = vmatpush3.bf16.msra.mxu0 %v6688_v60 }
 0x2bf   : > { %5840 = vmatprep.subr.bf16.mxu0 %v6689_v62 }
 0x2c2   : > { %5841 = vmatpush3.bf16.msra.mxu0 %v6690_v63 }
 0x2c3   : > { %6438 = vmatprep.subr.msk.bf16.mxu0 %vm1746_vm0, %v2448_v1 }
 0x2c4   : > { %5823 = vmatmul.mubr.msk.bf16.gmra.mxu1 %vm1746_vm0, %v7857_v33 }
 0x2c5   : > { %5824 = vmatprep.mubr.msk.bf16.mxu1 %vm1746_vm0, %v7863_v46 }
 0x2cc   : > { %5825 = vmatmul.mubr.msk.bf16.gmra.mxu1 %vm1746_vm0, %v7863_v46 }
 0x354   : > { %v7908_v2 = vpop.f32.mrf.mxu1 }
 0x356   : > { %v7910_v3 = vpop.f32.mrf.mxu1 }
 0x357   : > { %v1932_v4 = vmax.f32 %v7908_v2, %v7910_v3 }
 0x358   : > { %v7914_v5 = vpop.f32.mrf.mxu1 }
 0x359   : > { %1933 = vmax.xlane.f32.xlu0 %v1932_v4 }
 0x35a   : > { %v7916_v6 = vpop.f32.mrf.mxu1 }
 0x35b   : > { %v1935_v34 = vmax.f32 %v7914_v5, %v7916_v6 }
 0x35c   : > { %v7920_v36 = vpop.f32.mrf.mxu1 }
 0x35d   : > { %1936 = vmax.xlane.f32.xlu0 %v1935_v34 }
 0x35e   : > { %v7922_v8 = vpop.f32.mrf.mxu1 }
 0x35f   : > { %v1938_v9 = vmax.f32 %v7920_v36, %v7922_v8 }
 0x360   : > { %v7926_v10 = vpop.f32.mrf.mxu1 }
 0x361   : > { %1939 = vmax.xlane.f32.xlu1 %v1938_v9 }
 0x362   : > { %v7928_v11 = vpop.f32.mrf.mxu1 }
 0x363   : > { %v1941_v12 = vmax.f32 %v7926_v10, %v7928_v11 }
 0x364   : > { %v7932_v13 = vpop.f32.mrf.mxu1 }
 0x365   : > { %1942 = vmax.xlane.f32.xlu1 %v1941_v12 }
 0x366   : > { %v7934_v14 = vpop.f32.mrf.mxu1 }
 0x367   : > { %v1944_v16 = vmax.f32 %v7932_v13, %v7934_v14 }
 0x368   : > { %v7938_v17 = vpop.f32.mrf.mxu1 }
 0x369   : > { %1945 = vmax.xlane.f32.xlu0 %v1944_v16 }
 0x36a   : > { %v7940_v18 = vpop.f32.mrf.mxu1 }
 0x36b   : > { %v1947_v20 = vmax.f32 %v7938_v17, %v7940_v18 }
 0x36c   : > { %v7944_v21 = vpop.f32.mrf.mxu1 }
 0x36d   : > { %1948 = vmax.xlane.f32.xlu1 %v1947_v20 }
 0x36e   : > { %v7946_v22 = vpop.f32.mrf.mxu1 }
 0x36f   : > { %v1950_v23 = vmax.f32 %v7944_v21, %v7946_v22 }
 0x370   : > { %v7950_v24 = vpop.f32.mrf.mxu1 }
 0x371   : > { %1951 = vmax.xlane.f32.xlu0 %v1950_v23 }
 0x372   : > { %v7952_v25 = vpop.f32.mrf.mxu1 }
 0x373   : > { %v1953_v26 = vmax.f32 %v7950_v24, %v7952_v25 }
 0x374   : > { %v7956_v27 = vpop.f32.mrf.mxu1 }
 0x375   : > { %1954 = vmax.xlane.f32.xlu1 %v1953_v26 }
 0x376   : > { %v7958_v31 = vpop.f32.mrf.mxu1 }
 0x377   : > { %v1956_v32 = vmax.f32 %v7956_v27, %v7958_v31 }
 0x378   : > { %v7962_v38 = vpop.f32.mrf.mxu1 }
 0x379   : > { %1957 = vmax.xlane.f32.xlu0 %v1956_v32 }
 0x37a   : > { %v7964_v39 = vpop.f32.mrf.mxu1 }
 0x37b   : > { %v1959_v42 = vmax.f32 %v7962_v38, %v7964_v39 }
 0x37c   : > { %v7968_v45 = vpop.f32.mrf.mxu1 }
 0x37d   : > { %1960 = vmax.xlane.f32.xlu1 %v1959_v42 }
 0x37e   : > { %v7970_v59 = vpop.f32.mrf.mxu1 }
 0x37f   : > { %v1962_v60 = vmax.f32 %v7968_v45, %v7970_v59 }
 0x380   : > { %v7974_v62 = vpop.f32.mrf.mxu1 }
 0x381   : > { %1963 = vmax.xlane.f32.xlu0 %v1962_v60 }
 0x382   : > { %v7976_v63 = vpop.f32.mrf.mxu1 }
 0x383   : > { %v1965_v1 = vmax.f32 %v7974_v62, %v7976_v63 }
 0x384   : > { %v7980_v4 = vpop.f32.mrf.mxu1 }
 0x385   : > { %1966 = vmax.xlane.f32.xlu1 %v1965_v1 }
 0x386   : > { %v7982_v34 = vpop.f32.mrf.mxu1 }
 0x387   : > { %v1968_v9 = vmax.f32 %v7980_v4, %v7982_v34 }
 0x388   : > { %v7986_v12 = vpop.f32.mrf.mxu1 }
 0x389   : > { %1969 = vmax.xlane.f32.xlu0 %v1968_v9  ;;  %v8010_v9 = vpop.permute.xlu0 %2431 }
 0x38a   : > { %v7988_v16 = vpop.f32.mrf.mxu1  ;;  %9774 = vst [vmem:[#allocation29_spill] sm:$0xff] %v8010_v9 }
 0x38b   : > { %v1971_v20 = vmax.f32 %v7986_v12, %v7988_v16 }
 0x38c   : > { %v7992_v23 = vpop.f32.mrf.mxu1 }
 0x38d   : > { %1972 = vmax.xlane.f32.xlu1 %v1971_v20  ;;  %v8012_v20 = vpop.permute.xlu0 %2429 }
 0x38e   : > { %v7994_v26 = vpop.f32.mrf.mxu1  ;;  %9775 = vst [vmem:[#allocation30_spill] sm:$0xff] %v8012_v20 }
 0x38f   : > { %v1974_v32 = vmax.f32 %v7992_v23, %v7994_v26 }
 0x390   : > { %v8004_v42 = vpop.f32.mrf.mxu1 }
 0x391   : > { %1975 = vmax.xlane.f32.xlu0 %v1974_v32 }
 0x392   : > { %v8006_v60 = vpop.f32.mrf.mxu1 }
 0x393   : > { %v1977_v1 = vmax.f32 %v8004_v42, %v8006_v60 }
 0x39e   : > { %2439 = vrot.lane.b32.xlu1 %v7775_v29, %s7399_s7  ;;  %v8016_v29 = vpop.permute.xlu0 %2427 }
 0x39f   : > { %9776 = vst [vmem:[#allocation31_spill] sm:$0xff] %v8016_v29 }
 0x3a2   : > { %2421 = vrot.lane.b32.xlu1 %v7789_v37, %s7399_s7  ;;  %v8018_v37 = vpop.permute.xlu1 %2445 }
 0x3a3   : > { %9777 = vst [vmem:[#allocation32_spill] sm:$0xff] %v8018_v37 }
 0x3a6   : > { %v8022_v32 = vpop.permute.xlu1 %2443 }
 0x3a7   : > { %2423 = vrot.lane.b32.xlu0 %v7777_v30, %s7399_s7  ;;  %v8020_v30 = vpop.permute.xlu0 %2425  ;;  %9779 = vst [vmem:[#allocation34_spill] sm:$0xff] %v8022_v32 }
 0x3a8   : > { %9778 = vst [vmem:[#allocation33_spill] sm:$0xff] %v8020_v30 }
 0x3aa   : > { %v8026_v51 = vpop.permute.xlu1 %2441 }
 0x3c6   : > { %1978 = vmax.xlane.f32.xlu1 %v1977_v1 }
 0x3d7   : > { %2437 = vrot.lane.b32.xlu1 %v7785_v35, %s7399_s7 }
 0x3e2   : > { %v1934_v57 = vpop.xlane.xlu0 %1933 }
 0x3e3   : > { %v1980_v55 = vsub.f32 %v7908_v2, %v1934_v57  ;;  %v1981_v1 = vsub.f32 %v7910_v3, %v1934_v57 }
 0x3e5   : > { %v2012_v52 = vmul.f32 1.442695, %v1980_v55  ;;  %v2014_v9 = vmul.f32 1.442695, %v1981_v1 }
 0x3e6   : > { %v1937_v20 = vpop.xlane.xlu0 %1936 }
 0x3e7   : > { %6699 = vpow2.f32 %v2012_v52  ;;  %v1982_v35 = vsub.f32 %v7914_v5, %v1937_v20  ;;  %v1983_v29 = vsub.f32 %v7916_v6, %v1937_v20 }
 0x3e8   : > { %6701 = vpow2.f32 %v2014_v9 }
 0x3e9   : > { %v2016_v37 = vmul.f32 1.442695, %v1982_v35  ;;  %v2018_v30 = vmul.f32 1.442695, %v1983_v29 }
 0x3ea   : > { %v1940_v58 = vpop.xlane.xlu1 %1939 }
 0x3eb   : > { %6703 = vpow2.f32 %v2016_v37  ;;  %v1984_v32 = vsub.f32 %v7920_v36, %v1940_v58  ;;  %v1985_v2 = vsub.f32 %v7922_v8, %v1940_v58 }
 0x3ec   : > { %6705 = vpow2.f32 %v2018_v30 }
 0x3ed   : > { %v2020_v55 = vmul.f32 1.442695, %v1984_v32  ;;  %v2022_v57 = vmul.f32 1.442695, %v1985_v2 }
 0x3ee   : > { %v1943_v3 = vpop.xlane.xlu1 %1942 }
 0x3ef   : > { %6707 = vpow2.f32 %v2020_v55  ;;  %v1986_v52 = vsub.f32 %v7926_v10, %v1943_v3  ;;  %v1987_v5 = vsub.f32 %v7928_v11, %v1943_v3 }
 0x3f0   : > { %6709 = vpow2.f32 %v2022_v57 }
 0x3f1   : > { %v2024_v6 = vmul.f32 1.442695, %v1986_v52  ;;  %v2026_v9 = vmul.f32 1.442695, %v1987_v5 }
 0x3f2   : > { %v1946_v20 = vpop.xlane.xlu0 %1945 }
 0x3f3   : > { %6711 = vpow2.f32 %v2024_v6  ;;  %v1988_v29 = vsub.f32 %v7932_v13, %v1946_v20  ;;  %v1989_v36 = vsub.f32 %v7934_v14, %v1946_v20 }
 0x3f4   : > { %v8036_v37 = vpop.eup %6699  ;;  %6713 = vpow2.f32 %v2026_v9 }
 0x3f5   : > { %v8038_v58 = vpop.eup %6701  ;;  %v2028_v8 = vmul.f32 1.442695, %v1988_v29  ;;  %v2030_v30 = vmul.f32 1.442695, %v1989_v36 }
 0x3f6   : > { %v1949_v32 = vpop.xlane.xlu1 %1948  ;;  %v2076_v10 = vadd.f32 %v8038_v58, %v8036_v37 }
 0x3f7   : > { %6715 = vpow2.f32 %v2028_v8  ;;  %v1990_v11 = vsub.f32 %v7938_v17, %v1949_v32  ;;  %v1991_v1 = vsub.f32 %v7940_v18, %v1949_v32 }
 0x3f8   : > { %v8044_v35 = vpop.eup %6703  ;;  %6717 = vpow2.f32 %v2030_v30  ;;  %2077 = vadd.xlane.f32.xlu0 %v2076_v10 }
 0x3f9   : > { %v8046_v13 = vpop.eup %6705  ;;  %v2032_v14 = vmul.f32 1.442695, %v1990_v11  ;;  %v2034_v2 = vmul.f32 1.442695, %v1991_v1 }
 0x3fa   : > { %v1952_v55 = vpop.xlane.xlu0 %1951  ;;  %v2079_v57 = vadd.f32 %v8046_v13, %v8044_v35 }
 0x3fb   : > { %6719 = vpow2.f32 %v2032_v14  ;;  %v1992_v3 = vsub.f32 %v7944_v21, %v1952_v55  ;;  %v1993_v52 = vsub.f32 %v7946_v22, %v1952_v55 }
 0x3fc   : > { %v8052_v17 = vpop.eup %6707  ;;  %6721 = vpow2.f32 %v2034_v2  ;;  %2080 = vadd.xlane.f32.xlu1 %v2079_v57 }
 0x3fd   : > { %v8054_v18 = vpop.eup %6709  ;;  %v2036_v5 = vmul.f32 1.442695, %v1992_v3  ;;  %v2038_v6 = vmul.f32 1.442695, %v1993_v52 }
 0x3fe   : > { %v1955_v9 = vpop.xlane.xlu1 %1954  ;;  %v2082_v20 = vadd.f32 %v8054_v18, %v8052_v17 }
 0x3ff   : > { %6723 = vpow2.f32 %v2036_v5  ;;  %v1994_v29 = vsub.f32 %v7950_v24, %v1955_v9  ;;  %v1995_v36 = vsub.f32 %v7952_v25, %v1955_v9 }
 0x400   : > { %v8060_v21 = vpop.eup %6711  ;;  %6725 = vpow2.f32 %v2038_v6  ;;  %2083 = vadd.xlane.f32.xlu0 %v2082_v20 }
 0x401   : > { %v8062_v22 = vpop.eup %6713  ;;  %v2040_v8 = vmul.f32 1.442695, %v1994_v29  ;;  %v2042_v30 = vmul.f32 1.442695, %v1995_v36 }
 0x402   : > { %v1958_v32 = vpop.xlane.xlu0 %1957  ;;  %v2085_v10 = vadd.f32 %v8062_v22, %v8060_v21 }
 0x403   : > { %6727 = vpow2.f32 %v2040_v8  ;;  %v1996_v11 = vsub.f32 %v7956_v27, %v1958_v32  ;;  %v1997_v1 = vsub.f32 %v7958_v31, %v1958_v32 }
 0x404   : > { %v8068_v24 = vpop.eup %6715  ;;  %6729 = vpow2.f32 %v2042_v30  ;;  %2086 = vadd.xlane.f32.xlu1 %v2085_v10 }
 0x405   : > { %v8070_v25 = vpop.eup %6717  ;;  %v2044_v14 = vmul.f32 1.442695, %v1996_v11  ;;  %v2046_v2 = vmul.f32 1.442695, %v1997_v1 }
 0x406   : > { %v1961_v55 = vpop.xlane.xlu1 %1960  ;;  %v2088_v57 = vadd.f32 %v8070_v25, %v8068_v24 }
 0x407   : > { %6731 = vpow2.f32 %v2044_v14  ;;  %v1998_v3 = vsub.f32 %v7962_v38, %v1961_v55  ;;  %v1999_v52 = vsub.f32 %v7964_v39, %v1961_v55 }
 0x408   : > { %v8076_v27 = vpop.eup %6719  ;;  %6733 = vpow2.f32 %v2046_v2  ;;  %2089 = vadd.xlane.f32.xlu0 %v2088_v57 }
 0x409   : > { %v8078_v31 = vpop.eup %6721  ;;  %v2048_v5 = vmul.f32 1.442695, %v1998_v3  ;;  %v2050_v6 = vmul.f32 1.442695, %v1999_v52 }
 0x40a   : > { %v1964_v9 = vpop.xlane.xlu0 %1963  ;;  %v2091_v20 = vadd.f32 %v8078_v31, %v8076_v27 }
 0x40b   : > { %6735 = vpow2.f32 %v2048_v5  ;;  %v2000_v29 = vsub.f32 %v7968_v45, %v1964_v9  ;;  %v2001_v36 = vsub.f32 %v7970_v59, %v1964_v9 }
 0x40c   : > { %v8084_v38 = vpop.eup %6723  ;;  %6737 = vpow2.f32 %v2050_v6  ;;  %2092 = vadd.xlane.f32.xlu1 %v2091_v20 }
 0x40d   : > { %v8086_v39 = vpop.eup %6725  ;;  %v2052_v8 = vmul.f32 1.442695, %v2000_v29  ;;  %v2054_v30 = vmul.f32 1.442695, %v2001_v36 }
 0x40e   : > { %v1967_v32 = vpop.xlane.xlu1 %1966  ;;  %v2094_v10 = vadd.f32 %v8086_v39, %v8084_v38 }
 0x40f   : > { %6739 = vpow2.f32 %v2052_v8  ;;  %v2002_v11 = vsub.f32 %v7974_v62, %v1967_v32  ;;  %v2003_v1 = vsub.f32 %v7976_v63, %v1967_v32 }
 0x410   : > { %v8092_v45 = vpop.eup %6727  ;;  %6741 = vpow2.f32 %v2054_v30  ;;  %2095 = vadd.xlane.f32.xlu0 %v2094_v10 }
 0x411   : > { %v8094_v59 = vpop.eup %6729  ;;  %v2056_v14 = vmul.f32 1.442695, %v2002_v11  ;;  %v2058_v2 = vmul.f32 1.442695, %v2003_v1 }
 0x412   : > { %v1970_v55 = vpop.xlane.xlu0 %1969  ;;  %v2097_v57 = vadd.f32 %v8094_v59, %v8092_v45 }
 0x413   : > { %6743 = vpow2.f32 %v2056_v14  ;;  %v2004_v3 = vsub.f32 %v7980_v4, %v1970_v55  ;;  %v2005_v52 = vsub.f32 %v7982_v34, %v1970_v55 }
 0x414   : > { %v8100_v62 = vpop.eup %6731  ;;  %6745 = vpow2.f32 %v2058_v2  ;;  %2098 = vadd.xlane.f32.xlu1 %v2097_v57 }
 0x415   : > { %v8102_v63 = vpop.eup %6733  ;;  %v2060_v5 = vmul.f32 1.442695, %v2004_v3  ;;  %v2062_v6 = vmul.f32 1.442695, %v2005_v52 }
 0x416   : > { %v1973_v9 = vpop.xlane.xlu1 %1972  ;;  %v2100_v20 = vadd.f32 %v8102_v63, %v8100_v62 }
 0x417   : > { %6747 = vpow2.f32 %v2060_v5  ;;  %v2006_v29 = vsub.f32 %v7986_v12, %v1973_v9  ;;  %v2007_v36 = vsub.f32 %v7988_v16, %v1973_v9 }
 0x418   : > { %v8108_v4 = vpop.eup %6735  ;;  %6749 = vpow2.f32 %v2062_v6  ;;  %2101 = vadd.xlane.f32.xlu1 %v2100_v20 }
 0x419   : > { %v8110_v34 = vpop.eup %6737  ;;  %v2064_v8 = vmul.f32 1.442695, %v2006_v29  ;;  %v2066_v30 = vmul.f32 1.442695, %v2007_v36 }
 0x41a   : > { %v2103_v32 = vadd.f32 %v8110_v34, %v8108_v4  ;;  %v1976_v6 = vpop.xlane.xlu0 %1975  ;;  %v8144_v29 = vpop.permute.xlu1 %2439 }
 0x41b   : > { %6751 = vpow2.f32 %v2064_v8  ;;  %v2008_v9 = vsub.f32 %v7992_v23, %v1976_v6  ;;  %v2009_v20 = vsub.f32 %v7994_v26, %v1976_v6 }
 0x41c   : > { %v8114_v10 = vpop.eup %6739  ;;  %6753 = vpow2.f32 %v2066_v30  ;;  %2104 = vadd.xlane.f32.xlu0 %v2103_v32 }
 0x41d   : > { %v8116_v11 = vpop.eup %6741  ;;  %v2068_v36 = vmul.f32 1.442695, %v2008_v9  ;;  %v2070_v8 = vmul.f32 1.442695, %v2009_v20 }
 0x41e   : > { %v2106_v12 = vadd.f32 %v8116_v11, %v8114_v10  ;;  %v8146_v30 = vpop.permute.xlu1 %2421 }
 0x41f   : > { %6755 = vpow2.f32 %v2068_v36 }
 0x420   : > { %v8120_v16 = vpop.eup %6743  ;;  %2107 = vadd.xlane.f32.xlu1 %v2106_v12  ;;  %6757 = vpow2.f32 %v2070_v8 }
 0x421   : > { %v8122_v1 = vpop.eup %6745 }
 0x422   : > { %v2109_v14 = vadd.f32 %v8122_v1, %v8120_v16 }
 0x424   : > { %v8126_v2 = vpop.eup %6747  ;;  %2110 = vadd.xlane.f32.xlu0 %v2109_v14 }
 0x425   : > { %v8128_v55 = vpop.eup %6749 }
 0x426   : > { %v2112_v57 = vadd.f32 %v8128_v55, %v8126_v2 }
 0x428   : > { %v8132_v3 = vpop.eup %6751  ;;  %2113 = vadd.xlane.f32.xlu1 %v2112_v57 }
 0x429   : > { %v8134_v52 = vpop.eup %6753 }
 0x42a   : > { %v2115_v5 = vadd.f32 %v8134_v52, %v8132_v3 }
 0x42c   : > { %2116 = vadd.xlane.f32.xlu0 %v2115_v5 }
 0x439   : > { %2435 = vrot.lane.b32.xlu1 %v7794_v40, %s7399_s7 }
 0x442   : > { %2419 = vrot.lane.b32.xlu0 %v7798_v41, %s7399_s7  ;;  %v8150_v41 = vpop.eup %6755 }
 0x443   : > { %v8152_v26 = vpop.eup %6757 }
 0x444   : > { %v2118_v57 = vadd.f32 %v8152_v26, %v8150_v41 }
 0x44f   : > { %v1979_v32 = vpop.xlane.xlu1 %1978 }
 0x450   : > { %v2010_v12 = vsub.f32 %v8004_v42, %v1979_v32  ;;  %v2011_v40 = vsub.f32 %v8006_v60, %v1979_v32  ;;  %v8172_v60 = vpop.permute.xlu0 %2423 }
 0x452   : > { %v2072_v14 = vmul.f32 1.442695, %v2010_v12  ;;  %v2074_v23 = vmul.f32 1.442695, %v2011_v40 }
 0x454   : > { %6759 = vpow2.f32 %v2072_v14 }
 0x455   : > { %6761 = vpow2.f32 %v2074_v23  ;;  %v9780_v23 = vld [vmem:[#allocation28_spill] sm:$0xff] }
 0x45d   : > { %2119 = vadd.xlane.f32.xlu1 %v2118_v57 }
 0x461   : > { %v8156_v5 = vpop.eup %6759 }
 0x462   : > { %v8158_v6 = vpop.eup %6761 }
 0x463   : > { %v2121_v42 = vadd.f32 %v8158_v6, %v8156_v5 }
 0x465   : > { %2122 = vadd.xlane.f32.xlu0 %v2121_v42  ;;  %v9784_v42 = vld [vmem:[#allocation25_spill] sm:$0xff] }
 0x46e   : > { %2433 = vrot.lane.b32.xlu1 %v7802_v43, %s7399_s7  ;;  %v8178_v43 = vpop.permute.xlu1 %2437 }
 0x472   : > { %2403 = vrot.lane.b32.xlu1 %v7825_v0, %s7399_s7 }
 0x476   : > { %2407 = vrot.lane.b32.xlu1 %v7839_v15, %s7399_s7 }
 0x47a   : > { %2411 = vrot.lane.b32.xlu1 %v7851_v28, %s7399_s7 }
 0x47b   : > { %2417 = vrot.lane.b32.xlu0 %v7804_v44, %s7399_s7 }
 0x47e   : > { %2415 = vrot.lane.b32.xlu1 %v7863_v46, %s7399_s7 }
 0x47f   : > { %2401 = vrot.lane.b32.xlu0 %v7823_v61, %s7399_s7 }
 0x481   : > { %v2078_v9 = vpop.xlane.xlu0 %2077 }
 0x482   : > { %2904 = vrot.lane.b32.xlu1 %v7873_v48, %s7399_s7  ;;  %6763 = vrcp.f32 %v2078_v9 }
 0x483   : > { %2405 = vrot.lane.b32.xlu0 %v7833_v7, %s7399_s7 }
 0x485   : > { %v2081_v20 = vpop.xlane.xlu1 %2080 }
 0x486   : > { %6765 = vrcp.f32 %v2081_v20  ;;  %2902 = vrot.lane.b32.xlu1 %v7880_v50, %s7399_s7 }
 0x487   : > { %2409 = vrot.lane.b32.xlu0 %v7845_v19, %s7399_s7 }
 0x489   : > { %v2084_v44 = vpop.xlane.xlu0 %2083 }
 0x48a   : > { %2914 = vrot.lane.b32.xlu1 %v7888_v53, %s7399_s7  ;;  %6767 = vrcp.f32 %v2084_v44 }
 0x48b   : > { %2413 = vrot.lane.b32.xlu0 %v7857_v33, %s7399_s7 }
 0x48d   : > { %v2087_v48 = vpop.xlane.xlu1 %2086 }
 0x48e   : > { %6769 = vrcp.f32 %v2087_v48  ;;  %2898 = vrot.lane.b32.xlu1 %v7891_v54, %s7399_s7 }
 0x48f   : > { %2920 = vrot.lane.b32.xlu0 %v7871_v47, %s7399_s7  ;;  %v6764_v50 = vpop.eup %6763 }
 0x490   : > { %v2141_v53 = vmul.f32 %v6764_v50, %v8038_v58  ;;  %v2140_v12 = vmul.f32 %v6764_v50, %v8036_v37 }
 0x491   : > { %v2090_v36 = vpop.xlane.xlu0 %2089 }
 0x492   : > { %2896 = vrot.lane.b32.xlu1 %v7897_v56, %s7399_s7  ;;  %6771 = vrcp.f32 %v2090_v36  ;;  %v9781_v56 = vld [vmem:[#allocation24_spill] sm:$0xff] }
 0x493   : > { %v6766_v8 = vpop.eup %6765  ;;  %2918 = vrot.lane.b32.xlu0 %v7875_v49, %s7399_s7  ;;  %v9782_v49 = vld [vmem:[#allocation29_spill] sm:$0xff] }
 0x494   : > { %v2143_v32 = vmul.f32 %v6766_v8, %v8046_v13  ;;  %v2142_v54 = vmul.f32 %v6766_v8, %v8044_v35  ;;  %v2495_v57 = vsel %vm1746_vm0, %v9782_v49, 0  ;;  %v9783_v35 = vld [vmem:[#allocation32_spill] sm:$0xff] }
 0x495   : > { %v2093_v40 = vpop.xlane.xlu1 %2092 }
 0x496   : > { %6773 = vrcp.f32 %v2093_v40  ;;  %v2173_v47 = vpack.c.bf16 %v2143_v32, %v2141_v53  ;;  %v2172_v14 = vpack.c.bf16 %v2142_v54, %v2140_v12  ;;  %2894 = vrot.lane.b32.xlu1 %v9780_v23, %s7399_s7  ;;  %v9785_v53 = vld [vmem:[#allocation26_spill] sm:$0xff] }
 0x497   : > { %2916 = vrot.lane.b32.xlu0 %v9781_v56, %s7399_s7  ;;  %v6768_v58 = vpop.eup %6767  ;;  %v9786_v12 = vld [vmem:[#allocation30_spill] sm:$0xff] }
 0x498   : > { %2316 = vmatprep.mubr.bf16.mxu0 %v2173_v47  ;;  %v2145_v9 = vmul.f32 %v6768_v58, %v8054_v18  ;;  %v2144_v44 = vmul.f32 %v6768_v58, %v8052_v17  ;;  %v2492_v54 = vsel %vm1746_vm0, %v9786_v12, 0  ;;  %v9787_v17 = vld [vmem:[#allocation34_spill] sm:$0xff] }
 0x499   : > { %v2096_v13 = vpop.xlane.xlu0 %2095  ;;  %2317 = vmatmul.mubr.bf16.vlgmr.msra.gmra.mxu0 %v2172_v14 }
 0x49a   : > { %5891 = vmatpush3.bf16.xpose.msra.mxu0 %v2495_v57  ;;  %6775 = vrcp.f32 %v2096_v13  ;;  %v9789_v13 = vld [vmem:[#allocation31_spill] sm:$0xff] }
 0x49b   : > { %v6770_v37 = vpop.eup %6769  ;;  %6439 = vmatprep.subr.msk.bf16.mxu0 %vm1746_vm0, %v9783_v35  ;;  %2900 = vrot.lane.b32.xlu0 %v9784_v42, %s7399_s7 }
 0x49c   : > { %v2147_v20 = vmul.f32 %v6770_v37, %v8062_v22  ;;  %v2146_v48 = vmul.f32 %v6770_v37, %v8060_v21  ;;  %v9788_v21 = vld [vmem:[#allocation27_spill] sm:$0xff]  ;;  %v2489_v37 = vsel %vm1746_vm0, %v9789_v13, 0 }
 0x49d   : > { %v2099_v50 = vpop.xlane.xlu1 %2098 }
 0x49e   : > { %6777 = vrcp.f32 %v2099_v50  ;;  %v2175_v36 = vpack.c.bf16 %v2147_v20, %v2145_v9  ;;  %v2174_v8 = vpack.c.bf16 %v2146_v48, %v2144_v44  ;;  %v9790_v50 = vld [vmem:[#allocation33_spill] sm:$0xff] }
 0x49f   : > { %2912 = vrot.lane.b32.xlu0 %v9785_v53, %s7399_s7  ;;  %v6772_v32 = vpop.eup %6771 }
 0x4a0   : > { %2324 = vmatprep.mubr.bf16.mxu0 %v2175_v36  ;;  %v2149_v40 = vmul.f32 %v6772_v32, %v8070_v25  ;;  %v2148_v14 = vmul.f32 %v6772_v32, %v8068_v24  ;;  %v2486_v36 = vsel %vm1746_vm0, %v9790_v50, 0 }
 0x4a1   : > { %2325 = vmatmul.mubr.bf16.gmra.mxu0 %v2174_v8  ;;  %v2102_v18 = vpop.xlane.xlu1 %2101 }
 0x4a2   : > { %5893 = vmatpush3.bf16.xpose.msra.mxu0 %v2492_v54  ;;  %6779 = vrcp.f32 %v2102_v18  ;;  %v2483_v18 = vsel %vm1746_vm0, %v8172_v60, 0  ;;  %v2480_v60 = vsel %vm1746_vm0, %v8146_v30, 0 }
 0x4a3   : > { %v6774_v22 = vpop.eup %6773  ;;  %6440 = vmatprep.subr.msk.bf16.mxu0 %vm1746_vm0, %v9787_v17  ;;  %2910 = vrot.lane.b32.xlu0 %v9788_v21, %s7399_s7 }
 0x4a4   : > { %v2151_v47 = vmul.f32 %v6774_v22, %v8078_v31  ;;  %v2150_v23 = vmul.f32 %v6774_v22, %v8076_v27 }
 0x4a5   : > { %v2105_v56 = vpop.xlane.xlu0 %2104 }
 0x4a6   : > { %6781 = vrcp.f32 %v2105_v56  ;;  %v2177_v58 = vpack.c.bf16 %v2151_v47, %v2149_v40  ;;  %v2176_v49 = vpack.c.bf16 %v2150_v23, %v2148_v14 }
 0x4a7   : > { %v6776_v57 = vpop.eup %6775 }
 0x4a8   : > { %2332 = vmatprep.mubr.bf16.mxu0 %v2177_v58  ;;  %v2153_v24 = vmul.f32 %v6776_v57, %v8086_v39  ;;  %v2152_v27 = vmul.f32 %v6776_v57, %v8084_v38 }
 0x4a9   : > { %2333 = vmatmul.mubr.bf16.gmra.mxu0 %v2176_v49  ;;  %v2108_v35 = vpop.xlane.xlu1 %2107 }
 0x4aa   : > { %5895 = vmatpush3.bf16.xpose.msra.mxu0 %v2489_v37  ;;  %6783 = vrcp.f32 %v2108_v35 }
 0x4ab   : > { %v6778_v42 = vpop.eup %6777  ;;  %6441 = vmatprep.subr.msk.bf16.mxu0 %vm1746_vm0, %v8026_v51 }
 0x4ac   : > { %v2155_v25 = vmul.f32 %v6778_v42, %v8094_v59  ;;  %v2154_v31 = vmul.f32 %v6778_v42, %v8092_v45 }
 0x4ad   : > { %v2111_v9 = vpop.xlane.xlu0 %2110 }
 0x4ae   : > { %6785 = vrcp.f32 %v2111_v9  ;;  %v2179_v20 = vpack.c.bf16 %v2155_v25, %v2153_v24  ;;  %v2178_v44 = vpack.c.bf16 %v2154_v31, %v2152_v27 }
 0x4af   : > { %v6780_v48 = vpop.eup %6779 }
 0x4b0   : > { %2340 = vmatprep.mubr.bf16.mxu0 %v2179_v20  ;;  %v2157_v38 = vmul.f32 %v6780_v48, %v8102_v63  ;;  %v2156_v59 = vmul.f32 %v6780_v48, %v8100_v62 }
 0x4b1   : > { %2341 = vmatmul.mubr.bf16.gmra.mxu0 %v2178_v44  ;;  %v2114_v51 = vpop.xlane.xlu1 %2113 }
 0x4b2   : > { %5897 = vmatpush3.bf16.xpose.msra.mxu0 %v2486_v36  ;;  %6787 = vrcp.f32 %v2114_v51 }
 0x4b3   : > { %v6782_v39 = vpop.eup %6781  ;;  %6442 = vmatprep.subr.msk.bf16.mxu0 %vm1746_vm0, %v8144_v29 }
 0x4b4   : > { %v2159_v45 = vmul.f32 %v6782_v39, %v8110_v34  ;;  %v2158_v8 = vmul.f32 %v6782_v39, %v8108_v4 }
 0x4b5   : > { %v2117_v53 = vpop.xlane.xlu0 %2116  ;;  %v2436_v40 = vpop.permute.xlu1 %2435 }
 0x4b6   : > { %6789 = vrcp.f32 %v2117_v53  ;;  %v2181_v32 = vpack.c.bf16 %v2159_v45, %v2157_v38  ;;  %v2180_v12 = vpack.c.bf16 %v2158_v8, %v2156_v59 }
 0x4b7   : > { %v6784_v54 = vpop.eup %6783 }
 0x4b8   : > { %2348 = vmatprep.mubr.bf16.mxu0 %v2181_v32  ;;  %v2161_v63 = vmul.f32 %v6784_v54, %v8116_v11  ;;  %v2160_v4 = vmul.f32 %v6784_v54, %v8114_v10 }
 0x4b9   : > { %2349 = vmatmul.mubr.bf16.gmra.mxu0 %v2180_v12 }
 0x4ba   : > { %5899 = vmatpush3.bf16.xpose.msra.mxu0 %v2483_v18 }
 0x4bb   : > { %v6786_v29 = vpop.eup %6785  ;;  %6443 = vmatprep.subr.msk.bf16.mxu0 %vm1746_vm0, %v8178_v43  ;;  %v2420_v43 = vpop.permute.xlu0 %2419 }
 0x4bc   : > { %v2163_v62 = vmul.f32 %v6786_v29, %v8122_v1  ;;  %v2162_v34 = vmul.f32 %v6786_v29, %v8120_v16  ;;  %v2477_v30 = vsel %vm1746_vm0, %v2420_v43, 0 }
 0x4be   : > { %v2183_v22 = vpack.c.bf16 %v2163_v62, %v2161_v63  ;;  %v2182_v17 = vpack.c.bf16 %v2162_v34, %v2160_v4 }
 0x4bf   : > { %v6788_v21 = vpop.eup %6787 }
 0x4c0   : > { %2356 = vmatprep.mubr.bf16.mxu0 %v2183_v22  ;;  %v2165_v11 = vmul.f32 %v6788_v21, %v8128_v55  ;;  %v2164_v10 = vmul.f32 %v6788_v21, %v8126_v2 }
 0x4c1   : > { %2357 = vmatmul.mubr.bf16.gmra.mxu0 %v2182_v17 }
 0x4c2   : > { %5901 = vmatpush3.bf16.xpose.msra.mxu0 %v2480_v60 }
 0x4c3   : > { %v6790_v47 = vpop.eup %6789  ;;  %6444 = vmatprep.subr.msk.bf16.mxu0 %vm1746_vm0, %v2436_v40 }
 0x4c4   : > { %v2167_v1 = vmul.f32 %v6790_v47, %v8134_v52  ;;  %v2166_v16 = vmul.f32 %v6790_v47, %v8132_v3 }
 0x4c6   : > { %v2185_v14 = vpack.c.bf16 %v2167_v1, %v2165_v11  ;;  %v2184_v23 = vpack.c.bf16 %v2166_v16, %v2164_v10 }
 0x4c8   : > { %2364 = vmatprep.mubr.bf16.mxu0 %v2185_v14 }
 0x4c9   : > { %2365 = vmatmul.mubr.bf16.gmra.mxu0 %v2184_v23 }
 0x4ca   : > { %5903 = vmatpush3.bf16.xpose.msra.mxu0 %v2477_v30 }
 0x4e6   : > { %v2120_v56 = vpop.xlane.xlu1 %2119 }
 0x4e7   : > { %6791 = vrcp.f32 %v2120_v56 }
 0x4ea   : > { %v2434_v58 = vpop.permute.xlu1 %2433 }
 0x4eb   : > { %6445 = vmatprep.subr.msk.bf16.mxu0 %vm1746_vm0, %v2434_v58 }
 0x4ee   : > { %v2123_v55 = vpop.xlane.xlu0 %2122  ;;  %v2404_v27 = vpop.permute.xlu1 %2403 }
 0x4ef   : > { %6793 = vrcp.f32 %v2123_v55 }
 0x4f2   : > { %v2418_v52 = vpop.permute.xlu0 %2417 }
 0x4f3   : > { %v2474_v2 = vsel %vm1746_vm0, %v2418_v52, 0 }
 0x4f4   : > { %5905 = vmatpush3.bf16.xpose.msra.mxu0 %v2474_v2  ;;  %v6792_v3 = vpop.eup %6791 }
 0x4f5   : > { %v2169_v57 = vmul.f32 %v6792_v3, %v8152_v26  ;;  %v2168_v37 = vmul.f32 %v6792_v3, %v8150_v41  ;;  %v2408_v41 = vpop.permute.xlu1 %2407 }
 0x4f6   : > { %v2402_v25 = vpop.permute.xlu0 %2401 }
 0x4fa   : > { %v2406_v31 = vpop.permute.xlu0 %2405 }
 0x4fc   : > { %v6794_v49 = vpop.eup %6793 }
 0x4fd   : > { %v2171_v13 = vmul.f32 %v6794_v49, %v8158_v6  ;;  %v2170_v35 = vmul.f32 %v6794_v49, %v8156_v5  ;;  %v2412_v5 = vpop.permute.xlu1 %2411 }
 0x4fe   : > { %v2410_v26 = vpop.permute.xlu0 %2409 }
 0x4ff   : > { %v2187_v42 = vpack.c.bf16 %v2171_v13, %v2169_v57  ;;  %v2186_v24 = vpack.c.bf16 %v2170_v35, %v2168_v37 }
 0x501   : > { %2372 = vmatprep.mubr.bf16.mxu0 %v2187_v42  ;;  %v2416_v9 = vpop.permute.xlu1 %2415 }
 0x502   : > { %2373 = vmatmul.mubr.bf16.gmra.mxu0 %v2186_v24  ;;  %v2414_v6 = vpop.permute.xlu0 %2413 }
 0x503   : > { %5906 = vmatprep.mubr.msk.bf16.mxu0 %vm1746_vm0, %v2402_v25 }
 0x505   : > { %v2905_v42 = vpop.permute.xlu1 %2904 }
 0x506   : > { %v2921_v35 = vpop.permute.xlu0 %2920 }
 0x507   : > { %5922 = vmatprep.subr.bf16.mxu1 %v2921_v35 }
 0x508   : > { %5923 = vmatpush3.bf16.msra.mxu1 %v2905_v42 }
 0x50a   : > { %5907 = vmatmul.mubr.msk.bf16.vlgmr.msra.gmra.mxu0 %vm1746_vm0, %v2402_v25 }
 0x50b   : > { %5908 = vmatprep.mubr.msk.bf16.mxu0 %vm1746_vm0, %v2404_v27 }
 0x512   : > { %5909 = vmatmul.mubr.msk.bf16.gmra.mxu0 %vm1746_vm0, %v2404_v27 }
 0x513   : > { %5910 = vmatprep.mubr.msk.bf16.mxu0 %vm1746_vm0, %v2406_v31 }
 0x51a   : > { %5911 = vmatmul.mubr.msk.bf16.gmra.mxu0 %vm1746_vm0, %v2406_v31  ;;  %v2919_v31 = vpop.permute.xlu0 %2918 }
 0x51b   : > { %5912 = vmatprep.mubr.msk.bf16.mxu0 %vm1746_vm0, %v2408_v41  ;;  %5924 = vmatprep.subr.bf16.mxu1 %v2919_v31 }
 0x522   : > { %5913 = vmatmul.mubr.msk.bf16.gmra.mxu0 %vm1746_vm0, %v2408_v41 }
 0x523   : > { %5914 = vmatprep.mubr.msk.bf16.mxu0 %vm1746_vm0, %v2410_v26 }
 0x52a   : > { %5915 = vmatmul.mubr.msk.bf16.gmra.mxu0 %vm1746_vm0, %v2410_v26  ;;  %v2917_v26 = vpop.permute.xlu0 %2916 }
 0x52b   : > { %5916 = vmatprep.mubr.msk.bf16.mxu0 %vm1746_vm0, %v2412_v5 }
 0x532   : > { %5917 = vmatmul.mubr.msk.bf16.gmra.mxu0 %vm1746_vm0, %v2412_v5  ;;  %v2903_v5 = vpop.permute.xlu1 %2902 }
 0x533   : > { %5918 = vmatprep.mubr.msk.bf16.mxu0 %vm1746_vm0, %v2414_v6  ;;  %5925 = vmatpush3.bf16.msra.mxu1 %v2903_v5 }
 0x534   : > { %5926 = vmatprep.subr.bf16.mxu1 %v2917_v26 }
 0x53a   : > { %5919 = vmatmul.mubr.msk.bf16.gmra.mxu0 %vm1746_vm0, %v2414_v6  ;;  %v2901_v6 = vpop.permute.xlu0 %2900 }
 0x53b   : > { %5920 = vmatprep.mubr.msk.bf16.mxu0 %vm1746_vm0, %v2416_v9  ;;  %5927 = vmatpush3.bf16.msra.mxu1 %v2901_v6 }
 0x542   : > { %5921 = vmatmul.mubr.msk.bf16.gmra.mxu0 %vm1746_vm0, %v2416_v9  ;;  %v2915_v9 = vpop.permute.xlu1 %2914 }
 0x543   : > { %5928 = vmatprep.subr.bf16.mxu1 %v2915_v9 }
 0x559   : > { %v5842_v20 = vpop.f32.mrf.mxu0 }
 0x55b   : > { %v5843_v44 = vpop.f32.mrf.mxu0 }
 0x55c   : > { %v8284_v48 = vadd.f32 %v5843_v44, %v5842_v20  ;;  %v2899_v20 = vpop.permute.xlu1 %2898  ;;  %v2913_v44 = vpop.permute.xlu0 %2912 }
 0x55d   : > { %v5845_v50 = vpop.f32.mrf.mxu0  ;;  %5929 = vmatpush3.bf16.msra.mxu1 %v2899_v20 }
 0x55e   : > { %9791 = vst [vmem:[#allocation28_spill] sm:$0xff] %v8284_v48  ;;  %5930 = vmatprep.subr.bf16.mxu1 %v2913_v44 }
 0x55f   : > { %v5846_v36 = vpop.f32.mrf.mxu0 }
 0x560   : > { %v8286_v51 = vadd.f32 %v5846_v36, %v5845_v50  ;;  %v2897_v50 = vpop.permute.xlu1 %2896  ;;  %v2911_v36 = vpop.permute.xlu0 %2910 }
 0x561   : > { %v5848_v39 = vpop.f32.mrf.mxu0  ;;  %5931 = vmatpush3.bf16.msra.mxu1 %v2897_v50 }
 0x562   : > { %9792 = vst [vmem:[#allocation24_spill] sm:$0xff] %v8286_v51  ;;  %5932 = vmatprep.subr.bf16.mxu1 %v2911_v36 }
 0x563   : > { %v5849_v45 = vpop.f32.mrf.mxu0 }
 0x564   : > { %v8290_v59 = vadd.f32 %v5849_v45, %v5848_v39  ;;  %v2895_v39 = vpop.permute.xlu1 %2894 }
 0x565   : > { %v5851_v8 = vpop.f32.mrf.mxu0  ;;  %5933 = vmatpush3.bf16.msra.mxu1 %v2895_v39 }
 0x566   : > { %9793 = vst [vmem:[#allocation29_spill] sm:$0xff] %v8290_v59 }
 0x567   : > { %v5852_v53 = vpop.f32.mrf.mxu0 }
 0x568   : > { %v8292_v32 = vadd.f32 %v5852_v53, %v5851_v8 }
 0x569   : > { %v5854_v12 = vpop.f32.mrf.mxu0 }
 0x56a   : > { %9794 = vst [vmem:[#allocation32_spill] sm:$0xff] %v8292_v32 }
 0x56b   : > { %v5855_v18 = vpop.f32.mrf.mxu0 }
 0x56c   : > { %v8296_v29 = vadd.f32 %v5855_v18, %v5854_v12 }
 0x56d   : > { %v5857_v63 = vpop.f32.mrf.mxu0 }
 0x56e   : > { %9795 = vst [vmem:[#allocation25_spill] sm:$0xff] %v8296_v29 }
 0x56f   : > { %v5858_v62 = vpop.f32.mrf.mxu0 }
 0x570   : > { %v8298_v4 = vadd.f32 %v5858_v62, %v5857_v63 }
 0x571   : > { %v5860_v34 = vpop.f32.mrf.mxu0 }
 0x572   : > { %9796 = vst [vmem:[#allocation26_spill] sm:$0xff] %v8298_v4 }
 0x573   : > { %v5861_v17 = vpop.f32.mrf.mxu0 }
 0x574   : > { %v8302_v21 = vadd.f32 %v5861_v17, %v5860_v34 }
 0x575   : > { %v5863_v60 = vpop.f32.mrf.mxu0 }
 0x576   : > { %9797 = vst [vmem:[#allocation30_spill] sm:$0xff] %v8302_v21 }
 0x577   : > { %v5864_v40 = vpop.f32.mrf.mxu0 }
 0x578   : > { %v8304_v47 = vadd.f32 %v5864_v40, %v5863_v60 }
 0x579   : > { %v5866_v11 = vpop.f32.mrf.mxu0 }
 0x57a   : > { %9798 = vst [vmem:[#allocation34_spill] sm:$0xff] %v8304_v47 }
 0x57b   : > { %v5867_v10 = vpop.f32.mrf.mxu0 }
 0x57c   : > { %v8308_v16 = vadd.f32 %v5867_v10, %v5866_v11 }
 0x57d   : > { %v5869_v43 = vpop.f32.mrf.mxu0 }
 0x57e   : > { %9799 = vst [vmem:[#allocation27_spill] sm:$0xff] %v8308_v16 }
 0x57f   : > { %v5870_v14 = vpop.f32.mrf.mxu0 }
 0x580   : > { %v8310_v23 = vadd.f32 %v5870_v14, %v5869_v43 }
 0x581   : > { %v5872_v30 = vpop.f32.mrf.mxu0 }
 0x582   : > { %9800 = vst [vmem:[#allocation31_spill] sm:$0xff] %v8310_v23 }
 0x583   : > { %v5873_v58 = vpop.f32.mrf.mxu0 }
 0x584   : > { %v8314_v55 = vadd.f32 %v5873_v58, %v5872_v30 }
 0x585   : > { %v5875_v52 = vpop.f32.mrf.mxu0 }
 0x586   : > { %9801 = vst [vmem:[#allocation33_spill] sm:$0xff] %v8314_v55 }
 0x587   : > { %v5876_v2 = vpop.f32.mrf.mxu0 }
 0x588   : > { %v8316_v3 = vadd.f32 %v5876_v2, %v5875_v52 }
 0x589   : > { %v5878_v49 = vpop.f32.mrf.mxu0 }
 0x58a   : > { %9802 = vst [vmem:[#allocation35_spill] sm:$0xff] %v8316_v3 }
 0x58b   : > { %v5879_v13 = vpop.f32.mrf.mxu0 }
 0x58c   : > { %v8320_v37 = vadd.f32 %v5879_v13, %v5878_v49 }
 0x58d   : > { %v5881_v24 = vpop.f32.mrf.mxu0 }
 0x58e   : > { %9803 = vst [vmem:[#allocation36_spill] sm:$0xff] %v8320_v37 }
 0x58f   : > { %v5882_v25 = vpop.f32.mrf.mxu0 }
 0x590   : > { %v8322_v27 = vadd.f32 %v5882_v25, %v5881_v24 }
 0x592   : > { %9804 = vst [vmem:[#allocation37_spill] sm:$0xff] %v8322_v27 }
 0x5c2   : > { %v5884_v45 = vpop.f32.mrf.mxu0 }
 0x5c4   : > { %v5885_v8 = vpop.f32.mrf.mxu0 }
 0x5c5   : > { %v8326_v53 = vadd.f32 %v5885_v8, %v5884_v45 }
 0x5c6   : > { %v5887_v12 = vpop.f32.mrf.mxu0 }
 0x5c7   : > { %9805 = vst [vmem:[#allocation38_spill] sm:$0xff] %v8326_v53 }
 0x5c8   : > { %v5888_v18 = vpop.f32.mrf.mxu0 }
 0x5c9   : > { %v8328_v63 = vadd.f32 %v5888_v18, %v5887_v12 }
 0x5ca   : > { %v8330_v62 = vpop.f32.mrf.mxu0 }
 0x5cb   : > { %9806 = vst [vmem:[#allocation39_spill] sm:$0xff] %v8328_v63 }
 0x5cc   : > { %v8334_v17 = vpop.f32.mrf.mxu0 }
 0x5cd   : > { %v2634_v60 = vmax.f32 %v8330_v62, %v8334_v17 }
 0x5ce   : > { %v8338_v40 = vpop.f32.mrf.mxu0 }
 0x5cf   : > { %2635 = vmax.xlane.f32.xlu0 %v2634_v60 }
 0x5d0   : > { %v8340_v11 = vpop.f32.mrf.mxu0 }
 0x5d1   : > { %v2637_v10 = vmax.f32 %v8338_v40, %v8340_v11 }
 0x5d2   : > { %v8344_v43 = vpop.f32.mrf.mxu0 }
 0x5d3   : > { %2638 = vmax.xlane.f32.xlu1 %v2637_v10 }
 0x5d4   : > { %v8346_v14 = vpop.f32.mrf.mxu0 }
 0x5d5   : > { %v2640_v30 = vmax.f32 %v8344_v43, %v8346_v14 }
 0x5d6   : > { %v8350_v58 = vpop.f32.mrf.mxu0 }
 0x5d7   : > { %2641 = vmax.xlane.f32.xlu0 %v2640_v30 }
 0x5d8   : > { %v8352_v52 = vpop.f32.mrf.mxu0 }
 0x5d9   : > { %v2643_v2 = vmax.f32 %v8350_v58, %v8352_v52 }
 0x5da   : > { %v8356_v49 = vpop.f32.mrf.mxu0 }
 0x5db   : > { %2644 = vmax.xlane.f32.xlu0 %v2643_v2 }
 0x5dc   : > { %v8358_v13 = vpop.f32.mrf.mxu0 }
 0x5dd   : > { %v2646_v35 = vmax.f32 %v8356_v49, %v8358_v13 }
 0x5de   : > { %v8362_v42 = vpop.f32.mrf.mxu0 }
 0x5df   : > { %2647 = vmax.xlane.f32.xlu0 %v2646_v35 }
 0x5e0   : > { %v8364_v24 = vpop.f32.mrf.mxu0 }
 0x5e1   : > { %v2649_v25 = vmax.f32 %v8362_v42, %v8364_v24 }
 0x5e2   : > { %v8368_v31 = vpop.f32.mrf.mxu0 }
 0x5e3   : > { %2650 = vmax.xlane.f32.xlu1 %v2649_v25 }
 0x5e4   : > { %v8370_v26 = vpop.f32.mrf.mxu0 }
 0x5e5   : > { %v2652_v5 = vmax.f32 %v8368_v31, %v8370_v26 }
 0x5e6   : > { %v8374_v6 = vpop.f32.mrf.mxu0 }
 0x5e7   : > { %2653 = vmax.xlane.f32.xlu0 %v2652_v5 }
 0x5e8   : > { %v8376_v9 = vpop.f32.mrf.mxu0 }
 0x5e9   : > { %v2655_v20 = vmax.f32 %v8374_v6, %v8376_v9 }
 0x5ea   : > { %v8380_v44 = vpop.f32.mrf.mxu0 }
 0x5eb   : > { %2656 = vmax.xlane.f32.xlu1 %v2655_v20  ;;  %v7083_v20 = vld [vmem:[#allocation3 + $0x8] sm:$0xff]  }
 0x5ec   : > { %v8382_v50 = vpop.f32.mrf.mxu0 }
 0x5ed   : > { %v2658_v36 = vmax.f32 %v8380_v44, %v8382_v50 }
 0x5ee   : > { %v8386_v39 = vpop.f32.mrf.mxu0 }
 0x5ef   : > { %2659 = vmax.xlane.f32.xlu0 %v2658_v36  ;;  %v7084_v36 = vld [vmem:[#allocation3 + $0x48] sm:$0xff]  }
 0x5f0   : > { %v8388_v45 = vpop.f32.mrf.mxu0 }
 0x5f1   : > { %v2661_v8 = vmax.f32 %v8386_v39, %v8388_v45 }
 0x5f2   : > { %v8392_v12 = vpop.f32.mrf.mxu0 }
 0x5f3   : > { %2662 = vmax.xlane.f32.xlu1 %v2661_v8 }
 0x5f4   : > { %v8394_v18 = vpop.f32.mrf.mxu0 }
 0x5f5   : > { %v2664_v60 = vmax.f32 %v8392_v12, %v8394_v18 }
 0x5f6   : > { %v8398_v10 = vpop.f32.mrf.mxu0 }
 0x5f7   : > { %2665 = vmax.xlane.f32.xlu0 %v2664_v60 }
 0x5f8   : > { %v8400_v30 = vpop.f32.mrf.mxu0 }
 0x5f9   : > { %v2667_v2 = vmax.f32 %v8398_v10, %v8400_v30 }
 0x5fa   : > { %v8404_v35 = vpop.f32.mrf.mxu0 }
 0x5fb   : > { %2668 = vmax.xlane.f32.xlu1 %v2667_v2 }
 0x5fc   : > { %v8406_v25 = vpop.f32.mrf.mxu0 }
 0x5fd   : > { %v2670_v5 = vmax.f32 %v8404_v35, %v8406_v25 }
 0x5fe   : > { %v8412_v8 = vpop.f32.mrf.mxu0 }
 0x5ff   : > { %2671 = vmax.xlane.f32.xlu0 %v2670_v5 }
 0x600   : > { %v8414_v60 = vpop.f32.mrf.mxu0 }
 0x601   : > { %v2673_v57 = vmax.f32 %v8412_v8, %v8414_v60 }
 0x602   : > { %v8416_v34 = vpop.f32.mrf.mxu0 }
 0x604   : > { %v8418_v41 = vpop.f32.mrf.mxu0 }
 0x606   : > { %v8420_v2 = vpop.f32.mrf.mxu0 }
 0x608   : > { %v8424_v5 = vpop.f32.mrf.mxu0 }
 0x60c   : > { %2892 = vrot.lane.b32.xlu1 %v7083_v20, %s7399_s7  ;;  %v2676_v20 = vmax.f32 %v8416_v34, %v8418_v41 }
 0x615   : > { %2908 = vrot.lane.b32.xlu0 %v7084_v36, %s7399_s7  ;;  %v2679_v36 = vmax.f32 %v8420_v2, %v8424_v5 }
 0x630   : > { %2674 = vmax.xlane.f32.xlu1 %v2673_v57 }
 0x634   : > { %2677 = vmax.xlane.f32.xlu0 %v2676_v20  ;;  %2680 = vmax.xlane.f32.xlu1 %v2679_v36 }
 0x658   : > { %v2636_v56 = vpop.xlane.xlu0 %2635 }
 0x659   : > { %v2682_v1 = vsub.f32 %v8330_v62, %v2636_v56  ;;  %v2683_v22 = vsub.f32 %v8334_v17, %v2636_v56 }
 0x65b   : > { %v2714_v54 = vmul.f32 1.442695, %v2682_v1  ;;  %v2716_v38 = vmul.f32 1.442695, %v2683_v22 }
 0x65c   : > { %v2639_v53 = vpop.xlane.xlu1 %2638 }
 0x65d   : > { %6795 = vpow2.f32 %v2714_v54  ;;  %v2684_v63 = vsub.f32 %v8338_v40, %v2639_v53  ;;  %v2685_v57 = vsub.f32 %v8340_v11, %v2639_v53 }
 0x65e   : > { %6797 = vpow2.f32 %v2716_v38 }
 0x65f   : > { %v2718_v37 = vmul.f32 1.442695, %v2684_v63  ;;  %v2720_v27 = vmul.f32 1.442695, %v2685_v57 }
 0x660   : > { %v2642_v55 = vpop.xlane.xlu0 %2641 }
 0x661   : > { %6799 = vpow2.f32 %v2718_v37  ;;  %v2686_v20 = vsub.f32 %v8344_v43, %v2642_v55  ;;  %v2687_v36 = vsub.f32 %v8346_v14, %v2642_v55 }
 0x662   : > { %6801 = vpow2.f32 %v2720_v27 }
 0x663   : > { %v2722_v62 = vmul.f32 1.442695, %v2686_v20  ;;  %v2724_v56 = vmul.f32 1.442695, %v2687_v36 }
 0x664   : > { %v2645_v1 = vpop.xlane.xlu0 %2644 }
 0x665   : > { %6803 = vpow2.f32 %v2722_v62  ;;  %v2688_v54 = vsub.f32 %v8350_v58, %v2645_v1  ;;  %v2689_v22 = vsub.f32 %v8352_v52, %v2645_v1 }
 0x666   : > { %6805 = vpow2.f32 %v2724_v56 }
 0x667   : > { %v2726_v53 = vmul.f32 1.442695, %v2688_v54  ;;  %v2728_v38 = vmul.f32 1.442695, %v2689_v22 }
 0x668   : > { %v2648_v63 = vpop.xlane.xlu0 %2647 }
 0x669   : > { %6807 = vpow2.f32 %v2726_v53  ;;  %v2690_v37 = vsub.f32 %v8356_v49, %v2648_v63  ;;  %v2691_v17 = vsub.f32 %v8358_v13, %v2648_v63 }
 0x66a   : > { %v8440_v40 = vpop.eup %6795  ;;  %6809 = vpow2.f32 %v2728_v38 }
 0x66b   : > { %v8442_v55 = vpop.eup %6797  ;;  %v2730_v27 = vmul.f32 1.442695, %v2690_v37  ;;  %v2732_v11 = vmul.f32 1.442695, %v2691_v17 }
 0x66c   : > { %v2651_v43 = vpop.xlane.xlu1 %2650  ;;  %v2778_v14 = vadd.f32 %v8442_v55, %v8440_v40 }
 0x66d   : > { %6811 = vpow2.f32 %v2730_v27  ;;  %v2692_v58 = vsub.f32 %v8362_v42, %v2651_v43  ;;  %v2693_v52 = vsub.f32 %v8364_v24, %v2651_v43 }
 0x66e   : > { %v8448_v57 = vpop.eup %6799  ;;  %6813 = vpow2.f32 %v2732_v11  ;;  %2779 = vadd.xlane.f32.xlu1 %v2778_v14 }
 0x66f   : > { %v8450_v49 = vpop.eup %6801  ;;  %v2734_v13 = vmul.f32 1.442695, %v2692_v58  ;;  %v2736_v20 = vmul.f32 1.442695, %v2693_v52 }
 0x670   : > { %v2781_v36 = vadd.f32 %v8450_v49, %v8448_v57  ;;  %v2654_v38 = vpop.xlane.xlu0 %2653 }
 0x671   : > { %6815 = vpow2.f32 %v2734_v13  ;;  %v2695_v3 = vsub.f32 %v8370_v26, %v2654_v38 }
 0x672   : > { %v8454_v62 = vpop.eup %6803  ;;  %6817 = vpow2.f32 %v2736_v20  ;;  %2782 = vadd.xlane.f32.xlu1 %v2781_v36 }
 0x673   : > { %v8456_v56 = vpop.eup %6805  ;;  %v2740_v47 = vmul.f32 1.442695, %v2695_v3 }
 0x674   : > { %v2784_v42 = vadd.f32 %v8456_v56, %v8454_v62  ;;  %v2657_v27 = vpop.xlane.xlu1 %2656 }
 0x675   : > { %v2697_v16 = vsub.f32 %v8376_v9, %v2657_v27 }
 0x676   : > { %v8460_v24 = vpop.eup %6807  ;;  %2785 = vadd.xlane.f32.xlu1 %v2784_v42  ;;  %v7085_v42 = vld [vmem:[#allocation3] sm:$0xff]  }
 0x677   : > { %v8462_v1 = vpop.eup %6809  ;;  %v2744_v29 = vmul.f32 1.442695, %v2697_v16 }
 0x678   : > { %v2787_v54 = vadd.f32 %v8462_v1, %v8460_v24  ;;  %v2660_v11 = vpop.xlane.xlu0 %2659 }
 0x679   : > { %v2698_v21 = vsub.f32 %v8380_v44, %v2660_v11 }
 0x67a   : > { %v8466_v22 = vpop.eup %6811  ;;  %2788 = vadd.xlane.f32.xlu0 %v2787_v54  ;;  %v7086_v54 = vld [vmem:[#allocation3 + $0x40] sm:$0xff]  }
 0x67b   : > { %v8468_v53 = vpop.eup %6813 }
 0x67c   : > { %v2790_v63 = vadd.f32 %v8468_v53, %v8466_v22  ;;  %v2663_v14 = vpop.xlane.xlu1 %2662 }
 0x67e   : > { %v8472_v37 = vpop.eup %6815  ;;  %2791 = vadd.xlane.f32.xlu0 %v2790_v63  ;;  %v2694_v63 = vsub.f32 %v8368_v31, %v2654_v38  ;;  %v2746_v31 = vmul.f32 1.442695, %v2698_v21 }
 0x67f   : > { %v8474_v17 = vpop.eup %6817 }
 0x680   : > { %v2793_v43 = vadd.f32 %v8474_v17, %v8472_v37  ;;  %v2666_v58 = vpop.xlane.xlu0 %2665  ;;  %v2738_v23 = vmul.f32 1.442695, %v2694_v63 }
 0x681   : > { %v2702_v44 = vsub.f32 %v8392_v12, %v2666_v58  ;;  %v2703_v16 = vsub.f32 %v8394_v18, %v2666_v58 }
 0x682   : > { %2794 = vadd.xlane.f32.xlu1 %v2793_v43  ;;  %v2696_v43 = vsub.f32 %v8374_v6, %v2657_v27  ;;  %6819 = vpow2.f32 %v2738_v23 }
 0x683   : > { %6821 = vpow2.f32 %v2740_v47  ;;  %v2754_v21 = vmul.f32 1.442695, %v2702_v44  ;;  %v2756_v23 = vmul.f32 1.442695, %v2703_v16 }
 0x684   : > { %v2669_v52 = vpop.xlane.xlu1 %2668 }
 0x685   : > { %v2704_v26 = vsub.f32 %v8398_v10, %v2669_v52  ;;  %v2705_v9 = vsub.f32 %v8400_v30, %v2669_v52 }
 0x688   : > { %v2672_v13 = vpop.xlane.xlu0 %2671  ;;  %v2893_v36 = vpop.permute.xlu1 %2892 }
 0x689   : > { %v2706_v47 = vsub.f32 %v8404_v35, %v2672_v13 }
 0x68c   : > { %v2909_v20 = vpop.permute.xlu0 %2908 }
 0x68d   : > { %5934 = vmatprep.subr.bf16.mxu1 %v2909_v20  ;;  %v2699_v20 = vsub.f32 %v8382_v50, %v2660_v11  ;;  %v2758_v50 = vmul.f32 1.442695, %v2704_v26 }
 0x68e   : > { %5935 = vmatpush3.bf16.msra.mxu1 %v2893_v36  ;;  %v2742_v36 = vmul.f32 1.442695, %v2696_v43 }
 0x68f   : > { %v2748_v6 = vmul.f32 1.442695, %v2699_v20  ;;  %v8494_v10 = vpop.eup %6819 }
 0x690   : > { %6823 = vpow2.f32 %v2742_v36  ;;  %v8496_v30 = vpop.eup %6821 }
 0x691   : > { %6825 = vpow2.f32 %v2744_v29  ;;  %v2762_v29 = vmul.f32 1.442695, %v2706_v47  ;;  %v2796_v35 = vadd.f32 %v8496_v30, %v8494_v10 }
 0x692   : > { %6827 = vpow2.f32 %v2746_v31 }
 0x693   : > { %2890 = vrot.lane.b32.xlu1 %v7085_v42, %s7399_s7  ;;  %v2700_v42 = vsub.f32 %v8386_v39, %v2663_v14  ;;  %6829 = vpow2.f32 %v2748_v6  ;;  %v2760_v39 = vmul.f32 1.442695, %v2705_v9 }
 0x694   : > { %2906 = vrot.lane.b32.xlu0 %v7086_v54, %s7399_s7  ;;  %v2701_v54 = vsub.f32 %v8388_v45, %v2663_v14  ;;  %v2707_v45 = vsub.f32 %v8406_v25, %v2672_v13 }
 0x695   : > { %v2750_v38 = vmul.f32 1.442695, %v2700_v42 }
 0x696   : > { %v2752_v3 = vmul.f32 1.442695, %v2701_v54  ;;  %v2764_v12 = vmul.f32 1.442695, %v2707_v45 }
 0x697   : > { %6831 = vpow2.f32 %v2750_v38 }
 0x698   : > { %6833 = vpow2.f32 %v2752_v3 }
 0x699   : > { %6835 = vpow2.f32 %v2758_v50 }
 0x69a   : > { %6837 = vpow2.f32 %v2760_v39 }
 0x69b   : > { %6839 = vpow2.f32 %v2754_v21 }
 0x69c   : > { %6841 = vpow2.f32 %v2756_v23 }
 0x69d   : > { %v8498_v18 = vpop.eup %6823  ;;  %6843 = vpow2.f32 %v2762_v29 }
 0x69e   : > { %v8500_v27 = vpop.eup %6825  ;;  %6845 = vpow2.f32 %v2764_v12 }
 0x69f   : > { %v8502_v11 = vpop.eup %6827  ;;  %v2799_v63 = vadd.f32 %v8500_v27, %v8498_v18 }
 0x6a0   : > { %v8506_v25 = vpop.eup %6829 }
 0x6a1   : > { %v2802_v13 = vadd.f32 %v8506_v25, %v8502_v11 }
 0x6a4   : > { %v8508_v14 = vpop.eup %6831 }
 0x6a5   : > { %v8510_v58 = vpop.eup %6833 }
 0x6a6   : > { %v8512_v52 = vpop.eup %6835  ;;  %v2805_v42 = vadd.f32 %v8510_v58, %v8508_v14 }
 0x6a7   : > { %v8518_v43 = vpop.eup %6837 }
 0x6a8   : > { %v8520_v20 = vpop.eup %6839  ;;  %v2811_v54 = vadd.f32 %v8518_v43, %v8512_v52 }
 0x6a9   : > { %v8526_v31 = vpop.eup %6841 }
 0x6aa   : > { %v8530_v3 = vpop.eup %6843  ;;  %v2808_v16 = vadd.f32 %v8526_v31, %v8520_v20 }
 0x6ab   : > { %v8534_v39 = vpop.eup %6845 }
 0x6b3   : > { %2797 = vadd.xlane.f32.xlu0 %v2796_v35  ;;  %v2814_v35 = vadd.f32 %v8534_v39, %v8530_v3 }
 0x6b7   : > { %2803 = vadd.xlane.f32.xlu0 %v2802_v13  ;;  %2800 = vadd.xlane.f32.xlu1 %v2799_v63 }
 0x6b9   : > { %v2675_v36 = vpop.xlane.xlu1 %2674 }
 0x6ba   : > { %v2708_v26 = vsub.f32 %v8412_v8, %v2675_v36  ;;  %v2709_v6 = vsub.f32 %v8414_v60, %v2675_v36 }
 0x6bb   : > { %2806 = vadd.xlane.f32.xlu0 %v2805_v42  ;;  %2812 = vadd.xlane.f32.xlu1 %v2811_v54 }
 0x6bc   : > { %v2766_v9 = vmul.f32 1.442695, %v2708_v26  ;;  %v2768_v38 = vmul.f32 1.442695, %v2709_v6  ;;  %v8560_v26 = vld [vmem:[#allocation2 + $0x78] sm:$0xff]  }
 0x6bd   : > { %v2678_v44 = vpop.xlane.xlu0 %2677  ;;  %v2681_v50 = vpop.xlane.xlu1 %2680  ;;  %v8564_v6 = vld [vmem:[#allocation2 + $0x38] sm:$0xff]  }
 0x6be   : > { %6847 = vpow2.f32 %v2766_v9  ;;  %v2710_v21 = vsub.f32 %v8416_v34, %v2678_v44  ;;  %v2711_v8 = vsub.f32 %v8418_v41, %v2678_v44  ;;  %v2712_v60 = vsub.f32 %v8420_v2, %v2681_v50  ;;  %v8568_v9 = vld [vmem:[#allocation2 + $0x30] sm:$0xff]  }
 0x6bf   : > { %6849 = vpow2.f32 %v2768_v38  ;;  %v2713_v47 = vsub.f32 %v8424_v5, %v2681_v50  ;;  %2809 = vadd.xlane.f32.xlu0 %v2808_v16  ;;  %v8572_v38 = vld [vmem:[#allocation2 + $0x28] sm:$0xff]   ;;  %v8576_v44 = vld [vmem:[#allocation2 + $0x70] sm:$0xff]   ;;  %v8580_v50 = vld [vmem:[#allocation2 + $0x20] sm:$0xff]  }
 0x6c0   : > { %v2770_v23 = vmul.f32 1.442695, %v2710_v21  ;;  %v2772_v45 = vmul.f32 1.442695, %v2711_v8  ;;  %v2774_v29 = vmul.f32 1.442695, %v2712_v60 }
 0x6c1   : > { %v2776_v12 = vmul.f32 1.442695, %v2713_v47  ;;  %v8584_v16 = vld [vmem:[#allocation2 + $0x68] sm:$0xff]   ;;  %v8588_v21 = vld [vmem:[#allocation2 + $0x18] sm:$0xff]   ;;  %v8592_v8 = vld [vmem:[#allocation2 + $0x60] sm:$0xff]  }
 0x6c2   : > { %6851 = vpow2.f32 %v2770_v23  ;;  %v8596_v47 = vld [vmem:[#allocation2 + $0x10] sm:$0xff]   ;;  %v8600_v23 = vld [vmem:[#allocation2 + $0x58] sm:$0xff]  }
 0x6c3   : > { %6853 = vpow2.f32 %v2772_v45  ;;  %2815 = vadd.xlane.f32.xlu0 %v2814_v35 }
 0x6c4   : > { %6855 = vpow2.f32 %v2774_v29  ;;  %v8604_v29 = vld [vmem:[#allocation2 + $0x8] sm:$0xff]  }
 0x6c5   : > { %6857 = vpow2.f32 %v2776_v12  ;;  %v8608_v12 = vld [vmem:[#allocation2 + $0x50] sm:$0xff]  }
 0x6cb   : > { %v8542_v34 = vpop.eup %6847 }
 0x6cc   : > { %v8544_v41 = vpop.eup %6849 }
 0x6cd   : > { %v2817_v2 = vadd.f32 %v8544_v41, %v8542_v34 }
 0x6cf   : > { %v8548_v5 = vpop.eup %6851  ;;  %2818 = vadd.xlane.f32.xlu1 %v2817_v2  ;;  %v8612_v2 = vld [vmem:[#allocation2] sm:$0xff]  }
 0x6d0   : > { %9807 = vst [vmem:[#allocation40_spill] sm:$0xff] %v8548_v5  ;;  %v8550_v13 = vpop.eup %6853 }
 0x6d1   : > { %v8552_v63 = vpop.eup %6855  ;;  %v2820_v36 = vadd.f32 %v8550_v13, %v8548_v5  ;;  %v6691_v5 = vld [vmem:[#allocation12 + $0x8] sm:$0xff]  }
 0x6d2   : > { %9808 = vst [vmem:[#allocation41_spill] sm:$0xff] %v8552_v63  ;;  %v8556_v42 = vpop.eup %6857 }
 0x6d3   : > { %9809 = vst [vmem:[#allocation42_spill] sm:$0xff] %v8556_v42  ;;  %2821 = vadd.xlane.f32.xlu0 %v2820_v36  ;;  %v2823_v54 = vadd.f32 %v8556_v42, %v8552_v63  ;;  %v8616_v36 = vld [vmem:[#allocation2 + $0x48] sm:$0xff]  }
 0x6d5   : > { %2824 = vadd.xlane.f32.xlu1 %v2823_v54 }
 0x6e6   : > { %3359 = vrot.lane.b32.xlu1 %v8560_v26, %s7400_s24 }
 0x6e9   : > { %3343 = vrot.lane.b32.xlu0 %v8564_v6, %s7400_s24 }
 0x6ea   : > { %3341 = vrot.lane.b32.xlu1 %v8568_v9, %s7400_s24 }
 0x6ed   : > { %3339 = vrot.lane.b32.xlu0 %v8572_v38, %s7400_s24 }
 0x6ee   : > { %3357 = vrot.lane.b32.xlu1 %v8576_v44, %s7400_s24 }
 0x6f1   : > { %3337 = vrot.lane.b32.xlu0 %v8580_v50, %s7400_s24 }
 0x6f2   : > { %3355 = vrot.lane.b32.xlu1 %v8584_v16, %s7400_s24 }
 0x6f5   : > { %3335 = vrot.lane.b32.xlu0 %v8588_v21, %s7400_s24 }
 0x6f6   : > { %3353 = vrot.lane.b32.xlu1 %v8592_v8, %s7400_s24 }
 0x6f7   : > { %v2780_v60 = vpop.xlane.xlu1 %2779 }
 0x6f8   : > { %6859 = vrcp.f32 %v2780_v60  ;;  %v8622_v60 = vld [vmem:[#allocation2 + $0x40] sm:$0xff]  }
 0x6f9   : > { %3333 = vrot.lane.b32.xlu0 %v8596_v47, %s7400_s24 }
 0x6fa   : > { %3351 = vrot.lane.b32.xlu1 %v8600_v23, %s7400_s24 }
 0x6fb   : > { %v2783_v45 = vpop.xlane.xlu1 %2782 }
 0x6fc   : > { %6861 = vrcp.f32 %v2783_v45 }
 0x6fd   : > { %3331 = vrot.lane.b32.xlu0 %v8604_v29, %s7400_s24 }
 0x6fe   : > { %3349 = vrot.lane.b32.xlu1 %v8608_v12, %s7400_s24 }
 0x6ff   : > { %v2786_v35 = vpop.xlane.xlu1 %2785 }
 0x700   : > { %6863 = vrcp.f32 %v2786_v35 }
 0x701   : > { %3329 = vrot.lane.b32.xlu0 %v8612_v2, %s7400_s24 }
 0x702   : > { %3347 = vrot.lane.b32.xlu1 %v8616_v36, %s7400_s24 }
 0x703   : > { %v2789_v54 = vpop.xlane.xlu0 %2788 }
 0x704   : > { %6865 = vrcp.f32 %v2789_v54 }
 0x705   : > { %3313 = vrot.lane.b32.xlu0 %v7823_v61, %s7400_s24  ;;  %v6860_v45 = vpop.eup %6859 }
 0x706   : > { %3345 = vrot.lane.b32.xlu1 %v8622_v60, %s7400_s24  ;;  %v2843_v35 = vmul.f32 %v6860_v45, %v8442_v55  ;;  %v2842_v55 = vmul.f32 %v6860_v45, %v8440_v40 }
 0x707   : > { %v2792_v4 = vpop.xlane.xlu0 %2791 }
 0x708   : > { %6867 = vrcp.f32 %v2792_v4 }
 0x709   : > { %v6862_v59 = vpop.eup %6861  ;;  %3317 = vrot.lane.b32.xlu0 %v7833_v7, %s7400_s24 }
 0x70a   : > { %3315 = vrot.lane.b32.xlu1 %v7825_v0, %s7400_s24  ;;  %v2845_v54 = vmul.f32 %v6862_v59, %v8450_v49  ;;  %v2844_v63 = vmul.f32 %v6862_v59, %v8448_v57 }
 0x70b   : > { %v2907_v32 = vpop.permute.xlu0 %2906  ;;  %v2795_v48 = vpop.xlane.xlu1 %2794 }
 0x70c   : > { %6869 = vrcp.f32 %v2795_v48  ;;  %5936 = vmatprep.subr.bf16.mxu1 %v2907_v32  ;;  %v2875_v51 = vpack.c.bf16 %v2845_v54, %v2843_v35  ;;  %v2874_v48 = vpack.c.bf16 %v2844_v63, %v2842_v55  ;;  %v6692_v32 = vld [vmem:[#allocation12] sm:$0xff]  }
 0x70d   : > { %3321 = vrot.lane.b32.xlu0 %v7845_v19, %s7400_s24  ;;  %v6864_v4 = vpop.eup %6863 }
 0x70e   : > { %3319 = vrot.lane.b32.xlu1 %v7839_v15, %s7400_s24  ;;  %2970 = vmatprep.mubr.bf16.mxu1 %v2875_v51  ;;  %v2847_v59 = vmul.f32 %v6864_v4, %v8456_v56 }
 0x70f   : > { %v2891_v42 = vpop.permute.xlu1 %2890 }
 0x710   : > { %5937 = vmatpush3.bf16.msra.mxu1 %v2891_v42  ;;  %v2846_v42 = vmul.f32 %v6864_v4, %v8454_v62 }
 0x711   : > { %v6866_v49 = vpop.eup %6865  ;;  %3325 = vrot.lane.b32.xlu0 %v7857_v33, %s7400_s24  ;;  %6366 = vmatprep.subr.bf16.mxu1 %v6691_v5 }
 0x712   : > { %3323 = vrot.lane.b32.xlu1 %v7851_v28, %s7400_s24  ;;  %v2849_v57 = vmul.f32 %v6866_v49, %v8462_v1  ;;  %v2848_v40 = vmul.f32 %v6866_v49, %v8460_v24 }
 0x713   : > { %2971 = vmatmul.mubr.bf16.vlgmr.msra.gmra.mxu1 %v2874_v48 }
 0x714   : > { %v2877_v51 = vpack.c.bf16 %v2849_v57, %v2847_v59  ;;  %6367 = vmatpush3.bf16.msra.mxu1 %v6691_v5  ;;  %v2876_v1 = vpack.c.bf16 %v2848_v40, %v2846_v42  ;;  %v7112_v57 = vld [vmem:[#allocation3 + $0x58] sm:$0xff]   ;;  %v6694_v40 = vld [vmem:[#allocation12 + $0x10] sm:$0xff]  }
 0x715   : > { %4138 = vrot.lane.b32.xlu0 %v8564_v6, %s7401_s20  ;;  %6368 = vmatprep.subr.bf16.mxu1 %v6692_v32  ;;  %v6868_v63 = vpop.eup %6867 }
 0x716   : > { %3327 = vrot.lane.b32.xlu1 %v7863_v46, %s7400_s24  ;;  %2978 = vmatprep.mubr.bf16.mxu1 %v2877_v51  ;;  %v2851_v5 = vmul.f32 %v6868_v63, %v8468_v53  ;;  %v6693_v53 = vld [vmem:[#allocation12 + $0x18] sm:$0xff]  }
 0x717   : > { %6346 = vmatprep.subr.bf16.mxu0 %v6693_v53  ;;  %v7113_v51 = vld [vmem:[#allocation3 + $0x18] sm:$0xff]  }
 0x718   : > { %6369 = vmatpush3.bf16.msra.mxu1 %v6692_v32  ;;  %6347 = vmatpush3.bf16.msra.mxu0 %v6693_v53 }
 0x719   : > { %v6870_v56 = vpop.eup %6869  ;;  %4136 = vrot.lane.b32.xlu0 %v8568_v9, %s7401_s20  ;;  %v2850_v9 = vmul.f32 %v6868_v63, %v8466_v22  ;;  %6348 = vmatprep.subr.bf16.mxu0 %v6694_v40 }
 0x71a   : > { %4154 = vrot.lane.b32.xlu1 %v8560_v26, %s7401_s20  ;;  %v2853_v24 = vmul.f32 %v6870_v56, %v8474_v17  ;;  %v2852_v62 = vmul.f32 %v6870_v56, %v8472_v37  ;;  %v7104_v17 = vld [vmem:[#allocation3 + $0x38] sm:$0xff]  }
 0x71b   : > { %2979 = vmatmul.mubr.bf16.gmra.mxu1 %v2876_v1 }
 0x71c   : > { %v2879_v6 = vpack.c.bf16 %v2853_v24, %v2851_v5  ;;  %v2878_v26 = vpack.c.bf16 %v2852_v62, %v2850_v9  ;;  %6349 = vmatpush3.bf16.msra.mxu0 %v6694_v40 }
 0x71d   : > { %4134 = vrot.lane.b32.xlu0 %v8572_v38, %s7401_s20  ;;  %v7106_v38 = vld [vmem:[#allocation3 + $0x30] sm:$0xff]  }
 0x71e   : > { %4152 = vrot.lane.b32.xlu1 %v8576_v44, %s7401_s20  ;;  %2986 = vmatprep.mubr.bf16.mxu1 %v2879_v6  ;;  %v7107_v44 = vld [vmem:[#allocation3 + $0x60] sm:$0xff]  }
 0x721   : > { %4132 = vrot.lane.b32.xlu0 %v8580_v50, %s7401_s20 }
 0x722   : > { %4150 = vrot.lane.b32.xlu1 %v8584_v16, %s7401_s20 }
 0x723   : > { %2987 = vmatmul.mubr.bf16.gmra.mxu1 %v2878_v26 }
 0x725   : > { %4130 = vrot.lane.b32.xlu0 %v8588_v21, %s7401_s20 }
 0x726   : > { %4148 = vrot.lane.b32.xlu1 %v8592_v8, %s7401_s20 }
 0x729   : > { %4128 = vrot.lane.b32.xlu0 %v8596_v47, %s7401_s20 }
 0x72a   : > { %4146 = vrot.lane.b32.xlu1 %v8600_v23, %s7401_s20  ;;  %v7108_v23 = vld [vmem:[#allocation3 + $0x68] sm:$0xff]  }
 0x72d   : > { %4126 = vrot.lane.b32.xlu0 %v8604_v29, %s7401_s20 }
 0x72e   : > { %4144 = vrot.lane.b32.xlu1 %v8608_v12, %s7401_s20 }
 0x731   : > { %4124 = vrot.lane.b32.xlu0 %v8612_v2, %s7401_s20 }
 0x732   : > { %4142 = vrot.lane.b32.xlu1 %v8616_v36, %s7401_s20  ;;  %v7109_v36 = vld [vmem:[#allocation3 + $0x50] sm:$0xff]  }
 0x735   : > { %4108 = vrot.lane.b32.xlu0 %v7823_v61, %s7401_s20 }
 0x736   : > { %4140 = vrot.lane.b32.xlu1 %v8622_v60, %s7401_s20 }
 0x739   : > { %4110 = vrot.lane.b32.xlu0 %v7825_v0, %s7401_s20 }
 0x73a   : > { %4112 = vrot.lane.b32.xlu1 %v7833_v7, %s7401_s20  ;;  %v7103_v7 = vld [vmem:[#allocation3 + $0x78] sm:$0xff]  }
 0x73c   : > { %v2798_v22 = vpop.xlane.xlu0 %2797 }
 0x73d   : > { %4114 = vrot.lane.b32.xlu0 %v7839_v15, %s7401_s20  ;;  %6871 = vrcp.f32 %v2798_v22  ;;  %v9810_v22 = vld [vmem:[#allocation42_spill] sm:$0xff] }
 0x73e   : > { %4116 = vrot.lane.b32.xlu1 %v7845_v19, %s7401_s20 }
 0x740   : > { %v2804_v37 = vpop.xlane.xlu0 %2803  ;;  %v2801_v61 = vpop.xlane.xlu1 %2800 }
 0x741   : > { %4118 = vrot.lane.b32.xlu0 %v7851_v28, %s7401_s20  ;;  %6873 = vrcp.f32 %v2801_v61  ;;  %v7105_v28 = vld [vmem:[#allocation3 + $0x70] sm:$0xff]   ;;  %v9811_v61 = vld [vmem:[#allocation40_spill] sm:$0xff] }
 0x742   : > { %4120 = vrot.lane.b32.xlu1 %v7857_v33, %s7401_s20  ;;  %6875 = vrcp.f32 %v2804_v37 }
 0x744   : > { %v2807_v0 = vpop.xlane.xlu0 %2806  ;;  %v2813_v15 = vpop.xlane.xlu1 %2812 }
 0x745   : > { %6877 = vrcp.f32 %v2807_v0  ;;  %4122 = vrot.lane.b32.xlu0 %v7863_v46, %s7401_s20 }
 0x746   : > { %3832 = vrot.lane.b32.xlu1 %v7103_v7, %s7400_s24 }
 0x748   : > { %v2810_v19 = vpop.xlane.xlu0 %2809 }
 0x749   : > { %6879 = vrcp.f32 %v2810_v19  ;;  %3816 = vrot.lane.b32.xlu0 %v7104_v17, %s7400_s24  ;;  %v9816_v19 = vld [vmem:[#allocation32_spill] sm:$0xff]  ;;  %v9817_v17 = vld [vmem:[#allocation29_spill] sm:$0xff] }
 0x74a   : > { %6881 = vrcp.f32 %v2813_v15  ;;  %3830 = vrot.lane.b32.xlu1 %v7105_v28, %s7400_s24  ;;  %v6872_v33 = vpop.eup %6871  ;;  %v9819_v28 = vld [vmem:[#allocation26_spill] sm:$0xff] }
 0x74b   : > { %v2855_v16 = vmul.f32 %v6872_v33, %v8496_v30  ;;  %v2854_v8 = vmul.f32 %v6872_v33, %v8494_v10  ;;  %v7110_v10 = vld [vmem:[#allocation3 + $0x28] sm:$0xff]  }
 0x74c   : > { %v2816_v30 = vpop.xlane.xlu0 %2815  ;;  %v9820_v33 = vld [vmem:[#allocation25_spill] sm:$0xff] }
 0x74d   : > { %3814 = vrot.lane.b32.xlu0 %v7106_v38, %s7400_s24  ;;  %6883 = vrcp.f32 %v2816_v30  ;;  %v9821_v38 = vpack.c.bf16 %v9819_v28, %v9820_v33 }
 0x74e   : > { %3826 = vrot.lane.b32.xlu1 %v7107_v44, %s7400_s24  ;;  %v6874_v46 = vpop.eup %6873  ;;  %v9822_v44 = vld [vmem:[#allocation34_spill] sm:$0xff] }
 0x74f   : > { %v6876_v50 = vpop.eup %6875  ;;  %v2857_v21 = vmul.f32 %v6874_v46, %v8500_v27  ;;  %v2856_v47 = vmul.f32 %v6874_v46, %v8498_v18  ;;  %v9823_v46 = vld [vmem:[#allocation30_spill] sm:$0xff] }
 0x750   : > { %v2859_v60 = vmul.f32 %v6876_v50, %v8506_v25  ;;  %v2858_v25 = vmul.f32 %v6876_v50, %v8502_v11  ;;  %v9824_v50 = vpack.c.bf16 %v9822_v44, %v9823_v46 }
 0x751   : > { %3828 = vrot.lane.b32.xlu0 %v7108_v23, %s7400_s24  ;;  %v2881_v12 = vpack.c.bf16 %v2857_v21, %v2855_v16  ;;  %v2880_v2 = vpack.c.bf16 %v2856_v47, %v2854_v8  ;;  %v9825_v16 = vld [vmem:[#allocation31_spill] sm:$0xff]  ;;  %v9829_v23 = vld [vmem:[#allocation33_spill] sm:$0xff] }
 0x752   : > { %v6878_v29 = vpop.eup %6877  ;;  %3822 = vrot.lane.b32.xlu1 %v7109_v36, %s7400_s24  ;;  %v9826_v21 = vld [vmem:[#allocation27_spill] sm:$0xff] }
 0x753   : > { %v2861_v45 = vmul.f32 %v6878_v29, %v8510_v58  ;;  %2994 = vmatprep.mubr.bf16.mxu1 %v2881_v12  ;;  %v2860_v54 = vmul.f32 %v6878_v29, %v8508_v14  ;;  %v7111_v58 = vld [vmem:[#allocation3 + $0x20] sm:$0xff]   ;;  %v9827_v8 = vpack.c.bf16 %v9825_v16, %v9826_v21  ;;  %v9828_v47 = vld [vmem:[#allocation35_spill] sm:$0xff]  ;;  %v9831_v12 = vld [vmem:[#allocation37_spill] sm:$0xff] }
 0x754   : > { %2995 = vmatmul.mubr.bf16.gmra.mxu1 %v2880_v2  ;;  %v9830_v29 = vpack.c.bf16 %v9828_v47, %v9829_v23  ;;  %v9832_v2 = vld [vmem:[#allocation36_spill] sm:$0xff] }
 0x755   : > { %v2883_v27 = vpack.c.bf16 %v2861_v45, %v2859_v60  ;;  %3812 = vrot.lane.b32.xlu0 %v7110_v10, %s7400_s24  ;;  %v2882_v48 = vpack.c.bf16 %v2860_v54, %v2858_v25  ;;  %v9833_v36 = vpack.c.bf16 %v9831_v12, %v9832_v2  ;;  %v9834_v60 = vld [vmem:[#allocation39_spill] sm:$0xff]  ;;  %v9835_v45 = vld [vmem:[#allocation38_spill] sm:$0xff] }
 0x756   : > { %v6880_v18 = vpop.eup %6879  ;;  %v9836_v30 = vpack.c.bf16 %v9834_v60, %v9835_v45 }
 0x757   : > { %v6882_v35 = vpop.eup %6881  ;;  %3002 = vmatprep.mubr.bf16.mxu1 %v2883_v27  ;;  %v2863_v55 = vmul.f32 %v6880_v18, %v8526_v31  ;;  %v2862_v31 = vmul.f32 %v6880_v18, %v8520_v20 }
 0x758   : > { %v2819_v4 = vpop.xlane.xlu1 %2818  ;;  %v2865_v49 = vmul.f32 %v6882_v35, %v8518_v43  ;;  %v2864_v11 = vmul.f32 %v6882_v35, %v8512_v52 }
 0x759   : > { %6885 = vrcp.f32 %v2819_v4  ;;  %3810 = vrot.lane.b32.xlu0 %v7111_v58, %s7400_s24 }
 0x75a   : > { %v2885_v59 = vpack.c.bf16 %v2865_v49, %v2863_v55  ;;  %v2884_v43 = vpack.c.bf16 %v2864_v11, %v2862_v31  ;;  %v6884_v63 = vpop.eup %6883 }
 0x75b   : > { %v2867_v1 = vmul.f32 %v6884_v63, %v8534_v39  ;;  %v2866_v20 = vmul.f32 %v6884_v63, %v8530_v3  ;;  %v9812_v39 = vld [vmem:[#allocation41_spill] sm:$0xff]  ;;  %v9813_v3 = vld [vmem:[#allocation24_spill] sm:$0xff] }
 0x75c   : > { %v2822_v32 = vpop.xlane.xlu0 %2821  ;;  %3003 = vmatmul.mubr.bf16.gmra.mxu1 %v2882_v48 }
 0x75d   : > { %6887 = vrcp.f32 %v2822_v32  ;;  %3824 = vrot.lane.b32.xlu0 %v7112_v57, %s7400_s24  ;;  %3010 = vmatprep.mubr.bf16.mxu1 %v2885_v59 }
 0x75e   : > { %v2825_v14 = vpop.xlane.xlu1 %2824 }
 0x75f   : > { %6889 = vrcp.f32 %v2825_v14 }
 0x760   : > { %v3344_v57 = vpop.permute.xlu0 %3343 }
 0x761   : > { %3808 = vrot.lane.b32.xlu0 %v7113_v51, %s7400_s24  ;;  %v3407_v40 = vsel %vm1746_vm0, %v3344_v57, 0 }
 0x762   : > { %v3360_v42 = vpop.permute.xlu1 %3359 }
 0x763   : > { %6446 = vmatprep.subr.msk.bf16.mxu0 %vm1746_vm0, %v3360_v42 }
 0x764   : > { %3011 = vmatmul.mubr.bf16.gmra.mxu1 %v2884_v43 }
 0x766   : > { %v6886_v56 = vpop.eup %6885  ;;  %v3342_v18 = vpop.permute.xlu1 %3341 }
 0x767   : > { %v2869_v5 = vmul.f32 %v6886_v56, %v8544_v41  ;;  %v2868_v52 = vmul.f32 %v6886_v56, %v8542_v34  ;;  %v9814_v34 = vld [vmem:[#allocation28_spill] sm:$0xff] }
 0x768   : > { %v9815_v15 = vpack.c.bf16 %v9813_v3, %v9814_v34 }
 0x769   : > { %v2887_v24 = vpack.c.bf16 %v2869_v5, %v2867_v1  ;;  %v2886_v6 = vpack.c.bf16 %v2868_v52, %v2866_v20  ;;  %v3404_v52 = vsel %vm1746_vm0, %v3342_v18, 0 }
 0x76a   : > { %v6888_v62 = vpop.eup %6887  ;;  %v3358_v49 = vpop.permute.xlu1 %3357 }
 0x76b   : > { %3018 = vmatprep.mubr.bf16.mxu1 %v2887_v24  ;;  %v2871_v9 = vmul.f32 %v6888_v62, %v8550_v13  ;;  %v2870_v0 = vmul.f32 %v6888_v62, %v9811_v61  ;;  %v9818_v13 = vpack.c.bf16 %v9816_v19, %v9817_v17  ;;  %v3340_v62 = vpop.permute.xlu0 %3339 }
 0x76c   : > { %v6890_v26 = vpop.eup %6889  ;;  %3019 = vmatmul.mubr.bf16.gmra.mxu1 %v2886_v6 }
 0x76d   : > { %v2873_v53 = vmul.f32 %v6890_v26, %v9810_v22  ;;  %v2872_v7 = vmul.f32 %v6890_v26, %v9812_v39 }
 0x76e   : > { %v3356_v11 = vpop.permute.xlu1 %3355 }
 0x76f   : > { %v2889_v37 = vpack.c.bf16 %v2873_v53, %v2871_v9  ;;  %v2888_v41 = vpack.c.bf16 %v2872_v7, %v2870_v0  ;;  %v3401_v9 = vsel %vm1746_vm0, %v3340_v62, 0  ;;  %v3338_v22 = vpop.permute.xlu0 %3337 }
 0x771   : > { %3026 = vmatprep.mubr.bf16.mxu1 %v2889_v37  ;;  %v3398_v37 = vsel %vm1746_vm0, %v3338_v22, 0 }
 0x772   : > { %v3354_v56 = vpop.permute.xlu1 %3353 }
 0x773   : > { %v3336_v0 = vpop.permute.xlu0 %3335 }
 0x774   : > { %3027 = vmatmul.mubr.bf16.gmra.mxu1 %v2888_v41  ;;  %v3395_v39 = vsel %vm1746_vm0, %v3336_v0, 0 }
 0x775   : > { %6370 = vmatprep.mubr.msk.bf16.mxu1 %vm1746_vm0, %v9815_v15 }
 0x776   : > { %v3352_v6 = vpop.permute.xlu1 %3351 }
 0x777   : > { %v3334_v41 = vpop.permute.xlu0 %3333 }
 0x778   : > { %v3392_v3 = vsel %vm1746_vm0, %v3334_v41, 0 }
 0x77a   : > { %v3350_v26 = vpop.permute.xlu1 %3349 }
 0x77b   : > { %v3332_v15 = vpop.permute.xlu0 %3331 }
 0x77c   : > { %6371 = vmatmul.mubr.msk.bf16.vlgmr.msra.gmra.mxu1 %vm1746_vm0, %v9818_v13  ;;  %v3389_v17 = vsel %vm1746_vm0, %v3332_v15, 0 }
 0x77d   : > { %6374 = vmatprep.mubr.msk.bf16.mxu1 %vm1746_vm0, %v9821_v38 }
 0x77e   : > { %v3348_v53 = vpop.permute.xlu1 %3347 }
 0x77f   : > { %v3330_v44 = vpop.permute.xlu0 %3329 }
 0x782   : > { %v3346_v61 = vpop.permute.xlu1 %3345 }
 0x784   : > { %6375 = vmatmul.mubr.msk.bf16.gmra.mxu1 %vm1746_vm0, %v9824_v50  ;;  %v3386_v50 = vsel %vm1746_vm0, %v3330_v44, 0 }
 0x785   : > { %6378 = vmatprep.mubr.msk.bf16.mxu1 %vm1746_vm0, %v9827_v8 }
 0x786   : > { %v8776_v7 = vpop.permute.xlu1 %3315 }
 0x78a   : > { %v8780_v34 = vpop.permute.xlu1 %3319 }
 0x78c   : > { %6379 = vmatmul.mubr.msk.bf16.gmra.mxu1 %vm1746_vm0, %v9830_v29 }
 0x78d   : > { %6382 = vmatprep.mubr.msk.bf16.mxu1 %vm1746_vm0, %v9833_v36 }
 0x78e   : > { %v8783_v19 = vpop.permute.xlu1 %3323 }
 0x792   : > { %v8787_v33 = vpop.permute.xlu1 %3327 }
 0x794   : > { %6383 = vmatmul.mubr.msk.bf16.gmra.mxu1 %vm1746_vm0, %v9836_v30 }
 0x796   : > { %v4155_v23 = vpop.permute.xlu1 %4154 }
 0x7d3   : > { %v5938_v27 = vpop.f32.mrf.mxu1 }
 0x7d5   : > { %v5939_v10 = vpop.f32.mrf.mxu1 }
 0x7d6   : > { %v5940_v4 = vadd.f32 %v5939_v10, %v5938_v27 }
 0x7d7   : > { %v5941_v35 = vpop.f32.mrf.mxu1 }
 0x7d9   : > { %v5942_v54 = vpop.f32.mrf.mxu1 }
 0x7da   : > { %v5943_v55 = vadd.f32 %v5942_v54, %v5941_v35 }
 0x7db   : > { %v5944_v25 = vpop.f32.mrf.mxu1 }
 0x7dc   : > { %v3035_v58 = vpack.c.bf16 %v5943_v55, %v5940_v4  ;;  %v3314_v4 = vpop.permute.xlu0 %3313 }
 0x7dd   : > { %v5945_v48 = vpop.f32.mrf.mxu1 }
 0x7de   : > { %6350 = vmatprep.mubr.msk.bf16.mxu0 %vm1746_vm0, %v3035_v58  ;;  %v5946_v14 = vadd.f32 %v5945_v48, %v5944_v25 }
 0x7df   : > { %v5947_v32 = vpop.f32.mrf.mxu1 }
 0x7e0   : > { %v3318_v48 = vpop.permute.xlu0 %3317 }
 0x7e1   : > { %v5948_v59 = vpop.f32.mrf.mxu1 }
 0x7e2   : > { %v5949_v31 = vadd.f32 %v5948_v59, %v5947_v32 }
 0x7e3   : > { %v5950_v51 = vpop.f32.mrf.mxu1 }
 0x7e4   : > { %v3036_v43 = vpack.c.bf16 %v5949_v31, %v5946_v14 }
 0x7e5   : > { %v5951_v63 = vpop.f32.mrf.mxu1 }
 0x7e6   : > { %6351 = vmatmul.mubr.msk.bf16.vlgmr.msra.gmra.mxu0 %vm1746_vm0, %v3036_v43  ;;  %v5952_v5 = vadd.f32 %v5951_v63, %v5950_v51  ;;  %v3322_v51 = vpop.permute.xlu0 %3321 }
 0x7e7   : > { %v5953_v42 = vpop.f32.mrf.mxu1  ;;  %6007 = vmatpush3.bf16.xpose.msra.mxu0 %v3407_v40 }
 0x7e8   : > { %6447 = vmatprep.subr.msk.bf16.mxu0 %vm1746_vm0, %v3358_v49 }
 0x7e9   : > { %v5954_v1 = vpop.f32.mrf.mxu1 }
 0x7ea   : > { %v5955_v20 = vadd.f32 %v5954_v1, %v5953_v42  ;;  %v3326_v1 = vpop.permute.xlu0 %3325 }
 0x7ec   : > { %v3037_v24 = vpack.c.bf16 %v5955_v20, %v5952_v5 }
 0x7ee   : > { %6354 = vmatprep.mubr.msk.bf16.mxu0 %vm1746_vm0, %v3037_v24  ;;  %v4139_v5 = vpop.permute.xlu0 %4138 }
 0x7ef   : > { %6009 = vmatpush3.bf16.xpose.msra.mxu0 %v3404_v52  ;;  %v4202_v20 = vsel %vm1746_vm0, %v4139_v5, 0  ;;  %v4153_v52 = vpop.permute.xlu1 %4152 }
 0x7f0   : > { %6448 = vmatprep.subr.msk.bf16.mxu0 %vm1746_vm0, %v3356_v11 }
 0x7f2   : > { %v4137_v24 = vpop.permute.xlu0 %4136 }
 0x7f3   : > { %v4151_v62 = vpop.permute.xlu1 %4150 }
 0x7f7   : > { %6011 = vmatpush3.bf16.xpose.msra.mxu0 %v3401_v9  ;;  %v4135_v9 = vpop.permute.xlu0 %4134  ;;  %v4149_v22 = vpop.permute.xlu1 %4148 }
 0x7f8   : > { %6449 = vmatprep.subr.msk.bf16.mxu0 %vm1746_vm0, %v3354_v56 }
 0x7ff   : > { %6013 = vmatpush3.bf16.xpose.msra.mxu0 %v3398_v37 }
 0x800   : > { %6450 = vmatprep.subr.msk.bf16.mxu0 %vm1746_vm0, %v3352_v6  ;;  %v4199_v6 = vsel %vm1746_vm0, %v4137_v24, 0 }
 0x807   : > { %6015 = vmatpush3.bf16.xpose.msra.mxu0 %v3395_v39 }
 0x808   : > { %6451 = vmatprep.subr.msk.bf16.mxu0 %vm1746_vm0, %v3350_v26  ;;  %v4196_v26 = vsel %vm1746_vm0, %v4135_v9, 0 }
 0x80f   : > { %6017 = vmatpush3.bf16.xpose.msra.mxu0 %v3392_v3 }
 0x810   : > { %6452 = vmatprep.subr.msk.bf16.mxu0 %vm1746_vm0, %v3348_v53  ;;  %v4133_v53 = vpop.permute.xlu0 %4132 }
 0x811   : > { %v4193_v37 = vsel %vm1746_vm0, %v4133_v53, 0 }
 0x814   : > { %v5956_v13 = vpop.f32.mrf.mxu1  ;;  %v4131_v0 = vpop.permute.xlu0 %4130 }
 0x815   : > { %v4190_v39 = vsel %vm1746_vm0, %v4131_v0, 0 }
 0x816   : > { %v5957_v28 = vpop.f32.mrf.mxu1 }
 0x817   : > { %6019 = vmatpush3.bf16.xpose.msra.mxu0 %v3389_v17  ;;  %v5958_v16 = vadd.f32 %v5957_v28, %v5956_v13 }
 0x818   : > { %6453 = vmatprep.subr.msk.bf16.mxu0 %vm1746_vm0, %v3346_v61  ;;  %v5959_v38 = vpop.f32.mrf.mxu1  ;;  %v4147_v61 = vpop.permute.xlu1 %4146 }
 0x819   : > { %v4129_v41 = vpop.permute.xlu0 %4128 }
 0x81a   : > { %v5960_v46 = vpop.f32.mrf.mxu1  ;;  %v4187_v3 = vsel %vm1746_vm0, %v4129_v41, 0 }
 0x81b   : > { %v5961_v21 = vadd.f32 %v5960_v46, %v5959_v38 }
 0x81c   : > { %v5962_v8 = vpop.f32.mrf.mxu1 }
 0x81d   : > { %v3038_v47 = vpack.c.bf16 %v5961_v21, %v5958_v16  ;;  %v4127_v15 = vpop.permute.xlu0 %4126 }
 0x81e   : > { %v5963_v29 = vpop.f32.mrf.mxu1  ;;  %v4184_v17 = vsel %vm1746_vm0, %v4127_v15, 0 }
 0x81f   : > { %6021 = vmatpush3.bf16.xpose.msra.mxu0 %v3386_v50  ;;  %v5964_v36 = vadd.f32 %v5963_v29, %v5962_v8 }
 0x820   : > { %6355 = vmatmul.mubr.msk.bf16.gmra.mxu0 %vm1746_vm0, %v3038_v47  ;;  %6454 = vmatprep.subr.msk.bf16.mxu0 %vm1746_vm0, %v4155_v23  ;;  %v5965_v12 = vpop.f32.mrf.mxu1 }
 0x821   : > { %v4125_v28 = vpop.permute.xlu0 %4124 }
 0x822   : > { %v5966_v2 = vpop.f32.mrf.mxu1 }
 0x823   : > { %v5967_v60 = vadd.f32 %v5966_v2, %v5965_v12 }
 0x824   : > { %v5968_v45 = vpop.f32.mrf.mxu1 }
 0x825   : > { %v3039_v30 = vpack.c.bf16 %v5967_v60, %v5964_v36  ;;  %v4109_v38 = vpop.permute.xlu0 %4108 }
 0x826   : > { %v5969_v27 = vpop.f32.mrf.mxu1 }
 0x827   : > { %6358 = vmatprep.mubr.msk.bf16.mxu0 %vm1746_vm0, %v3039_v30  ;;  %v5970_v35 = vadd.f32 %v5969_v27, %v5968_v45 }
 0x828   : > { %v5971_v10 = vpop.f32.mrf.mxu1 }
 0x829   : > { %v4111_v44 = vpop.permute.xlu0 %4110 }
 0x82a   : > { %v5972_v18 = vpop.f32.mrf.mxu1 }
 0x82b   : > { %v5973_v54 = vadd.f32 %v5972_v18, %v5971_v10 }
 0x82c   : > { %v5974_v55 = vpop.f32.mrf.mxu1 }
 0x82d   : > { %v3040_v25 = vpack.c.bf16 %v5973_v54, %v5970_v35  ;;  %v4115_v50 = vpop.permute.xlu0 %4114 }
 0x82e   : > { %v5975_v58 = vpop.f32.mrf.mxu1 }
 0x82f   : > { %6359 = vmatmul.mubr.msk.bf16.gmra.mxu0 %vm1746_vm0, %v3040_v25  ;;  %v5976_v59 = vadd.f32 %v5975_v58, %v5974_v55 }
 0x830   : > { %v5977_v49 = vpop.f32.mrf.mxu1 }
 0x832   : > { %v5978_v32 = vpop.f32.mrf.mxu1 }
 0x833   : > { %v5979_v57 = vadd.f32 %v5978_v32, %v5977_v49 }
 0x834   : > { %v5980_v14 = vpop.f32.mrf.mxu1 }
 0x835   : > { %v3041_v31 = vpack.c.bf16 %v5979_v57, %v5976_v59 }
 0x836   : > { %v5981_v11 = vpop.f32.mrf.mxu1 }
 0x837   : > { %6362 = vmatprep.mubr.msk.bf16.mxu0 %vm1746_vm0, %v3041_v31  ;;  %v5982_v63 = vadd.f32 %v5981_v11, %v5980_v14 }
 0x838   : > { %v5983_v40 = vpop.f32.mrf.mxu1 }
 0x83a   : > { %v5984_v43 = vpop.f32.mrf.mxu1 }
 0x83b   : > { %v5985_v42 = vadd.f32 %v5984_v43, %v5983_v40 }
 0x83d   : > { %v3042_v56 = vpack.c.bf16 %v5985_v42, %v5982_v63 }
 0x83f   : > { %6363 = vmatmul.mubr.msk.bf16.gmra.mxu0 %vm1746_vm0, %v3042_v56 }
 0x840   : > { %6022 = vmatprep.mubr.msk.bf16.mxu0 %vm1746_vm0, %v3314_v4 }
 0x847   : > { %6023 = vmatmul.mubr.msk.bf16.vlgmr.msra.gmra.mxu0 %vm1746_vm0, %v3314_v4 }
 0x848   : > { %6024 = vmatprep.mubr.msk.bf16.mxu0 %vm1746_vm0, %v8776_v7  ;;  %6113 = vmatpush3.bf16.xpose.msra.mxu0 %v4202_v20 }
 0x849   : > { %6455 = vmatprep.subr.msk.bf16.mxu0 %vm1746_vm0, %v4153_v52 }
 0x84f   : > { %6025 = vmatmul.mubr.msk.bf16.gmra.mxu0 %vm1746_vm0, %v8776_v7  ;;  %v4145_v7 = vpop.permute.xlu1 %4144 }
 0x850   : > { %6026 = vmatprep.mubr.msk.bf16.mxu0 %vm1746_vm0, %v3318_v48  ;;  %6115 = vmatpush3.bf16.xpose.msra.mxu0 %v4199_v6 }
 0x851   : > { %6456 = vmatprep.subr.msk.bf16.mxu0 %vm1746_vm0, %v4151_v62 }
 0x857   : > { %6027 = vmatmul.mubr.msk.bf16.gmra.mxu0 %vm1746_vm0, %v3318_v48 }
 0x858   : > { %6028 = vmatprep.mubr.msk.bf16.mxu0 %vm1746_vm0, %v8780_v34  ;;  %6117 = vmatpush3.bf16.xpose.msra.mxu0 %v4196_v26 }
 0x859   : > { %6457 = vmatprep.subr.msk.bf16.mxu0 %vm1746_vm0, %v4149_v22 }
 0x85f   : > { %6029 = vmatmul.mubr.msk.bf16.gmra.mxu0 %vm1746_vm0, %v8780_v34  ;;  %v4143_v34 = vpop.permute.xlu1 %4142 }
 0x860   : > { %6030 = vmatprep.mubr.msk.bf16.mxu0 %vm1746_vm0, %v3322_v51  ;;  %6119 = vmatpush3.bf16.xpose.msra.mxu0 %v4193_v37 }
 0x861   : > { %6458 = vmatprep.subr.msk.bf16.mxu0 %vm1746_vm0, %v4147_v61 }
 0x863   : > { %v4141_v13 = vpop.permute.xlu1 %4140 }
 0x867   : > { %6031 = vmatmul.mubr.msk.bf16.gmra.mxu0 %vm1746_vm0, %v3322_v51  ;;  %v4113_v46 = vpop.permute.xlu1 %4112 }
 0x868   : > { %6032 = vmatprep.mubr.msk.bf16.mxu0 %vm1746_vm0, %v8783_v19  ;;  %6121 = vmatpush3.bf16.xpose.msra.mxu0 %v4190_v39 }
 0x869   : > { %6459 = vmatprep.subr.msk.bf16.mxu0 %vm1746_vm0, %v4145_v7 }
 0x86b   : > { %v4117_v16 = vpop.permute.xlu1 %4116 }
 0x86f   : > { %6033 = vmatmul.mubr.msk.bf16.gmra.mxu0 %vm1746_vm0, %v8783_v19  ;;  %v4181_v19 = vsel %vm1746_vm0, %v4125_v28, 0  ;;  %v4121_v21 = vpop.permute.xlu1 %4120 }
 0x870   : > { %6034 = vmatprep.mubr.msk.bf16.mxu0 %vm1746_vm0, %v3326_v1  ;;  %6123 = vmatpush3.bf16.xpose.msra.mxu0 %v4187_v3 }
 0x871   : > { %6460 = vmatprep.subr.msk.bf16.mxu0 %vm1746_vm0, %v4143_v34 }
 0x873   : > { %v3833_v29 = vpop.permute.xlu1 %3832 }
 0x874   : > { %6038 = vmatprep.subr.bf16.mxu1 %v3833_v29 }
 0x877   : > { %6035 = vmatmul.mubr.msk.bf16.gmra.mxu0 %vm1746_vm0, %v3326_v1  ;;  %v3831_v36 = vpop.permute.xlu1 %3830 }
 0x878   : > { %6036 = vmatprep.mubr.msk.bf16.mxu0 %vm1746_vm0, %v8787_v33  ;;  %6125 = vmatpush3.bf16.xpose.msra.mxu0 %v4184_v17 }
 0x879   : > { %6461 = vmatprep.subr.msk.bf16.mxu0 %vm1746_vm0, %v4141_v13 }
 0x87b   : > { %v3827_v10 = vpop.permute.xlu1 %3826 }
 0x87f   : > { %6037 = vmatmul.mubr.msk.bf16.gmra.mxu0 %vm1746_vm0, %v8787_v33  ;;  %v4119_v33 = vpop.permute.xlu0 %4118  ;;  %v3823_v55 = vpop.permute.xlu1 %3822 }
 0x880   : > { %6127 = vmatpush3.bf16.xpose.msra.mxu0 %v4181_v19  ;;  %6128 = vmatprep.mubr.msk.bf16.mxu0 %vm1746_vm0, %v4109_v38 }
 0x883   : > { %v4123_v8 = vpop.permute.xlu0 %4122 }
 0x887   : > { %6129 = vmatmul.mubr.msk.bf16.vlgmr.msra.gmra.mxu0 %vm1746_vm0, %v4109_v38  ;;  %v3817_v47 = vpop.permute.xlu0 %3816 }
 0x888   : > { %6130 = vmatprep.mubr.msk.bf16.mxu0 %vm1746_vm0, %v4111_v44  ;;  %6039 = vmatpush3.bf16.msra.mxu1 %v3817_v47 }
 0x889   : > { %6040 = vmatprep.subr.bf16.mxu1 %v3831_v36  ;;  %v8965_v36 = vld [vmem:[#allocation3 + $0x10] sm:$0xff]  }
 0x88b   : > { %v3815_v23 = vpop.permute.xlu0 %3814 }
 0x88c   : > { %6041 = vmatpush3.bf16.msra.mxu1 %v3815_v23 }
 0x88f   : > { %6131 = vmatmul.mubr.msk.bf16.gmra.mxu0 %vm1746_vm0, %v4111_v44  ;;  %v3829_v12 = vpop.permute.xlu0 %3828 }
 0x890   : > { %6132 = vmatprep.mubr.msk.bf16.mxu0 %vm1746_vm0, %v4113_v46  ;;  %6042 = vmatprep.subr.bf16.mxu1 %v3829_v12 }
 0x893   : > { %v3813_v60 = vpop.permute.xlu0 %3812 }
 0x894   : > { %6043 = vmatpush3.bf16.msra.mxu1 %v3813_v60  ;;  %v8969_v60 = vld [vmem:[#allocation3 + $0x48] sm:$0xff]  }
 0x895   : > { %6044 = vmatprep.subr.bf16.mxu1 %v3827_v10 }
 0x897   : > { %6133 = vmatmul.mubr.msk.bf16.gmra.mxu0 %vm1746_vm0, %v4113_v46  ;;  %v3811_v30 = vpop.permute.xlu0 %3810 }
 0x898   : > { %6134 = vmatprep.mubr.msk.bf16.mxu0 %vm1746_vm0, %v4115_v50  ;;  %6045 = vmatpush3.bf16.msra.mxu1 %v3811_v30 }
 0x89b   : > { %v3825_v18 = vpop.permute.xlu0 %3824 }
 0x89c   : > { %6046 = vmatprep.subr.bf16.mxu1 %v3825_v18 }
 0x89f   : > { %6135 = vmatmul.mubr.msk.bf16.gmra.mxu0 %vm1746_vm0, %v4115_v50  ;;  %v3809_v4 = vpop.permute.xlu0 %3808 }
 0x8a0   : > { %6136 = vmatprep.mubr.msk.bf16.mxu0 %vm1746_vm0, %v4117_v16  ;;  %6047 = vmatpush3.bf16.msra.mxu1 %v3809_v4 }
 0x8a1   : > { %6048 = vmatprep.subr.bf16.mxu1 %v3823_v55 }
 0x8a6   : > { %v8851_v2 = vpop.f32.mrf.mxu0 }
 0x8a7   : > { %6137 = vmatmul.mubr.msk.bf16.gmra.mxu0 %vm1746_vm0, %v4117_v16  ;;  %9837 = vst [vmem:[#allocation42_spill] sm:$0xff] %v8851_v2 }
 0x8a8   : > { %6138 = vmatprep.mubr.msk.bf16.mxu0 %vm1746_vm0, %v4119_v33  ;;  %v8853_v45 = vpop.f32.mrf.mxu0 }
 0x8a9   : > { %9838 = vst [vmem:[#allocation40_spill] sm:$0xff] %v8853_v45 }
 0x8aa   : > { %v8855_v27 = vpop.f32.mrf.mxu0 }
 0x8ab   : > { %9839 = vst [vmem:[#allocation41_spill] sm:$0xff] %v8855_v27 }
 0x8ac   : > { %v8857_v35 = vpop.f32.mrf.mxu0 }
 0x8ad   : > { %9840 = vst [vmem:[#allocation24_spill] sm:$0xff] %v8857_v35 }
 0x8af   : > { %6139 = vmatmul.mubr.msk.bf16.gmra.mxu0 %vm1746_vm0, %v4119_v33 }
 0x8b0   : > { %6140 = vmatprep.mubr.msk.bf16.mxu0 %vm1746_vm0, %v4121_v21 }
 0x8b7   : > { %6141 = vmatmul.mubr.msk.bf16.gmra.mxu0 %vm1746_vm0, %v4121_v21 }
 0x8b8   : > { %6142 = vmatprep.mubr.msk.bf16.mxu0 %vm1746_vm0, %v4123_v8 }
 0x8bf   : > { %6143 = vmatmul.mubr.msk.bf16.gmra.mxu0 %vm1746_vm0, %v4123_v8 }
 0x8e0   : > { %v8859_v54 = vpop.f32.mrf.mxu0 }
 0x8e1   : > { %9841 = vst [vmem:[#allocation28_spill] sm:$0xff] %v8859_v54 }
 0x8e2   : > { %v8861_v25 = vpop.f32.mrf.mxu0 }
 0x8e3   : > { %9842 = vst [vmem:[#allocation32_spill] sm:$0xff] %v8861_v25 }
 0x8e4   : > { %v8863_v58 = vpop.f32.mrf.mxu0 }
 0x8e5   : > { %9843 = vst [vmem:[#allocation29_spill] sm:$0xff] %v8863_v58 }
 0x8e6   : > { %v8865_v49 = vpop.f32.mrf.mxu0 }
 0x8e7   : > { %9844 = vst [vmem:[#allocation26_spill] sm:$0xff] %v8865_v49 }
 0x8ef   : > { %v8867_v48 = vpop.f32.mrf.mxu0 }
 0x8f0   : > { %9845 = vst [vmem:[#allocation25_spill] sm:$0xff] %v8867_v48 }
 0x8f1   : > { %v8869_v32 = vpop.f32.mrf.mxu0 }
 0x8f2   : > { %9846 = vst [vmem:[#allocation34_spill] sm:$0xff] %v8869_v32 }
 0x8f3   : > { %v8871_v59 = vpop.f32.mrf.mxu0 }
 0x8f4   : > { %9847 = vst [vmem:[#allocation30_spill] sm:$0xff] %v8871_v59  ;;  %v9081_v59 = vld [vmem:[#allocation3 + $0x8] sm:$0xff]  }
 0x8f5   : > { %v8873_v57 = vpop.f32.mrf.mxu0  ;;  %9856 = vst [vmem:[#allocation43_spill] sm:$0xff] %v9081_v59 }
 0x8f6   : > { %9848 = vst [vmem:[#allocation31_spill] sm:$0xff] %v8873_v57 }
 0x8ff   : > { %v8875_v14 = vpop.f32.mrf.mxu0 }
 0x900   : > { %9849 = vst [vmem:[#allocation27_spill] sm:$0xff] %v8875_v14 }
 0x901   : > { %v8877_v31 = vpop.f32.mrf.mxu0 }
 0x902   : > { %9850 = vst [vmem:[#allocation35_spill] sm:$0xff] %v8877_v31 }
 0x903   : > { %v8879_v11 = vpop.f32.mrf.mxu0 }
 0x904   : > { %9851 = vst [vmem:[#allocation33_spill] sm:$0xff] %v8879_v11 }
 0x905   : > { %v8881_v51 = vpop.f32.mrf.mxu0 }
 0x906   : > { %9852 = vst [vmem:[#allocation37_spill] sm:$0xff] %v8881_v51 }
 0x907   : > { %v8883_v40 = vpop.f32.mrf.mxu0 }
 0x909   : > { %v8885_v43 = vpop.f32.mrf.mxu0 }
 0x90a   : > { %v3546_v63 = vmax.f32 %v8883_v40, %v8885_v43 }
 0x90b   : > { %v8889_v42 = vpop.f32.mrf.mxu0 }
 0x90c   : > { %3547 = vmax.xlane.f32.xlu0 %v3546_v63 }
 0x90d   : > { %v8891_v56 = vpop.f32.mrf.mxu0 }
 0x90e   : > { %v3549_v1 = vmax.f32 %v8889_v42, %v8891_v56 }
 0x90f   : > { %v8895_v5 = vpop.f32.mrf.mxu0 }
 0x910   : > { %3550 = vmax.xlane.f32.xlu1 %v3549_v1 }
 0x911   : > { %v8897_v20 = vpop.f32.mrf.mxu0 }
 0x912   : > { %v3552_v52 = vmax.f32 %v8895_v5, %v8897_v20 }
 0x913   : > { %v8901_v24 = vpop.f32.mrf.mxu0 }
 0x914   : > { %3553 = vmax.xlane.f32.xlu1 %v3552_v52 }
 0x915   : > { %v8903_v6 = vpop.f32.mrf.mxu0 }
 0x916   : > { %v3555_v62 = vmax.f32 %v8901_v24, %v8903_v6 }
 0x917   : > { %v8907_v9 = vpop.f32.mrf.mxu0 }
 0x918   : > { %3556 = vmax.xlane.f32.xlu0 %v3555_v62 }
 0x919   : > { %v8909_v26 = vpop.f32.mrf.mxu0 }
 0x91a   : > { %v3558_v22 = vmax.f32 %v8907_v9, %v8909_v26 }
 0x91b   : > { %v8913_v53 = vpop.f32.mrf.mxu0 }
 0x91c   : > { %3559 = vmax.xlane.f32.xlu1 %v3558_v22 }
 0x91d   : > { %v8915_v37 = vpop.f32.mrf.mxu0 }
 0x91e   : > { %v3561_v61 = vmax.f32 %v8913_v53, %v8915_v37 }
 0x91f   : > { %v8919_v0 = vpop.f32.mrf.mxu0 }
 0x920   : > { %3562 = vmax.xlane.f32.xlu1 %v3561_v61 }
 0x921   : > { %v8921_v39 = vpop.f32.mrf.mxu0 }
 0x922   : > { %v3564_v7 = vmax.f32 %v8919_v0, %v8921_v39 }
 0x923   : > { %v8925_v41 = vpop.f32.mrf.mxu0 }
 0x924   : > { %3565 = vmax.xlane.f32.xlu0 %v3564_v7 }
 0x925   : > { %v8927_v3 = vpop.f32.mrf.mxu0 }
 0x926   : > { %v3567_v34 = vmax.f32 %v8925_v41, %v8927_v3 }
 0x927   : > { %v8931_v15 = vpop.f32.mrf.mxu0 }
 0x928   : > { %3568 = vmax.xlane.f32.xlu1 %v3567_v34 }
 0x929   : > { %v8933_v17 = vpop.f32.mrf.mxu0 }
 0x92a   : > { %v3570_v13 = vmax.f32 %v8931_v15, %v8933_v17 }
 0x92b   : > { %v8937_v28 = vpop.f32.mrf.mxu0 }
 0x92c   : > { %3571 = vmax.xlane.f32.xlu1 %v3570_v13 }
 0x92d   : > { %v8939_v19 = vpop.f32.mrf.mxu0 }
 0x92e   : > { %v3573_v38 = vmax.f32 %v8937_v28, %v8939_v19 }
 0x92f   : > { %v8943_v44 = vpop.f32.mrf.mxu0 }
 0x930   : > { %3574 = vmax.xlane.f32.xlu1 %v3573_v38 }
 0x931   : > { %v8945_v46 = vpop.f32.mrf.mxu0 }
 0x932   : > { %v3576_v50 = vmax.f32 %v8943_v44, %v8945_v46 }
 0x933   : > { %v8949_v16 = vpop.f32.mrf.mxu0 }
 0x934   : > { %3577 = vmax.xlane.f32.xlu0 %v3576_v50 }
 0x935   : > { %v8951_v33 = vpop.f32.mrf.mxu0 }
 0x936   : > { %v3579_v21 = vmax.f32 %v8949_v16, %v8951_v33 }
 0x937   : > { %v8955_v8 = vpop.f32.mrf.mxu0 }
 0x938   : > { %3580 = vmax.xlane.f32.xlu1 %v3579_v21 }
 0x939   : > { %v8957_v47 = vpop.f32.mrf.mxu0 }
 0x93a   : > { %v3582_v18 = vmax.f32 %v8955_v8, %v8957_v47 }
 0x93b   : > { %v8959_v23 = vpop.f32.mrf.mxu0 }
 0x93d   : > { %v8961_v29 = vpop.f32.mrf.mxu0 }
 0x93e   : > { %v3585_v12 = vmax.f32 %v8959_v23, %v8961_v29 }
 0x93f   : > { %v8973_v30 = vpop.f32.mrf.mxu0 }
 0x940   : > { %3586 = vmax.xlane.f32.xlu0 %v3585_v12 }
 0x941   : > { %v8975_v10 = vpop.f32.mrf.mxu0 }
 0x942   : > { %v3588_v55 = vmax.f32 %v8973_v30, %v8975_v10 }
 0x943   : > { %v8979_v4 = vpop.f32.mrf.mxu0 }
 0x945   : > { %v8983_v63 = vpop.f32.mrf.mxu0 }
 0x946   : > { %v3591_v1 = vmax.f32 %v8979_v4, %v8983_v63 }
 0x949   : > { %3806 = vrot.lane.b32.xlu1 %v8965_v36, %s7400_s24 }
 0x956   : > { %3820 = vrot.lane.b32.xlu0 %v8969_v60, %s7400_s24 }
 0x96d   : > { %3583 = vmax.xlane.f32.xlu1 %v3582_v18 }
 0x971   : > { %3589 = vmax.xlane.f32.xlu1 %v3588_v55 }
 0x975   : > { %3592 = vmax.xlane.f32.xlu0 %v3591_v1 }
 0x995   : > { %v3548_v52 = vpop.xlane.xlu0 %3547 }
 0x996   : > { %v3594_v62 = vsub.f32 %v8883_v40, %v3548_v52  ;;  %v3595_v22 = vsub.f32 %v8885_v43, %v3548_v52 }
 0x998   : > { %v3626_v61 = vmul.f32 1.442695, %v3594_v62  ;;  %v3628_v7 = vmul.f32 1.442695, %v3595_v22 }
 0x999   : > { %v3551_v34 = vpop.xlane.xlu1 %3550 }
 0x99a   : > { %6891 = vpow2.f32 %v3626_v61  ;;  %v3596_v13 = vsub.f32 %v8889_v42, %v3551_v34  ;;  %v3597_v38 = vsub.f32 %v8891_v56, %v3551_v34 }
 0x99b   : > { %6893 = vpow2.f32 %v3628_v7 }
 0x99c   : > { %v3630_v50 = vmul.f32 1.442695, %v3596_v13  ;;  %v3632_v21 = vmul.f32 1.442695, %v3597_v38 }
 0x99d   : > { %v3554_v12 = vpop.xlane.xlu1 %3553 }
 0x99e   : > { %6895 = vpow2.f32 %v3630_v50  ;;  %v3598_v18 = vsub.f32 %v8895_v5, %v3554_v12  ;;  %v3599_v55 = vsub.f32 %v8897_v20, %v3554_v12 }
 0x99f   : > { %6897 = vpow2.f32 %v3632_v21 }
 0x9a0   : > { %v3634_v40 = vmul.f32 1.442695, %v3598_v18  ;;  %v3636_v43 = vmul.f32 1.442695, %v3599_v55 }
 0x9a1   : > { %v3557_v1 = vpop.xlane.xlu0 %3556 }
 0x9a2   : > { %6899 = vpow2.f32 %v3634_v40  ;;  %v3600_v52 = vsub.f32 %v8901_v24, %v3557_v1  ;;  %v3601_v42 = vsub.f32 %v8903_v6, %v3557_v1 }
 0x9a3   : > { %6901 = vpow2.f32 %v3636_v43 }
 0x9a4   : > { %v3638_v56 = vmul.f32 1.442695, %v3600_v52  ;;  %v3640_v62 = vmul.f32 1.442695, %v3601_v42 }
 0x9a5   : > { %v3560_v22 = vpop.xlane.xlu1 %3559 }
 0x9a6   : > { %6903 = vpow2.f32 %v3638_v56  ;;  %v3602_v61 = vsub.f32 %v8907_v9, %v3560_v22  ;;  %v3603_v5 = vsub.f32 %v8909_v26, %v3560_v22 }
 0x9a7   : > { %v8997_v7 = vpop.eup %6891  ;;  %6905 = vpow2.f32 %v3640_v62 }
 0x9a8   : > { %v8999_v20 = vpop.eup %6893  ;;  %v3642_v34 = vmul.f32 1.442695, %v3602_v61  ;;  %v3644_v13 = vmul.f32 1.442695, %v3603_v5 }
 0x9a9   : > { %v3563_v38 = vpop.xlane.xlu1 %3562  ;;  %v3690_v24 = vadd.f32 %v8999_v20, %v8997_v7 }
 0x9aa   : > { %6907 = vpow2.f32 %v3642_v34  ;;  %v3604_v6 = vsub.f32 %v8913_v53, %v3563_v38  ;;  %v3605_v50 = vsub.f32 %v8915_v37, %v3563_v38 }
 0x9ab   : > { %v9005_v21 = vpop.eup %6895  ;;  %6909 = vpow2.f32 %v3644_v13  ;;  %3691 = vadd.xlane.f32.xlu0 %v3690_v24 }
 0x9ac   : > { %v9007_v9 = vpop.eup %6897  ;;  %v3646_v26 = vmul.f32 1.442695, %v3604_v6  ;;  %v3648_v12 = vmul.f32 1.442695, %v3605_v50 }
 0x9ad   : > { %v3566_v18 = vpop.xlane.xlu0 %3565  ;;  %v3693_v55 = vadd.f32 %v9007_v9, %v9005_v21 }
 0x9ae   : > { %6911 = vpow2.f32 %v3646_v26  ;;  %v3606_v40 = vsub.f32 %v8919_v0, %v3566_v18  ;;  %v3607_v43 = vsub.f32 %v8921_v39, %v3566_v18  ;;  %v9023_v39 = vpop.f32.mrf.mxu0 }
 0x9af   : > { %v9013_v53 = vpop.eup %6899  ;;  %6913 = vpow2.f32 %v3648_v12  ;;  %3694 = vadd.xlane.f32.xlu1 %v3693_v55 }
 0x9b0   : > { %v9015_v37 = vpop.eup %6901  ;;  %v3650_v1 = vmul.f32 1.442695, %v3606_v40  ;;  %v3652_v52 = vmul.f32 1.442695, %v3607_v43  ;;  %v9031_v24 = vpop.f32.mrf.mxu0 }
 0x9b1   : > { %v3569_v42 = vpop.xlane.xlu1 %3568  ;;  %v3696_v56 = vadd.f32 %v9015_v37, %v9013_v53 }
 0x9b2   : > { %6915 = vpow2.f32 %v3650_v1  ;;  %v3608_v62 = vsub.f32 %v8925_v41, %v3569_v42  ;;  %v3609_v22 = vsub.f32 %v8927_v3, %v3569_v42  ;;  %v9039_v26 = vpop.f32.mrf.mxu0 }
 0x9b3   : > { %v9021_v0 = vpop.eup %6903  ;;  %6917 = vpow2.f32 %v3652_v52  ;;  %3697 = vadd.xlane.f32.xlu0 %v3696_v56 }
 0x9b4   : > { %v9025_v61 = vpop.eup %6905  ;;  %v3654_v5 = vmul.f32 1.442695, %v3608_v62  ;;  %v3656_v34 = vmul.f32 1.442695, %v3609_v22  ;;  %v9047_v43 = vpop.f32.mrf.mxu0 }
 0x9b5   : > { %v3699_v13 = vadd.f32 %v9025_v61, %v9021_v0  ;;  %v3572_v41 = vpop.xlane.xlu1 %3571 }
 0x9b6   : > { %6919 = vpow2.f32 %v3654_v5  ;;  %v9055_v62 = vpop.f32.mrf.mxu0  ;;  %v3610_v32 = vsub.f32 %v8931_v15, %v3572_v41  ;;  %v3611_v48 = vsub.f32 %v8933_v17, %v3572_v41 }
 0x9b7   : > { %v9029_v38 = vpop.eup %6907  ;;  %6921 = vpow2.f32 %v3656_v34  ;;  %3700 = vadd.xlane.f32.xlu1 %v3699_v13 }
 0x9b8   : > { %v9033_v3 = vpop.eup %6909  ;;  %v3658_v54 = vmul.f32 1.442695, %v3610_v32  ;;  %v3660_v27 = vmul.f32 1.442695, %v3611_v48 }
 0x9b9   : > { %v3702_v6 = vadd.f32 %v9033_v3, %v9029_v38  ;;  %v3575_v18 = vpop.xlane.xlu1 %3574 }
 0x9ba   : > { %v3612_v49 = vsub.f32 %v8937_v28, %v3575_v18  ;;  %v3613_v58 = vsub.f32 %v8939_v19, %v3575_v18  ;;  %6923 = vpow2.f32 %v3658_v54 }
 0x9bb   : > { %v9037_v50 = vpop.eup %6911  ;;  %3703 = vadd.xlane.f32.xlu1 %v3702_v6  ;;  %v9061_v6 = vpop.f32.mrf.mxu0  ;;  %6925 = vpow2.f32 %v3660_v27 }
 0x9bc   : > { %v9041_v12 = vpop.eup %6913  ;;  %v3662_v2 = vmul.f32 1.442695, %v3612_v49 }
 0x9bd   : > { %v3705_v55 = vadd.f32 %v9041_v12, %v9037_v50  ;;  %v3578_v5 = vpop.xlane.xlu0 %3577  ;;  %v9063_v51 = vpop.f32.mrf.mxu0 }
 0x9be   : > { %v3614_v35 = vsub.f32 %v8943_v44, %v3578_v5  ;;  %v3615_v45 = vsub.f32 %v8945_v46, %v3578_v5  ;;  %6927 = vpow2.f32 %v3662_v2 }
 0x9bf   : > { %v9045_v40 = vpop.eup %6915  ;;  %3706 = vadd.xlane.f32.xlu0 %v3705_v55  ;;  %v9065_v31 = vpop.f32.mrf.mxu0 }
 0x9c0   : > { %v9049_v1 = vpop.eup %6917  ;;  %9853 = vst [vmem:[#allocation36_spill] sm:$0xff] %v9065_v31  ;;  %v3666_v17 = vmul.f32 1.442695, %v3614_v35  ;;  %v3668_v28 = vmul.f32 1.442695, %v3615_v45 }
 0x9c1   : > { %v3581_v52 = vpop.xlane.xlu1 %3580  ;;  %v3708_v42 = vadd.f32 %v9049_v1, %v9045_v40  ;;  %v9067_v14 = vpop.f32.mrf.mxu0 }
 0x9c2   : > { %v3616_v32 = vsub.f32 %v8949_v16, %v3581_v52  ;;  %v3617_v48 = vsub.f32 %v8951_v33, %v3581_v52 }
 0x9c3   : > { %v9053_v56 = vpop.eup %6919  ;;  %3709 = vadd.xlane.f32.xlu1 %v3708_v42  ;;  %v9069_v42 = vld [vmem:[#allocation3 + $0x40] sm:$0xff]   ;;  %v9073_v57 = vpop.f32.mrf.mxu0 }
 0x9c4   : > { %v9057_v22 = vpop.eup %6921  ;;  %9854 = vst [vmem:[#allocation39_spill] sm:$0xff] %v9069_v42  ;;  %v3672_v46 = vmul.f32 1.442695, %v3617_v48 }
 0x9c5   : > { %v3807_v34 = vpop.permute.xlu1 %3806  ;;  %v3711_v13 = vadd.f32 %v9057_v22, %v9053_v56 }
 0x9c6   : > { %6049 = vmatpush3.bf16.msra.mxu1 %v3807_v34  ;;  %v9075_v34 = vld [vmem:[#allocation3] sm:$0xff]  }
 0x9c7   : > { %3712 = vadd.xlane.f32.xlu0 %v3711_v13  ;;  %9855 = vst [vmem:[#allocation38_spill] sm:$0xff] %v9075_v34  ;;  %v9079_v13 = vpop.f32.mrf.mxu0  ;;  %v9107_v45 = vpop.eup %6923 }
 0x9c8   : > { %v9109_v27 = vpop.eup %6925 }
 0x9c9   : > { %v3587_v55 = vpop.xlane.xlu0 %3586 }
 0x9ca   : > { %v3621_v15 = vsub.f32 %v8961_v29, %v3587_v55 }
 0x9cb   : > { %v9111_v35 = vpop.eup %6927 }
 0x9cc   : > { %v3680_v44 = vmul.f32 1.442695, %v3621_v15  ;;  %v3714_v15 = vadd.f32 %v9109_v27, %v9107_v45 }
 0x9cd   : > { %v3821_v11 = vpop.permute.xlu0 %3820 }
 0x9ce   : > { %6050 = vmatprep.subr.bf16.mxu1 %v3821_v11  ;;  %v9085_v11 = vpop.f32.mrf.mxu0 }
 0x9cf   : > { %9857 = vst [vmem:[#allocation44_spill] sm:$0xff] %v9085_v11 }
 0x9d0   : > { %v9091_v25 = vpop.f32.mrf.mxu0 }
 0x9d4   : > { %3818 = vrot.lane.b32.xlu1 %v9069_v42, %s7400_s24  ;;  %v9097_v42 = vpop.f32.mrf.mxu0 }
 0x9d6   : > { %v9101_v49 = vpop.f32.mrf.mxu0 }
 0x9d8   : > { %3802 = vrot.lane.b32.xlu1 %v9075_v34, %s7400_s24  ;;  %v3664_v34 = vmul.f32 1.442695, %v3613_v58  ;;  %v3670_v58 = vmul.f32 1.442695, %v3616_v32  ;;  %v9103_v54 = vpop.f32.mrf.mxu0 }
 0x9da   : > { %6929 = vpow2.f32 %v3664_v34  ;;  %v9105_v2 = vpop.f32.mrf.mxu0 }
 0x9db   : > { %6931 = vpow2.f32 %v3666_v17 }
 0x9dc   : > { %6933 = vpow2.f32 %v3668_v28  ;;  %v9115_v33 = vpop.f32.mrf.mxu0 }
 0x9dd   : > { %3804 = vrot.lane.b32.xlu0 %v9081_v59, %s7400_s24  ;;  %v3620_v59 = vsub.f32 %v8959_v23, %v3587_v55  ;;  %9858 = vst [vmem:[#allocation45_spill] sm:$0xff] %v9115_v33 }
 0x9df   : > { %v3678_v19 = vmul.f32 1.442695, %v3620_v59 }
 0x9e1   : > { %6935 = vpow2.f32 %v3678_v19 }
 0x9e2   : > { %6937 = vpow2.f32 %v3680_v44 }
 0x9e3   : > { %6939 = vpow2.f32 %v3670_v58 }
 0x9e4   : > { %6941 = vpow2.f32 %v3672_v46 }
 0x9e7   : > { %v9113_v16 = vpop.eup %6929 }
 0x9e8   : > { %v9119_v41 = vpop.eup %6931  ;;  %v3717_v17 = vadd.f32 %v9113_v16, %v9111_v35 }
 0x9e9   : > { %v9121_v18 = vpop.eup %6933 }
 0x9ea   : > { %v3720_v46 = vadd.f32 %v9121_v18, %v9119_v41 }
 0x9ee   : > { %v9123_v55 = vpop.eup %6935 }
 0x9ef   : > { %v9129_v28 = vpop.eup %6937 }
 0x9f0   : > { %v9135_v44 = vpop.eup %6939 }
 0x9f6   : > { %v3584_v59 = vpop.xlane.xlu1 %3583 }
 0x9f7   : > { %v3618_v23 = vsub.f32 %v8955_v8, %v3584_v59  ;;  %v3619_v29 = vsub.f32 %v8957_v47, %v3584_v59  ;;  %v9131_v8 = vpop.f32.mrf.mxu0  ;;  %v3729_v59 = vadd.f32 %v9129_v28, %v9123_v55 }
 0x9f9   : > { %v3674_v52 = vmul.f32 1.442695, %v3618_v23  ;;  %v3676_v5 = vmul.f32 1.442695, %v3619_v29  ;;  %v9141_v23 = vpop.eup %6941  ;;  %v9143_v29 = vpop.f32.mrf.mxu0 }
 0x9fa   : > { %v3590_v34 = vpop.xlane.xlu1 %3589  ;;  %9859 = vst [vmem:[#allocation46_spill] sm:$0xff] %v9143_v29 }
 0x9fb   : > { %6943 = vpow2.f32 %v3674_v52  ;;  %v3622_v47 = vsub.f32 %v8973_v30, %v3590_v34  ;;  %v3623_v32 = vsub.f32 %v8975_v10, %v3590_v34  ;;  %v3723_v34 = vadd.f32 %v9141_v23, %v9135_v44 }
 0x9fc   : > { %6945 = vpow2.f32 %v3676_v5  ;;  %3715 = vadd.xlane.f32.xlu0 %v3714_v15  ;;  %3718 = vadd.xlane.f32.xlu1 %v3717_v17  ;;  %v9149_v15 = vpop.f32.mrf.mxu0 }
 0x9fd   : > { %v3682_v19 = vmul.f32 1.442695, %v3622_v47  ;;  %v3684_v48 = vmul.f32 1.442695, %v3623_v32 }
 0x9fe   : > { %v3593_v58 = vpop.xlane.xlu0 %3592  ;;  %v9151_v17 = vpop.f32.mrf.mxu0 }
 0x9ff   : > { %6947 = vpow2.f32 %v3682_v19  ;;  %v3624_v30 = vsub.f32 %v8979_v4, %v3593_v58  ;;  %v3625_v10 = vsub.f32 %v8983_v63, %v3593_v58 }
 0xa00   : > { %6949 = vpow2.f32 %v3684_v48  ;;  %3721 = vadd.xlane.f32.xlu0 %v3720_v46  ;;  %3730 = vadd.xlane.f32.xlu1 %v3729_v59  ;;  %v9159_v32 = vpop.f32.mrf.mxu0 }
 0xa01   : > { %v3686_v52 = vmul.f32 1.442695, %v3624_v30  ;;  %v3688_v5 = vmul.f32 1.442695, %v3625_v10  ;;  %v4341_v10 = vmax.f32 %v9023_v39, %v9031_v24 }
 0xa02   : > { %v9167_v46 = vpop.f32.mrf.mxu0 }
 0xa03   : > { %6951 = vpow2.f32 %v3686_v52 }
 0xa04   : > { %6953 = vpow2.f32 %v3688_v5  ;;  %3724 = vadd.xlane.f32.xlu0 %v3723_v34  ;;  %v9177_v5 = vpop.f32.mrf.mxu0  ;;  %v4344_v34 = vmax.f32 %v9039_v26, %v9047_v43 }
 0xa05   : > { %9864 = vst [vmem:[#allocation51_spill] sm:$0xff] %v9177_v5 }
 0xa08   : > { %v9153_v47 = vpop.eup %6943 }
 0xa09   : > { %v9155_v4 = vpop.eup %6945 }
 0xa0a   : > { %v3726_v63 = vadd.f32 %v9155_v4, %v9153_v47 }
 0xa0c   : > { %v9161_v19 = vpop.eup %6947  ;;  %3727 = vadd.xlane.f32.xlu0 %v3726_v63  ;;  %v4347_v63 = vmax.f32 %v9055_v62, %v9061_v6 }
 0xa0d   : > { %9860 = vst [vmem:[#allocation47_spill] sm:$0xff] %v9161_v19  ;;  %v9163_v48 = vpop.eup %6949 }
 0xa0e   : > { %9861 = vst [vmem:[#allocation48_spill] sm:$0xff] %v9163_v48  ;;  %v3732_v58 = vadd.f32 %v9163_v48, %v9161_v19  ;;  %v9183_v19 = vpop.f32.mrf.mxu0 }
 0xa0f   : > { %9865 = vst [vmem:[#allocation52_spill] sm:$0xff] %v9183_v19 }
 0xa10   : > { %v9169_v59 = vpop.eup %6951  ;;  %3733 = vadd.xlane.f32.xlu0 %v3732_v58  ;;  %v4350_v58 = vmax.f32 %v9063_v51, %v9065_v31 }
 0xa11   : > { %9862 = vst [vmem:[#allocation49_spill] sm:$0xff] %v9169_v59  ;;  %v9171_v30 = vpop.eup %6953 }
 0xa12   : > { %9863 = vst [vmem:[#allocation50_spill] sm:$0xff] %v9171_v30  ;;  %v3735_v52 = vadd.f32 %v9171_v30, %v9169_v59  ;;  %v4353_v59 = vmax.f32 %v9067_v14, %v9073_v57  ;;  %v9189_v30 = vpop.f32.mrf.mxu0 }
 0xa13   : > { %9866 = vst [vmem:[#allocation53_spill] sm:$0xff] %v9189_v30 }
 0xa14   : > { %3736 = vadd.xlane.f32.xlu1 %v3735_v52  ;;  %4342 = vmax.xlane.f32.xlu0 %v4341_v10  ;;  %v4356_v10 = vmax.f32 %v9079_v13, %v9085_v11  ;;  %v4359_v52 = vmax.f32 %v9091_v25, %v9097_v42  ;;  %v9195_v48 = vpop.f32.mrf.mxu0 }
 0xa15   : > { %9867 = vst [vmem:[#allocation54_spill] sm:$0xff] %v9195_v48 }
 0xa16   : > { %v9201_v31 = vpop.f32.mrf.mxu0 }
 0xa17   : > { %9868 = vst [vmem:[#allocation55_spill] sm:$0xff] %v9201_v31 }
 0xa18   : > { %4345 = vmax.xlane.f32.xlu1 %v4344_v34  ;;  %4348 = vmax.xlane.f32.xlu0 %v4347_v63  ;;  %v4362_v34 = vmax.f32 %v9101_v49, %v9103_v54  ;;  %v4365_v63 = vmax.f32 %v9105_v2, %v9115_v33  ;;  %v9207_v11 = vpop.f32.mrf.mxu0 }
 0xa19   : > { %9869 = vst [vmem:[#allocation56_spill] sm:$0xff] %v9207_v11 }
 0xa1a   : > { %v9213_v33 = vpop.f32.mrf.mxu0 }
 0xa1b   : > { %9870 = vst [vmem:[#allocation57_spill] sm:$0xff] %v9213_v33 }
 0xa1c   : > { %4351 = vmax.xlane.f32.xlu1 %v4350_v58  ;;  %4354 = vmax.xlane.f32.xlu0 %v4353_v59  ;;  %v4368_v59 = vmax.f32 %v9131_v8, %v9143_v29  ;;  %v4371_v58 = vmax.f32 %v9149_v15, %v9151_v17  ;;  %v9219_v29 = vpop.f32.mrf.mxu0 }
 0xa1d   : > { %9871 = vst [vmem:[#allocation58_spill] sm:$0xff] %v9219_v29 }
 0xa20   : > { %4357 = vmax.xlane.f32.xlu1 %v4356_v10  ;;  %4360 = vmax.xlane.f32.xlu0 %v4359_v52  ;;  %v4374_v10 = vmax.f32 %v9159_v32, %v9167_v46  ;;  %v4377_v52 = vmax.f32 %v9177_v5, %v9183_v19  ;;  %v7119_v5 = vld [vmem:[#allocation3 + $0x38] sm:$0xff]  }
 0xa24   : > { %4363 = vmax.xlane.f32.xlu1 %v4362_v34  ;;  %4366 = vmax.xlane.f32.xlu0 %v4365_v63  ;;  %v4380_v34 = vmax.f32 %v9189_v30, %v9195_v48  ;;  %v4383_v63 = vmax.f32 %v9201_v31, %v9207_v11  ;;  %v7120_v11 = vld [vmem:[#allocation3 + $0x78] sm:$0xff]  }
 0xa28   : > { %4369 = vmax.xlane.f32.xlu1 %v4368_v59  ;;  %4372 = vmax.xlane.f32.xlu0 %v4371_v58  ;;  %v4386_v59 = vmax.f32 %v9213_v33, %v9219_v29  ;;  %v7123_v33 = vld [vmem:[#allocation3 + $0x60] sm:$0xff]  }
 0xa2c   : > { %4375 = vmax.xlane.f32.xlu1 %v4374_v10  ;;  %4378 = vmax.xlane.f32.xlu0 %v4377_v52 }
 0xa30   : > { %4381 = vmax.xlane.f32.xlu1 %v4380_v34  ;;  %4384 = vmax.xlane.f32.xlu0 %v4383_v63 }
 0xa34   : > { %v3692_v58 = vpop.xlane.xlu0 %3691  ;;  %4387 = vmax.xlane.f32.xlu1 %v4386_v59 }
 0xa35   : > { %6955 = vrcp.f32 %v3692_v58  ;;  %v7121_v58 = vld [vmem:[#allocation3 + $0x30] sm:$0xff]  }
 0xa38   : > { %v3695_v19 = vpop.xlane.xlu1 %3694 }
 0xa39   : > { %6957 = vrcp.f32 %v3695_v19  ;;  %v7122_v19 = vld [vmem:[#allocation3 + $0x70] sm:$0xff]  }
 0xa3c   : > { %v3698_v30 = vpop.xlane.xlu0 %3697 }
 0xa40   : > { %v3701_v10 = vpop.xlane.xlu1 %3700 }
 0xa41   : > { %6959 = vrcp.f32 %v3701_v10  ;;  %v7126_v10 = vld [vmem:[#allocation3 + $0x28] sm:$0xff]  }
 0xa42   : > { %v6956_v52 = vpop.eup %6955  ;;  %6961 = vrcp.f32 %v3698_v30 }
 0xa43   : > { %v3755_v34 = vmul.f32 %v6956_v52, %v8999_v20 }
 0xa44   : > { %v3704_v31 = vpop.xlane.xlu1 %3703 }
 0xa45   : > { %4611 = vrot.lane.b32.xlu1 %v7119_v5, %s7401_s20 }
 0xa46   : > { %v6958_v48 = vpop.eup %6957  ;;  %4627 = vrot.lane.b32.xlu0 %v7120_v11, %s7401_s20  ;;  %v7124_v11 = vld [vmem:[#allocation3 + $0x68] sm:$0xff]  }
 0xa47   : > { %v3757_v63 = vmul.f32 %v6958_v48, %v9007_v9  ;;  %v7125_v9 = vld [vmem:[#allocation3 + $0x20] sm:$0xff]  }
 0xa48   : > { %v3707_v5 = vpop.xlane.xlu0 %3706 }
 0xa49   : > { %v3787_v59 = vpack.c.bf16 %v3757_v63, %v3755_v34  ;;  %4609 = vrot.lane.b32.xlu1 %v7121_v58, %s7401_s20  ;;  %6963 = vrcp.f32 %v3707_v5  ;;  %v3756_v58 = vmul.f32 %v6958_v48, %v9005_v21 }
 0xa4a   : > { %4625 = vrot.lane.b32.xlu0 %v7122_v19, %s7401_s20  ;;  %6965 = vrcp.f32 %v3704_v31  ;;  %v7128_v19 = vld [vmem:[#allocation3 + $0x58] sm:$0xff]  }
 0xa4b   : > { %3882 = vmatprep.mubr.bf16.mxu1 %v3787_v59  ;;  %v7127_v59 = vld [vmem:[#allocation3 + $0x50] sm:$0xff]  }
 0xa4c   : > { %v3710_v29 = vpop.xlane.xlu1 %3709 }
 0xa4d   : > { %4621 = vrot.lane.b32.xlu1 %v7123_v33, %s7401_s20 }
 0xa4e   : > { %4623 = vrot.lane.b32.xlu0 %v7124_v11, %s7401_s20  ;;  %v6960_v34 = vpop.eup %6959  ;;  %v3754_v11 = vmul.f32 %v6956_v52, %v8997_v7 }
 0xa4f   : > { %v6962_v33 = vpop.eup %6961  ;;  %v3761_v31 = vmul.f32 %v6960_v34, %v9025_v61  ;;  %v3760_v61 = vmul.f32 %v6960_v34, %v9021_v0 }
 0xa50   : > { %v3713_v20 = vpop.xlane.xlu0 %3712  ;;  %v3819_v30 = vpop.permute.xlu1 %3818 }
 0xa51   : > { %4605 = vrot.lane.b32.xlu1 %v7125_v9, %s7401_s20  ;;  %6967 = vrcp.f32 %v3713_v20  ;;  %v3759_v9 = vmul.f32 %v6962_v33, %v9015_v37  ;;  %v3758_v37 = vmul.f32 %v6962_v33, %v9013_v53 }
 0xa52   : > { %4607 = vrot.lane.b32.xlu0 %v7126_v10, %s7401_s20  ;;  %6969 = vrcp.f32 %v3710_v29  ;;  %v3786_v10 = vpack.c.bf16 %v3756_v58, %v3754_v11 }
 0xa53   : > { %v3789_v21 = vpack.c.bf16 %v3761_v31, %v3759_v9  ;;  %v3788_v29 = vpack.c.bf16 %v3760_v61, %v3758_v37  ;;  %v6695_v31 = vld [vmem:[#allocation12 + $0x28] sm:$0xff]  }
 0xa54   : > { %v3805_v63 = vpop.permute.xlu0 %3804  ;;  %v3803_v5 = vpop.permute.xlu1 %3802 }
 0xa55   : > { %6051 = vmatpush3.bf16.msra.mxu1 %v3805_v63  ;;  %4617 = vrot.lane.b32.xlu1 %v7127_v59, %s7401_s20 }
 0xa56   : > { %6052 = vmatprep.subr.bf16.mxu1 %v3819_v30  ;;  %4619 = vrot.lane.b32.xlu0 %v7128_v19, %s7401_s20  ;;  %v7129_v30 = vld [vmem:[#allocation3 + $0x18] sm:$0xff]   ;;  %v6964_v48 = vpop.eup %6963 }
 0xa57   : > { %v6966_v20 = vpop.eup %6965  ;;  %v3765_v7 = vmul.f32 %v6964_v48, %v9041_v12  ;;  %v3764_v58 = vmul.f32 %v6964_v48, %v9037_v50 }
 0xa58   : > { %v3762_v0 = vmul.f32 %v6966_v20, %v9029_v38 }
 0xa59   : > { %6053 = vmatpush3.bf16.msra.mxu1 %v3803_v5  ;;  %4601 = vrot.lane.b32.xlu1 %v8965_v36, %s7401_s20  ;;  %v3763_v36 = vmul.f32 %v6966_v20, %v9033_v3 }
 0xa5a   : > { %4603 = vrot.lane.b32.xlu0 %v7129_v30, %s7401_s20  ;;  %v3790_v34 = vpack.c.bf16 %v3764_v58, %v3762_v0  ;;  %6386 = vmatprep.subr.bf16.mxu1 %v6695_v31 }
 0xa5b   : > { %v3791_v52 = vpack.c.bf16 %v3765_v7, %v3763_v36 }
 0xa5c   : > { %3883 = vmatmul.mubr.bf16.vlgmr.msra.gmra.mxu1 %v3786_v10 }
 0xa5d   : > { %3890 = vmatprep.mubr.bf16.mxu1 %v3789_v21  ;;  %6387 = vmatpush3.bf16.msra.mxu1 %v6695_v31 }
 0xa5e   : > { %4615 = vrot.lane.b32.xlu0 %v8969_v60, %s7401_s20  ;;  %v6968_v63 = vpop.eup %6967 }
 0xa5f   : > { %v6970_v59 = vpop.eup %6969  ;;  %v3769_v19 = vmul.f32 %v6968_v63, %v9057_v22  ;;  %v3768_v53 = vmul.f32 %v6968_v63, %v9053_v56  ;;  %v6696_v22 = vld [vmem:[#allocation12 + $0x20] sm:$0xff]  }
 0xa60   : > { %v3767_v60 = vmul.f32 %v6970_v59, %v9049_v1  ;;  %v3766_v3 = vmul.f32 %v6970_v59, %v9045_v40  ;;  %6388 = vmatprep.subr.bf16.mxu1 %v6696_v22 }
 0xa61   : > { %6389 = vmatpush3.bf16.msra.mxu1 %v6696_v22 }
 0xa62   : > { %v3793_v12 = vpack.c.bf16 %v3769_v19, %v3767_v60  ;;  %v3792_v33 = vpack.c.bf16 %v3768_v53, %v3766_v3 }
 0xa64   : > { %3891 = vmatmul.mubr.bf16.gmra.mxu1 %v3788_v29 }
 0xa65   : > { %3898 = vmatprep.mubr.bf16.mxu1 %v3791_v52 }
 0xa6c   : > { %3899 = vmatmul.mubr.bf16.gmra.mxu1 %v3790_v34 }
 0xa6d   : > { %3906 = vmatprep.mubr.bf16.mxu1 %v3793_v12 }
 0xa74   : > { %3907 = vmatmul.mubr.bf16.gmra.mxu1 %v3792_v33 }
 0xa85   : > { %v3716_v50 = vpop.xlane.xlu0 %3715  ;;  %v3719_v5 = vpop.xlane.xlu1 %3718 }
 0xa86   : > { %6971 = vrcp.f32 %v3716_v50 }
 0xa87   : > { %6973 = vrcp.f32 %v3719_v5 }
 0xa89   : > { %v3722_v38 = vpop.xlane.xlu0 %3721  ;;  %v3731_v11 = vpop.xlane.xlu1 %3730 }
 0xa8a   : > { %6975 = vrcp.f32 %v3722_v38 }
 0xa8d   : > { %v3725_v1 = vpop.xlane.xlu0 %3724 }
 0xa8e   : > { %6977 = vrcp.f32 %v3725_v1 }
 0xa8f   : > { %6979 = vrcp.f32 %v3731_v11  ;;  %v9872_v11 = vld [vmem:[#allocation36_spill] sm:$0xff] }
 0xa93   : > { %v6972_v56 = vpop.eup %6971 }
 0xa94   : > { %v6974_v9 = vpop.eup %6973  ;;  %v3771_v40 = vmul.f32 %v6972_v56, %v9109_v27  ;;  %v3770_v10 = vmul.f32 %v6972_v56, %v9107_v45 }
 0xa95   : > { %v3728_v30 = vpop.xlane.xlu0 %3727  ;;  %v3773_v21 = vmul.f32 %v6974_v9, %v9113_v16  ;;  %v3772_v48 = vmul.f32 %v6974_v9, %v9111_v35 }
 0xa96   : > { %6981 = vrcp.f32 %v3728_v30 }
 0xa97   : > { %v3795_v20 = vpack.c.bf16 %v3773_v21, %v3771_v40  ;;  %v3794_v61 = vpack.c.bf16 %v3772_v48, %v3770_v10  ;;  %v6976_v7 = vpop.eup %6975 }
 0xa98   : > { %v3775_v29 = vmul.f32 %v6976_v7, %v9121_v18  ;;  %v3774_v16 = vmul.f32 %v6976_v7, %v9119_v41 }
 0xa99   : > { %3914 = vmatprep.mubr.bf16.mxu1 %v3795_v20  ;;  %v3734_v37 = vpop.xlane.xlu0 %3733  ;;  %v9873_v20 = vld [vmem:[#allocation44_spill] sm:$0xff] }
 0xa9a   : > { %3915 = vmatmul.mubr.bf16.gmra.mxu1 %v3794_v61  ;;  %6983 = vrcp.f32 %v3734_v37  ;;  %v9874_v37 = vld [vmem:[#allocation48_spill] sm:$0xff] }
 0xa9b   : > { %v6978_v36 = vpop.eup %6977 }
 0xa9c   : > { %v3777_v27 = vmul.f32 %v6978_v36, %v9141_v23  ;;  %v3776_v45 = vmul.f32 %v6978_v36, %v9135_v44  ;;  %v6980_v12 = vpop.eup %6979 }
 0xa9d   : > { %v4343_v52 = vpop.xlane.xlu0 %4342  ;;  %v3737_v63 = vpop.xlane.xlu1 %3736  ;;  %v3781_v22 = vmul.f32 %v6980_v12, %v9129_v28 }
 0xa9e   : > { %v4389_v35 = vsub.f32 %v9023_v39, %v4343_v52  ;;  %v4390_v59 = vsub.f32 %v9031_v24, %v4343_v52  ;;  %6985 = vrcp.f32 %v3737_v63  ;;  %v3797_v58 = vpack.c.bf16 %v3777_v27, %v3775_v29  ;;  %v9875_v29 = vld [vmem:[#allocation47_spill] sm:$0xff]  ;;  %v9876_v63 = vld [vmem:[#allocation50_spill] sm:$0xff] }
 0xa9f   : > { %v3796_v19 = vpack.c.bf16 %v3776_v45, %v3774_v16 }
 0xaa0   : > { %v4421_v0 = vmul.f32 1.442695, %v4389_v35  ;;  %v4423_v60 = vmul.f32 1.442695, %v4390_v59  ;;  %3922 = vmatprep.mubr.bf16.mxu1 %v3797_v58 }
 0xaa1   : > { %v4349_v34 = vpop.xlane.xlu0 %4348  ;;  %v4346_v18 = vpop.xlane.xlu1 %4345 }
 0xaa2   : > { %6987 = vpow2.f32 %v4421_v0  ;;  %v4393_v44 = vsub.f32 %v9055_v62, %v4349_v34  ;;  %v4394_v23 = vsub.f32 %v9061_v6, %v4349_v34  ;;  %3923 = vmatmul.mubr.bf16.gmra.mxu1 %v3796_v19  ;;  %v4391_v41 = vsub.f32 %v9039_v26, %v4346_v18 }
 0xaa3   : > { %v6982_v39 = vpop.eup %6981  ;;  %6989 = vpow2.f32 %v4423_v60  ;;  %v4392_v24 = vsub.f32 %v9047_v43, %v4346_v18  ;;  %v3780_v6 = vmul.f32 %v6980_v12, %v9123_v55 }
 0xaa4   : > { %v4429_v53 = vmul.f32 1.442695, %v4393_v44  ;;  %v4425_v3 = vmul.f32 1.442695, %v4391_v41  ;;  %v3779_v33 = vmul.f32 %v6982_v39, %v9155_v4  ;;  %v3778_v62 = vmul.f32 %v6982_v39, %v9153_v47 }
 0xaa5   : > { %v4427_v31 = vmul.f32 1.442695, %v4392_v24  ;;  %v4355_v50 = vpop.xlane.xlu0 %4354  ;;  %v4352_v5 = vpop.xlane.xlu1 %4351  ;;  %v4431_v38 = vmul.f32 1.442695, %v4394_v23 }
 0xaa6   : > { %v4397_v26 = vsub.f32 %v9067_v14, %v4355_v50  ;;  %v4398_v1 = vsub.f32 %v9073_v57, %v4355_v50  ;;  %v4395_v43 = vsub.f32 %v9063_v51, %v4352_v5  ;;  %6991 = vpow2.f32 %v4429_v53 }
 0xaa7   : > { %v4396_v56 = vsub.f32 %v9872_v11, %v4352_v5  ;;  %v3799_v4 = vpack.c.bf16 %v3781_v22, %v3779_v33  ;;  %v3798_v9 = vpack.c.bf16 %v3780_v6, %v3778_v62  ;;  %6993 = vpow2.f32 %v4425_v3  ;;  %v6984_v28 = vpop.eup %6983 }
 0xaa8   : > { %v4437_v40 = vmul.f32 1.442695, %v4397_v26  ;;  %v4433_v10 = vmul.f32 1.442695, %v4395_v43  ;;  %6995 = vpow2.f32 %v4427_v31  ;;  %v4439_v14 = vmul.f32 1.442695, %v4398_v1 }
 0xaa9   : > { %v4435_v47 = vmul.f32 1.442695, %v4396_v56  ;;  %3930 = vmatprep.mubr.bf16.mxu1 %v3799_v4  ;;  %v4361_v55 = vpop.xlane.xlu0 %4360  ;;  %v4358_v30 = vpop.xlane.xlu1 %4357  ;;  %6997 = vpow2.f32 %v4431_v38  ;;  %v3783_v36 = vmul.f32 %v6984_v28, %v9874_v37  ;;  %v3782_v27 = vmul.f32 %v6984_v28, %v9875_v29 }
 0xaaa   : > { %v4401_v57 = vsub.f32 %v9091_v25, %v4361_v55  ;;  %3931 = vmatmul.mubr.bf16.gmra.mxu1 %v3798_v9  ;;  %v4399_v51 = vsub.f32 %v9079_v13, %v4358_v30  ;;  %6999 = vpow2.f32 %v4437_v40  ;;  %v4402_v48 = vsub.f32 %v9097_v42, %v4361_v55  ;;  %v9877_v13 = vld [vmem:[#allocation49_spill] sm:$0xff]  ;;  %v9878_v55 = vld [vmem:[#allocation39_spill] sm:$0xff] }
 0xaab   : > { %v6986_v21 = vpop.eup %6985  ;;  %v4400_v61 = vsub.f32 %v9873_v20, %v4358_v30  ;;  %7001 = vpow2.f32 %v4433_v10  ;;  %v9879_v30 = vld [vmem:[#allocation38_spill] sm:$0xff] }
 0xaac   : > { %v4441_v7 = vmul.f32 1.442695, %v4399_v51  ;;  %7003 = vpow2.f32 %v4435_v47  ;;  %v3785_v16 = vmul.f32 %v6986_v21, %v9876_v63  ;;  %v3784_v35 = vmul.f32 %v6986_v21, %v9877_v13  ;;  %v9346_v51 = vpop.f32.mrf.mxu1 }
 0xaad   : > { %v4443_v45 = vmul.f32 1.442695, %v4400_v61  ;;  %v9282_v52 = vpop.xlane.xlu0 %4366  ;;  %v4364_v25 = vpop.xlane.xlu1 %4363  ;;  %7005 = vpow2.f32 %v4439_v14  ;;  %v4445_v59 = vmul.f32 1.442695, %v4401_v57  ;;  %v4447_v19 = vmul.f32 1.442695, %v4402_v48 }
 0xaae   : > { %v4403_v42 = vsub.f32 %v9101_v49, %v4364_v25  ;;  %v4404_v0 = vsub.f32 %v9103_v54, %v4364_v25  ;;  %v3801_v60 = vpack.c.bf16 %v3785_v16, %v3783_v36  ;;  %v3800_v34 = vpack.c.bf16 %v3784_v35, %v3782_v27  ;;  %v9880_v14 = vld [vmem:[#allocation43_spill] sm:$0xff]  ;;  %v9881_v48 = vld [vmem:[#allocation45_spill] sm:$0xff]  ;;  %v9882_v25 = vld [vmem:[#allocation46_spill] sm:$0xff] }
 0xaaf   : > { %v9287_v58 = vpop.eup %6987  ;;  %7007 = vpow2.f32 %v4441_v7  ;;  %v4405_v21 = vsub.f32 %v9105_v2, %v9282_v52  ;;  %v4406_v20 = vsub.f32 %v9881_v48, %v9282_v52  ;;  %v9353_v7 = vpop.f32.mrf.mxu1 }
 0xab0   : > { %v9290_v18 = vpop.eup %6989  ;;  %v4449_v12 = vmul.f32 1.442695, %v4403_v42  ;;  %7009 = vpow2.f32 %v4443_v45  ;;  %v4451_v44 = vmul.f32 1.442695, %v4404_v0  ;;  %3938 = vmatprep.mubr.bf16.mxu1 %v3801_v60  ;;  %v9885_v60 = vld [vmem:[#allocation51_spill] sm:$0xff] }
 0xab1   : > { %v4373_v23 = vpop.xlane.xlu0 %4372  ;;  %v4485_v41 = vadd.f32 %v9290_v18, %v9287_v58  ;;  %7011 = vpow2.f32 %v4445_v59  ;;  %v4370_v47 = vpop.xlane.xlu1 %4369  ;;  %v4453_v29 = vmul.f32 1.442695, %v4405_v21  ;;  %v4455_v45 = vmul.f32 1.442695, %v4406_v20  ;;  %v9883_v59 = vld [vmem:[#allocation53_spill] sm:$0xff] }
 0xab2   : > { %3939 = vmatmul.mubr.bf16.gmra.mxu1 %v3800_v34  ;;  %7013 = vpow2.f32 %v4447_v19  ;;  %v4409_v61 = vsub.f32 %v9149_v15, %v4373_v23  ;;  %v4410_v37 = vsub.f32 %v9151_v17, %v4373_v23  ;;  %v4407_v27 = vsub.f32 %v9131_v8, %v4370_v47  ;;  %v9359_v2 = vpop.f32.mrf.mxu1  ;;  %v9884_v19 = vld [vmem:[#allocation54_spill] sm:$0xff] }
 0xab3   : > { %4486 = vadd.xlane.f32.xlu1 %v4485_v41  ;;  %v9294_v49 = vpop.eup %6991  ;;  %7015 = vpow2.f32 %v4449_v12  ;;  %v4408_v63 = vsub.f32 %v9882_v25, %v4370_v47  ;;  %v9889_v47 = vld [vmem:[#allocation55_spill] sm:$0xff] }
 0xab4   : > { %v9296_v54 = vpop.eup %6993  ;;  %7017 = vpow2.f32 %v4451_v44  ;;  %v4461_v16 = vmul.f32 1.442695, %v4409_v61  ;;  %v4463_v35 = vmul.f32 1.442695, %v4410_v37  ;;  %v4457_v15 = vmul.f32 1.442695, %v4407_v27 }
 0xab5   : > { %v9298_v39 = vpop.xlane.xlu0 %4378  ;;  %v9300_v24 = vpop.eup %6995  ;;  %7019 = vpow2.f32 %v4453_v29  ;;  %v4459_v17 = vmul.f32 1.442695, %v4408_v63  ;;  %v9886_v44 = vld [vmem:[#allocation52_spill] sm:$0xff] }
 0xab6   : > { %v9302_v53 = vpop.eup %6997  ;;  %v4488_v3 = vadd.f32 %v9300_v24, %v9296_v54  ;;  %v4376_v57 = vpop.xlane.xlu1 %4375  ;;  %7021 = vpow2.f32 %v4455_v45  ;;  %v4413_v34 = vsub.f32 %v9885_v60, %v9298_v39 }
 0xab7   : > { %v9306_v33 = vpop.eup %6999  ;;  %v4491_v62 = vadd.f32 %v9302_v53, %v9294_v49  ;;  %v4411_v13 = vsub.f32 %v9159_v32, %v4376_v57  ;;  %v4412_v52 = vsub.f32 %v9167_v46, %v4376_v57  ;;  %7023 = vpow2.f32 %v4461_v16  ;;  %v9366_v32 = vpop.f32.mrf.mxu1 }
 0xab8   : > { %v9308_v31 = vpop.eup %7001  ;;  %4489 = vadd.xlane.f32.xlu1 %v4488_v3  ;;  %7025 = vpow2.f32 %v4463_v35  ;;  %v4414_v46 = vsub.f32 %v9886_v44, %v9298_v39  ;;  %v9887_v3 = vld [vmem:[#allocation57_spill] sm:$0xff] }
 0xab9   : > { %v9310_v50 = vpop.xlane.xlu0 %4384  ;;  %v9312_v5 = vpop.eup %7003  ;;  %v4465_v12 = vmul.f32 1.442695, %v4411_v13  ;;  %v4467_v23 = vmul.f32 1.442695, %v4412_v52  ;;  %7027 = vpow2.f32 %v4457_v15 }
 0xaba   : > { %v9314_v22 = vpop.eup %7005  ;;  %v4494_v6 = vadd.f32 %v9312_v5, %v9308_v31  ;;  %v4382_v36 = vpop.xlane.xlu1 %4381  ;;  %7029 = vpow2.f32 %v4459_v17 }
 0xabb   : > { %v4497_v11 = vadd.f32 %v9314_v22, %v9306_v33  ;;  %v4415_v42 = vsub.f32 %v9883_v59, %v4382_v36  ;;  %v4416_v0 = vsub.f32 %v9884_v19, %v4382_v36  ;;  %7031 = vpow2.f32 %v4465_v12 }
 0xabc   : > { %v9320_v38 = vpop.eup %7007  ;;  %4492 = vadd.xlane.f32.xlu1 %v4491_v62  ;;  %4495 = vadd.xlane.f32.xlu0 %v4494_v6  ;;  %7033 = vpow2.f32 %v4467_v23 }
 0xabd   : > { %v4628_v26 = vpop.permute.xlu0 %4627  ;;  %v9322_v1 = vpop.eup %7009  ;;  %v4473_v41 = vmul.f32 1.442695, %v4415_v42  ;;  %v4475_v6 = vmul.f32 1.442695, %v4416_v0 }
 0xabe   : > { %6144 = vmatprep.subr.bf16.mxu1 %v4628_v26  ;;  %v9324_v43 = vpop.eup %7011  ;;  %v4500_v56 = vadd.f32 %v9322_v1, %v9320_v38  ;;  %v4388_v8 = vpop.xlane.xlu1 %4387  ;;  %v9888_v26 = vld [vmem:[#allocation58_spill] sm:$0xff] }
 0xabf   : > { %v9330_v4 = vpop.eup %7013  ;;  %v4419_v62 = vsub.f32 %v9887_v3, %v4388_v8  ;;  %7035 = vpow2.f32 %v4473_v41 }
 0xac0   : > { %v9332_v9 = vpop.eup %7015  ;;  %4498 = vadd.xlane.f32.xlu1 %v4497_v11  ;;  %4501 = vadd.xlane.f32.xlu0 %v4500_v56  ;;  %v4503_v10 = vadd.f32 %v9330_v4, %v9324_v43  ;;  %v4420_v11 = vsub.f32 %v9888_v26, %v4388_v8  ;;  %v4469_v56 = vmul.f32 1.442695, %v4413_v34  ;;  %7037 = vpow2.f32 %v4475_v6 }
 0xac1   : > { %v9334_v40 = vpop.eup %7017  ;;  %v4481_v39 = vmul.f32 1.442695, %v4419_v62 }
 0xac2   : > { %v4506_v28 = vadd.f32 %v9334_v40, %v9332_v9  ;;  %v4483_v57 = vmul.f32 1.442695, %v4420_v11  ;;  %7039 = vpow2.f32 %v4469_v56  ;;  %v9380_v20 = vpop.eup %7019 }
 0xac3   : > { %v9382_v37 = vpop.eup %7021 }
 0xac4   : > { %4504 = vadd.xlane.f32.xlu1 %v4503_v10  ;;  %4507 = vadd.xlane.f32.xlu0 %v4506_v28  ;;  %v9372_v10 = vpop.f32.mrf.mxu1  ;;  %v4471_v28 = vmul.f32 1.442695, %v4414_v46  ;;  %v9384_v36 = vpop.eup %7023  ;;  %v4509_v45 = vadd.f32 %v9382_v37, %v9380_v20 }
 0xac5   : > { %v9388_v27 = vpop.eup %7025 }
 0xac6   : > { %v9378_v21 = vpop.f32.mrf.mxu1  ;;  %7041 = vpow2.f32 %v4471_v28  ;;  %v4515_v52 = vadd.f32 %v9388_v27, %v9384_v36 }
 0xac7   : > { %7043 = vpow2.f32 %v4481_v39 }
 0xac8   : > { %7045 = vpow2.f32 %v4483_v57  ;;  %v9386_v29 = vpop.f32.mrf.mxu1 }
 0xaca   : > { %v9398_v16 = vpop.f32.mrf.mxu1 }
 0xacb   : > { %9891 = vst [vmem:[#allocation36_spill] sm:$0xff] %v9398_v16 }
 0xacc   : > { %v9412_v17 = vpop.f32.mrf.mxu1 }
 0xacd   : > { %9892 = vst [vmem:[#allocation44_spill] sm:$0xff] %v9412_v17 }
 0xace   : > { %v9424_v12 = vpop.f32.mrf.mxu1 }
 0xacf   : > { %9893 = vst [vmem:[#allocation48_spill] sm:$0xff] %v9424_v12 }
 0xad0   : > { %v9434_v3 = vpop.f32.mrf.mxu1 }
 0xad1   : > { %9894 = vst [vmem:[#allocation47_spill] sm:$0xff] %v9434_v3 }
 0xad2   : > { %v9438_v6 = vpop.f32.mrf.mxu1 }
 0xad3   : > { %9895 = vst [vmem:[#allocation50_spill] sm:$0xff] %v9438_v6 }
 0xad4   : > { %v9440_v26 = vpop.f32.mrf.mxu1 }
 0xad5   : > { %4613 = vrot.lane.b32.xlu1 %v9878_v55, %s7401_s20  ;;  %v4417_v55 = vsub.f32 %v9889_v47, %v9310_v50  ;;  %9896 = vst [vmem:[#allocation49_spill] sm:$0xff] %v9440_v26  ;;  %v4612_v47 = vpop.permute.xlu1 %4611 }
 0xad6   : > { %v9442_v11 = vpop.f32.mrf.mxu1 }
 0xad7   : > { %v4477_v48 = vmul.f32 1.442695, %v4417_v55  ;;  %9897 = vst [vmem:[#allocation39_spill] sm:$0xff] %v9442_v11 }
 0xad8   : > { %v9444_v56 = vpop.f32.mrf.mxu1 }
 0xad9   : > { %4597 = vrot.lane.b32.xlu1 %v9879_v30, %s7401_s20  ;;  %v9890_v30 = vld [vmem:[#allocation56_spill] sm:$0xff]  ;;  %7047 = vpow2.f32 %v4477_v48  ;;  %9898 = vst [vmem:[#allocation38_spill] sm:$0xff] %v9444_v56 }
 0xada   : > { %4599 = vrot.lane.b32.xlu0 %v9880_v14, %s7401_s20  ;;  %v4418_v14 = vsub.f32 %v9890_v30, %v9310_v50  ;;  %v9390_v50 = vpop.eup %7027  ;;  %v9446_v28 = vpop.f32.mrf.mxu1  ;;  %s9617_s20 = scalar_lea.sflag [#allocation6], %s420_s2 }
 0xadb   : > { %v9394_v25 = vpop.eup %7029  ;;  %9899 = vst [vmem:[#allocation43_spill] sm:$0xff] %v9446_v28  ;;  %v4610_v30 = vpop.permute.xlu1 %4609 }
 0xadc   : > { %v4479_v61 = vmul.f32 1.442695, %v4418_v14  ;;  %v9396_v63 = vpop.eup %7031  ;;  %v4512_v15 = vadd.f32 %v9394_v25, %v9390_v50 }
 0xadd   : > { %v9400_v13 = vpop.eup %7033 }
 0xade   : > { %7049 = vpow2.f32 %v4479_v61  ;;  %v9402_v35 = vpop.eup %7035  ;;  %v4518_v8 = vadd.f32 %v9400_v13, %v9396_v63 }
 0xadf   : > { %v9408_v59 = vpop.eup %7037 }
 0xae0   : > { %v9410_v42 = vpop.eup %7039  ;;  %v4524_v60 = vadd.f32 %v9408_v59, %v9402_v35 }
 0xae1   : > { %v9414_v19 = vpop.eup %7041 }
 0xae2   : > { %v9416_v0 = vpop.eup %7043  ;;  %v4521_v46 = vadd.f32 %v9414_v19, %v9410_v42 }
 0xae3   : > { %v9422_v34 = vpop.eup %7045 }
 0xae4   : > { %v4530_v23 = vadd.f32 %v9422_v34, %v9416_v0 }
 0xae6   : > { %v9426_v44 = vpop.eup %7047 }
 0xaeb   : > { %v9432_v41 = vpop.eup %7049 }
 0xaec   : > { %v4527_v62 = vadd.f32 %v9432_v41, %v9426_v44 }
 0xaf9   : > { %4510 = vadd.xlane.f32.xlu0 %v4509_v45  ;;  %v4626_v45 = vpop.permute.xlu0 %4625 }
 0xafd   : > { %4516 = vadd.xlane.f32.xlu0 %v4515_v52  ;;  %4513 = vadd.xlane.f32.xlu1 %v4512_v15 }
 0xb01   : > { %4519 = vadd.xlane.f32.xlu0 %v4518_v8  ;;  %4525 = vadd.xlane.f32.xlu1 %v4524_v60  ;;  %v4622_v8 = vpop.permute.xlu1 %4621 }
 0xb05   : > { %4522 = vadd.xlane.f32.xlu0 %v4521_v46  ;;  %4531 = vadd.xlane.f32.xlu1 %v4530_v23  ;;  %v4624_v23 = vpop.permute.xlu0 %4623  ;;  %v4606_v11 = vpop.permute.xlu1 %4605 }
 0xb09   : > { %4528 = vadd.xlane.f32.xlu0 %v4527_v62 }
 0xb1c   : > { %v6054_v55 = vpop.f32.mrf.mxu1 }
 0xb1e   : > { %v6055_v39 = vpop.f32.mrf.mxu1 }
 0xb1f   : > { %v6056_v48 = vadd.f32 %v6055_v39, %v6054_v55  ;;  %v4608_v55 = vpop.permute.xlu0 %4607 }
 0xb20   : > { %v6057_v14 = vpop.f32.mrf.mxu1 }
 0xb22   : > { %v6058_v57 = vpop.f32.mrf.mxu1 }
 0xb23   : > { %v6059_v61 = vadd.f32 %v6058_v57, %v6057_v14  ;;  %v4618_v14 = vpop.permute.xlu1 %4617 }
 0xb24   : > { %v6060_v52 = vpop.f32.mrf.mxu1 }
 0xb25   : > { %v3947_v15 = vpack.c.bf16 %v6059_v61, %v6056_v48 }
 0xb26   : > { %v6061_v60 = vpop.f32.mrf.mxu1 }
 0xb27   : > { %6390 = vmatprep.mubr.msk.bf16.mxu1 %vm1746_vm0, %v3947_v15  ;;  %v6062_v56 = vadd.f32 %v6061_v60, %v6060_v52  ;;  %v4620_v52 = vpop.permute.xlu0 %4619 }
 0xb28   : > { %v6063_v46 = vpop.f32.mrf.mxu1 }
 0xb2a   : > { %v6064_v62 = vpop.f32.mrf.mxu1 }
 0xb2b   : > { %v6065_v28 = vadd.f32 %v6064_v62, %v6063_v46 }
 0xb2c   : > { %v6066_v26 = vpop.f32.mrf.mxu1 }
 0xb2d   : > { %v3948_v6 = vpack.c.bf16 %v6065_v28, %v6062_v56  ;;  %v4602_v56 = vpop.permute.xlu1 %4601 }
 0xb2e   : > { %v6067_v3 = vpop.f32.mrf.mxu1 }
 0xb2f   : > { %6391 = vmatmul.mubr.msk.bf16.vlgmr.msra.gmra.mxu1 %vm1746_vm0, %v3948_v6  ;;  %v6068_v48 = vadd.f32 %v6067_v3, %v6066_v26 }
 0xb30   : > { %6145 = vmatpush3.bf16.msra.mxu1 %v4612_v47  ;;  %v6069_v39 = vpop.f32.mrf.mxu1 }
 0xb31   : > { %6146 = vmatprep.subr.bf16.mxu1 %v4626_v45  ;;  %v4604_v45 = vpop.permute.xlu0 %4603 }
 0xb32   : > { %v6070_v57 = vpop.f32.mrf.mxu1 }
 0xb33   : > { %v6071_v61 = vadd.f32 %v6070_v57, %v6069_v39 }
 0xb34   : > { %6147 = vmatpush3.bf16.msra.mxu1 %v4610_v30  ;;  %v6072_v15 = vpop.f32.mrf.mxu1 }
 0xb35   : > { %v3949_v12 = vpack.c.bf16 %v6071_v61, %v6068_v48  ;;  %6148 = vmatprep.subr.bf16.mxu1 %v4624_v23  ;;  %v4616_v26 = vpop.permute.xlu0 %4615 }
 0xb36   : > { %v6073_v60 = vpop.f32.mrf.mxu1 }
 0xb37   : > { %6394 = vmatprep.mubr.msk.bf16.mxu1 %vm1746_vm0, %v3949_v12  ;;  %v6074_v47 = vadd.f32 %v6073_v60, %v6072_v15 }
 0xb38   : > { %6149 = vmatpush3.bf16.msra.mxu1 %v4608_v55  ;;  %v6075_v28 = vpop.f32.mrf.mxu1 }
 0xb39   : > { %6150 = vmatprep.subr.bf16.mxu1 %v4622_v8 }
 0xb3a   : > { %v6076_v6 = vpop.f32.mrf.mxu1 }
 0xb3b   : > { %v6077_v46 = vadd.f32 %v6076_v6, %v6075_v28 }
 0xb3c   : > { %6151 = vmatpush3.bf16.msra.mxu1 %v4606_v11  ;;  %v4487_v62 = vpop.xlane.xlu1 %4486 }
 0xb3d   : > { %v3950_v3 = vpack.c.bf16 %v6077_v46, %v6074_v47  ;;  %6152 = vmatprep.subr.bf16.mxu1 %v4620_v52 }
 0xb3f   : > { %6395 = vmatmul.mubr.msk.bf16.gmra.mxu1 %vm1746_vm0, %v3950_v3 }
 0xb40   : > { %6153 = vmatpush3.bf16.msra.mxu1 %v4604_v45 }
 0xb41   : > { %6154 = vmatprep.subr.bf16.mxu1 %v4618_v14  ;;  %v4490_v30 = vpop.xlane.xlu1 %4489 }
 0xb42   : > { %7051 = vrcp.f32 %v4490_v30 }
 0xb43   : > { %7053 = vrcp.f32 %v4487_v62 }
 0xb44   : > { %6155 = vmatpush3.bf16.msra.mxu1 %v4602_v56 }
 0xb45   : > { %6156 = vmatprep.subr.bf16.mxu1 %v4616_v26  ;;  %v4496_v12 = vpop.xlane.xlu0 %4495  ;;  %v4493_v23 = vpop.xlane.xlu1 %4492 }
 0xb46   : > { %7055 = vrcp.f32 %v4496_v12 }
 0xb47   : > { %7057 = vrcp.f32 %v4493_v23 }
 0xb49   : > { %v4502_v55 = vpop.xlane.xlu0 %4501  ;;  %v4499_v8 = vpop.xlane.xlu1 %4498 }
 0xb4a   : > { %7059 = vrcp.f32 %v4502_v55 }
 0xb4b   : > { %7061 = vrcp.f32 %v4499_v8 }
 0xb4d   : > { %v4508_v39 = vpop.xlane.xlu0 %4507  ;;  %v4505_v57 = vpop.xlane.xlu1 %4504 }
 0xb4e   : > { %7063 = vrcp.f32 %v4508_v39 }
 0xb4f   : > { %7065 = vrcp.f32 %v4505_v57 }
 0xb51   : > { %v4600_v48 = vpop.permute.xlu0 %4599  ;;  %v4614_v61 = vpop.permute.xlu1 %4613 }
 0xb52   : > { %6157 = vmatpush3.bf16.msra.mxu1 %v4600_v48 }
 0xb53   : > { %6158 = vmatprep.subr.bf16.mxu1 %v4614_v61 }
 0xb55   : > { %v4598_v11 = vpop.permute.xlu1 %4597 }
 0xb56   : > { %6159 = vmatpush3.bf16.msra.mxu1 %v4598_v11 }
 0xb5a   : > { %v6078_v15 = vpop.f32.mrf.mxu1 }
 0xb5c   : > { %v6079_v52 = vpop.f32.mrf.mxu1 }
 0xb5d   : > { %v6080_v28 = vadd.f32 %v6079_v52, %v6078_v15 }
 0xb5e   : > { %v6081_v60 = vpop.f32.mrf.mxu1 }
 0xb60   : > { %v6082_v14 = vpop.f32.mrf.mxu1 }
 0xb61   : > { %v6083_v6 = vadd.f32 %v6082_v14, %v6081_v60 }
 0xb62   : > { %v6084_v56 = vpop.f32.mrf.mxu1 }
 0xb63   : > { %v3951_v47 = vpack.c.bf16 %v6083_v6, %v6080_v28 }
 0xb64   : > { %v6085_v46 = vpop.f32.mrf.mxu1 }
 0xb65   : > { %6398 = vmatprep.mubr.msk.bf16.mxu1 %vm1746_vm0, %v3951_v47  ;;  %v6086_v26 = vadd.f32 %v6085_v46, %v6084_v56  ;;  %v7052_v47 = vpop.eup %7051 }
 0xb66   : > { %v6087_v45 = vpop.f32.mrf.mxu1  ;;  %v7054_v56 = vpop.eup %7053  ;;  %v4552_v62 = vmul.f32 %v7052_v47, %v9300_v24 }
 0xb67   : > { %v4550_v12 = vmul.f32 %v7054_v56, %v9290_v18  ;;  %v4549_v24 = vmul.f32 %v7054_v56, %v9287_v58 }
 0xb68   : > { %v6088_v3 = vpop.f32.mrf.mxu1 }
 0xb69   : > { %v6089_v17 = vadd.f32 %v6088_v3, %v6087_v45  ;;  %v7056_v3 = vpop.eup %7055 }
 0xb6a   : > { %v6090_v48 = vpop.f32.mrf.mxu1  ;;  %v4556_v8 = vmul.f32 %v7056_v3, %v9312_v5 }
 0xb6b   : > { %v3952_v61 = vpack.c.bf16 %v6089_v17, %v6086_v26  ;;  %v7058_v26 = vpop.eup %7057 }
 0xb6c   : > { %v6091_v11 = vpop.f32.mrf.mxu1  ;;  %v4554_v55 = vmul.f32 %v7058_v26, %v9302_v53  ;;  %v7060_v18 = vpop.eup %7059 }
 0xb6d   : > { %6399 = vmatmul.mubr.msk.bf16.gmra.mxu1 %vm1746_vm0, %v3952_v61  ;;  %v6092_v52 = vadd.f32 %v6091_v11, %v6090_v48  ;;  %v4551_v48 = vmul.f32 %v7052_v47, %v9296_v54  ;;  %v4555_v54 = vmul.f32 %v7056_v3, %v9308_v31  ;;  %v4560_v53 = vmul.f32 %v7060_v18, %v9322_v1 }
 0xb6e   : > { %v6093_v16 = vpop.f32.mrf.mxu1  ;;  %v4559_v56 = vmul.f32 %v7060_v18, %v9320_v38 }
 0xb6f   : > { %v4581_v61 = vpack.c.bf16 %v4551_v48, %v4549_v24 }
 0xb70   : > { %v6094_v15 = vpop.f32.mrf.mxu1 }
 0xb71   : > { %v6095_v60 = vadd.f32 %v6094_v15, %v6093_v16  ;;  %v4582_v16 = vpack.c.bf16 %v4552_v62, %v4550_v12  ;;  %v4584_v15 = vpack.c.bf16 %v4556_v8, %v4554_v55 }
 0xb72   : > { %v6096_v14 = vpop.f32.mrf.mxu1 }
 0xb73   : > { %v3953_v28 = vpack.c.bf16 %v6095_v60, %v6092_v52  ;;  %v7062_v52 = vpop.eup %7061 }
 0xb74   : > { %v6097_v6 = vpop.f32.mrf.mxu1  ;;  %v4558_v39 = vmul.f32 %v7062_v52, %v9314_v22  ;;  %v7064_v5 = vpop.eup %7063 }
 0xb75   : > { %6402 = vmatprep.mubr.msk.bf16.mxu1 %vm1746_vm0, %v3953_v28  ;;  %v6098_v46 = vadd.f32 %v6097_v6, %v6096_v14  ;;  %v4553_v28 = vmul.f32 %v7058_v26, %v9294_v49  ;;  %v7066_v6 = vpop.eup %7065  ;;  %v4564_v31 = vmul.f32 %v7064_v5, %v9334_v40 }
 0xb76   : > { %v6099_v30 = vpop.f32.mrf.mxu1  ;;  %v4586_v57 = vpack.c.bf16 %v4560_v53, %v4558_v39  ;;  %v4562_v49 = vmul.f32 %v7066_v6, %v9330_v4  ;;  %v4561_v12 = vmul.f32 %v7066_v6, %v9324_v43  ;;  %v6697_v53 = vld [vmem:[#allocation12 + $0x38] sm:$0xff]  }
 0xb77   : > { %v4583_v58 = vpack.c.bf16 %v4555_v54, %v4553_v28  ;;  %6406 = vmatprep.subr.bf16.mxu0 %v6697_v53  ;;  %6426 = vmatprep.subr.bf16.mxu1 %v6697_v53 }
 0xb78   : > { %v6100_v17 = vpop.f32.mrf.mxu1  ;;  %v4588_v1 = vpack.c.bf16 %v4564_v31, %v4562_v49  ;;  %6407 = vmatpush3.bf16.msra.mxu0 %v6697_v53 }
 0xb79   : > { %v6101_v45 = vadd.f32 %v6100_v17, %v6099_v30  ;;  %v4557_v30 = vmul.f32 %v7062_v52, %v9306_v33  ;;  %v4563_v33 = vmul.f32 %v7064_v5, %v9332_v9 }
 0xb7b   : > { %v3954_v23 = vpack.c.bf16 %v6101_v45, %v6098_v46  ;;  %v4585_v22 = vpack.c.bf16 %v4559_v56, %v4557_v30  ;;  %v4587_v40 = vpack.c.bf16 %v4563_v33, %v4561_v12  ;;  %v9903_v56 = vld [vmem:[#allocation24_spill] sm:$0xff]  ;;  %v9906_v12 = vld [vmem:[#allocation29_spill] sm:$0xff] }
 0xb7c   : > { %v3254_v49 = vadd.f32 %v9366_v32, %v9903_v56  ;;  %v3278_v33 = vadd.f32 %v9386_v29, %v9906_v12 }
 0xb7d   : > { %6403 = vmatmul.mubr.msk.bf16.gmra.mxu1 %vm1746_vm0, %v3954_v23 }
 0xb7e   : > { %4677 = vmatprep.mubr.bf16.mxu1 %v4582_v16 }
 0xb82   : > { %v4511_v11 = vpop.xlane.xlu0 %4510 }
 0xb85   : > { %4678 = vmatmul.mubr.bf16.vlgmr.msra.gmra.mxu1 %v4581_v61 }
 0xb86   : > { %4685 = vmatprep.mubr.bf16.mxu1 %v4584_v15  ;;  %v4517_v60 = vpop.xlane.xlu0 %4516  ;;  %v4514_v14 = vpop.xlane.xlu1 %4513  ;;  %6428 = vmatpush3.bf16.msra.mxu1 %v6697_v53  ;;  %v9921_v53 = vld [vmem:[#allocation33_spill] sm:$0xff] }
 0xb87   : > { %7067 = vrcp.f32 %v4514_v14 }
 0xb88   : > { %7069 = vrcp.f32 %v4511_v11 }
 0xb8a   : > { %v4520_v47 = vpop.xlane.xlu0 %4519  ;;  %v4526_v45 = vpop.xlane.xlu1 %4525 }
 0xb8b   : > { %7071 = vrcp.f32 %v4520_v47 }
 0xb8c   : > { %7073 = vrcp.f32 %v4517_v60 }
 0xb8d   : > { %4686 = vmatmul.mubr.bf16.gmra.mxu1 %v4583_v58  ;;  %v9901_v58 = vld [vmem:[#allocation40_spill] sm:$0xff] }
 0xb8e   : > { %4693 = vmatprep.mubr.bf16.mxu1 %v4586_v57  ;;  %v4523_v17 = vpop.xlane.xlu0 %4522  ;;  %v4532_v48 = vpop.xlane.xlu1 %4531  ;;  %v9902_v57 = vld [vmem:[#allocation41_spill] sm:$0xff] }
 0xb8f   : > { %7075 = vrcp.f32 %v4523_v17  ;;  %v3262_v6 = vadd.f32 %v9359_v2, %v9902_v57 }
 0xb90   : > { %7077 = vrcp.f32 %v4526_v45 }
 0xb92   : > { %v4529_v16 = vpop.xlane.xlu0 %4528 }
 0xb93   : > { %7079 = vrcp.f32 %v4529_v16 }
 0xb94   : > { %v7068_v62 = vpop.eup %7067  ;;  %7081 = vrcp.f32 %v4532_v48  ;;  %v9910_v48 = vld [vmem:[#allocation44_spill] sm:$0xff] }
 0xb95   : > { %4694 = vmatmul.mubr.bf16.gmra.mxu1 %v4585_v22  ;;  %v7070_v46 = vpop.eup %7069  ;;  %v4568_v38 = vmul.f32 %v7068_v62, %v9394_v25  ;;  %v4567_v55 = vmul.f32 %v7068_v62, %v9390_v50  ;;  %v9905_v62 = vld [vmem:[#allocation32_spill] sm:$0xff] }
 0xb96   : > { %4701 = vmatprep.mubr.bf16.mxu1 %v4588_v1  ;;  %v4566_v4 = vmul.f32 %v7070_v46, %v9382_v37  ;;  %v4565_v9 = vmul.f32 %v7070_v46, %v9380_v20  ;;  %v9904_v1 = vld [vmem:[#allocation28_spill] sm:$0xff]  ;;  %v3267_v46 = vadd.f32 %v9378_v21, %v9905_v62 }
 0xb98   : > { %v4590_v23 = vpack.c.bf16 %v4568_v38, %v4566_v4  ;;  %v7072_v3 = vpop.eup %7071  ;;  %v4589_v8 = vpack.c.bf16 %v4567_v55, %v4565_v9  ;;  %v9907_v4 = vld [vmem:[#allocation26_spill] sm:$0xff]  ;;  %v9912_v9 = vld [vmem:[#allocation48_spill] sm:$0xff] }
 0xb99   : > { %v7074_v26 = vpop.eup %7073  ;;  %v4572_v43 = vmul.f32 %v7072_v3, %v9400_v13  ;;  %v4571_v11 = vmul.f32 %v7072_v3, %v9396_v63 }
 0xb9a   : > { %v4570_v25 = vmul.f32 %v7074_v26, %v9388_v27  ;;  %v4569_v50 = vmul.f32 %v7074_v26, %v9384_v36  ;;  %v9909_v26 = vld [vmem:[#allocation25_spill] sm:$0xff] }
 0xb9b   : > { %v3291_v21 = vadd.f32 %v9910_v48, %v9909_v26 }
 0xb9c   : > { %v4592_v37 = vpack.c.bf16 %v4572_v43, %v4570_v25  ;;  %v7076_v24 = vpop.eup %7075  ;;  %v4591_v13 = vpack.c.bf16 %v4571_v11, %v4569_v50  ;;  %v9911_v43 = vld [vmem:[#allocation34_spill] sm:$0xff]  ;;  %v9915_v50 = vld [vmem:[#allocation31_spill] sm:$0xff] }
 0xb9d   : > { %4702 = vmatmul.mubr.bf16.gmra.mxu1 %v4587_v40  ;;  %v7078_v61 = vpop.eup %7077  ;;  %v4574_v18 = vmul.f32 %v7076_v24, %v9414_v19  ;;  %v4573_v60 = vmul.f32 %v7076_v24, %v9410_v42  ;;  %v6698_v42 = vld [vmem:[#allocation12 + $0x30] sm:$0xff]   ;;  %v9908_v40 = vld [vmem:[#allocation36_spill] sm:$0xff]  ;;  %v3283_v25 = vadd.f32 %v9912_v9, %v9911_v43  ;;  %v9914_v24 = vld [vmem:[#allocation47_spill] sm:$0xff] }
 0xb9e   : > { %4709 = vmatprep.mubr.bf16.mxu1 %v4590_v23  ;;  %v4576_v15 = vmul.f32 %v7078_v61, %v9408_v59  ;;  %v4575_v28 = vmul.f32 %v7078_v61, %v9402_v35  ;;  %6408 = vmatprep.subr.bf16.mxu0 %v6698_v42  ;;  %v9900_v35 = vld [vmem:[#allocation42_spill] sm:$0xff]  ;;  %v3270_v23 = vadd.f32 %v9908_v40, %v9907_v4 }
 0xb9f   : > { %6427 = vmatprep.subr.bf16.mxu1 %v6698_v42  ;;  %6409 = vmatpush3.bf16.msra.mxu0 %v6698_v42 }
 0xba0   : > { %v4594_v52 = vpack.c.bf16 %v4576_v15, %v4574_v18  ;;  %v7080_v20 = vpop.eup %7079  ;;  %v4593_v54 = vpack.c.bf16 %v4575_v28, %v4573_v60  ;;  %6429 = vmatpush3.bf16.msra.mxu1 %v6698_v42  ;;  %v9916_v15 = vld [vmem:[#allocation50_spill] sm:$0xff]  ;;  %v9917_v60 = vld [vmem:[#allocation27_spill] sm:$0xff] }
 0xba1   : > { %v7082_v27 = vpop.eup %7081  ;;  %v4578_v14 = vmul.f32 %v7080_v20, %v9432_v41  ;;  %v4577_v36 = vmul.f32 %v7080_v20, %v9426_v44  ;;  %v3251_v44 = vadd.f32 %v9353_v7, %v9901_v58  ;;  %v3275_v7 = vadd.f32 %v9372_v10, %v9904_v1  ;;  %v9922_v42 = vld [vmem:[#allocation38_spill] sm:$0xff]  ;;  %v9923_v58 = vld [vmem:[#allocation37_spill] sm:$0xff] }
 0xba2   : > { %v4580_v63 = vmul.f32 %v7082_v27, %v9422_v34  ;;  %v4579_v59 = vmul.f32 %v7082_v27, %v9416_v0  ;;  %v3259_v34 = vadd.f32 %v9346_v51, %v9900_v35  ;;  %v3310_v35 = vadd.f32 %v9922_v42, %v9921_v53 }
 0xba4   : > { %v4596_v19 = vpack.c.bf16 %v4580_v63, %v4578_v14  ;;  %v4595_v39 = vpack.c.bf16 %v4579_v59, %v4577_v36  ;;  %v9918_v14 = vld [vmem:[#allocation49_spill] sm:$0xff] }
 0xba5   : > { %4710 = vmatmul.mubr.bf16.gmra.mxu1 %v4589_v8  ;;  %v3307_v28 = vadd.f32 %v9918_v14, %v9917_v60 }
 0xba6   : > { %4717 = vmatprep.mubr.bf16.mxu1 %v4592_v37  ;;  %v9913_v37 = vld [vmem:[#allocation30_spill] sm:$0xff] }
 0xba7   : > { %v3294_v61 = vadd.f32 %v9914_v24, %v9913_v37 }
 0xbad   : > { %4718 = vmatmul.mubr.bf16.gmra.mxu1 %v4591_v13  ;;  %v3286_v13 = vadd.f32 %v9916_v15, %v9915_v50 }
 0xbae   : > { %4725 = vmatprep.mubr.bf16.mxu1 %v4594_v52 }
 0xbb5   : > { %4726 = vmatmul.mubr.bf16.gmra.mxu1 %v4593_v54  ;;  %v9919_v54 = vld [vmem:[#allocation35_spill] sm:$0xff] }
 0xbb6   : > { %4733 = vmatprep.mubr.bf16.mxu1 %v4596_v19  ;;  %v9920_v19 = vld [vmem:[#allocation39_spill] sm:$0xff] }
 0xbb7   : > { %v3299_v36 = vadd.f32 %v9920_v19, %v9919_v54 }
 0xbbd   : > { %4734 = vmatmul.mubr.bf16.gmra.mxu1 %v4595_v39 }
 0xbef   : > { %v6392_v41 = vpop.f32.mrf.mxu1 }
 0xbf0   : > { %v9492_v0 = vadd.f32 %v6392_v41, %v3259_v34 }
 0xbf1   : > { %v4029_v5 = vpop.f32.mrf.mxu1 }
 0xbf2   : > { %v9496_v47 = vadd.f32 %v4029_v5, %v3251_v44  ;;  %v9924_v44 = vld [vmem:[#allocation43_spill] sm:$0xff] }
 0xbf3   : > { %v6393_v30 = vpop.f32.mrf.mxu1  ;;  %v3302_v5 = vadd.f32 %v9924_v44, %v9923_v58 }
 0xbf4   : > { %v9500_v31 = vadd.f32 %v6393_v30, %v3262_v6 }
 0xbf5   : > { %v4032_v22 = vpop.f32.mrf.mxu1 }
 0xbf6   : > { %v9502_v51 = vadd.f32 %v4032_v22, %v3254_v49 }
 0xbff   : > { %v6396_v17 = vpop.f32.mrf.mxu1 }
 0xc00   : > { %v9508_v45 = vadd.f32 %v6396_v17, %v3275_v7 }
 0xc01   : > { %v4045_v2 = vpop.f32.mrf.mxu1 }
 0xc02   : > { %v9512_v38 = vadd.f32 %v4045_v2, %v3267_v46 }
 0xc03   : > { %v6397_v32 = vpop.f32.mrf.mxu1 }
 0xc04   : > { %v9516_v3 = vadd.f32 %v6397_v32, %v3278_v33 }
 0xc05   : > { %v4048_v16 = vpop.f32.mrf.mxu1 }
 0xc06   : > { %v9518_v10 = vadd.f32 %v4048_v16, %v3270_v23 }
 0xc2d   : > { %v6400_v55 = vpop.f32.mrf.mxu1 }
 0xc2e   : > { %v9524_v8 = vadd.f32 %v6400_v55, %v3291_v21 }
 0xc2f   : > { %v4061_v29 = vpop.f32.mrf.mxu1 }
 0xc30   : > { %v9528_v11 = vadd.f32 %v4061_v29, %v3283_v25 }
 0xc31   : > { %v6401_v18 = vpop.f32.mrf.mxu1 }
 0xc32   : > { %v9532_v52 = vadd.f32 %v6401_v18, %v3294_v61 }
 0xc33   : > { %v4064_v20 = vpop.f32.mrf.mxu1 }
 0xc34   : > { %v9534_v27 = vadd.f32 %v4064_v20, %v3286_v13 }
 0xc3d   : > { %v6404_v63 = vpop.f32.mrf.mxu1 }
 0xc3e   : > { %v9540_v59 = vadd.f32 %v6404_v63, %v3307_v28 }
 0xc3f   : > { %v4077_v39 = vpop.f32.mrf.mxu1 }
 0xc40   : > { %v9544_v34 = vadd.f32 %v4077_v39, %v3299_v36 }
 0xc41   : > { %v6405_v41 = vpop.f32.mrf.mxu1 }
 0xc42   : > { %v9548_v57 = vadd.f32 %v6405_v41, %v3310_v35 }
 0xc43   : > { %v4080_v6 = vpop.f32.mrf.mxu1 }
 0xc44   : > { %v9550_v30 = vadd.f32 %v4080_v6, %v3302_v5 }
 0xc45   : > { %v6160_v56 = vpop.f32.mrf.mxu1 }
 0xc47   : > { %v6161_v49 = vpop.f32.mrf.mxu1 }
 0xc48   : > { %v6162_v7 = vadd.f32 %v6161_v49, %v6160_v56 }
 0xc49   : > { %v6163_v22 = vpop.f32.mrf.mxu1 }
 0xc4b   : > { %v6164_v1 = vpop.f32.mrf.mxu1 }
 0xc4c   : > { %v6165_v17 = vadd.f32 %v6164_v1, %v6163_v22 }
 0xc4d   : > { %v6166_v62 = vpop.f32.mrf.mxu1 }
 0xc4e   : > { %v4742_v46 = vpack.c.bf16 %v6165_v17, %v6162_v7 }
 0xc4f   : > { %v6167_v2 = vpop.f32.mrf.mxu1 }
 0xc50   : > { %6410 = vmatprep.mubr.msk.bf16.mxu0 %vm1746_vm0, %v4742_v46  ;;  %v6168_v32 = vadd.f32 %v6167_v2, %v6166_v62 }
 0xc51   : > { %v6169_v12 = vpop.f32.mrf.mxu1 }
 0xc53   : > { %v6170_v33 = vpop.f32.mrf.mxu1 }
 0xc54   : > { %v6171_v4 = vadd.f32 %v6170_v33, %v6169_v12 }
 0xc55   : > { %v6172_v40 = vpop.f32.mrf.mxu1 }
 0xc56   : > { %v4743_v23 = vpack.c.bf16 %v6171_v4, %v6168_v32  ;;  %v9564_v32 = vld [vmem:[%s9925_s22] ss:$0 sm:$0xff]  ;;  %s7266_s22 = sshll.u32 %s7402_s8, 4  ;;  %s7267_s22 = int_to_ptr.vmem [resolvable:$false] %s7266_s22 }
 0xc57   : > { %v6173_v16 = vpop.f32.mrf.mxu1  ;;  %s7268_s23 = scalar_lea.vmem %s7267_s22, 2048  ;;  %p7269_p8 = scmp.lt.s32.totalorder %s9606_s15, %s7267_s22 }
 0xc58   : > { %6411 = vmatmul.mubr.msk.bf16.vlgmr.msra.gmra.mxu0 %vm1746_vm0, %v4743_v23  ;;  %v6174_v21 = vadd.f32 %v6173_v16, %v6172_v40  ;;  %p7270_p9 = scmp.lt.s32.totalorder %s7268_s23, %s7262_s16 }
 0xc59   : > { %v6175_v26 = vpop.f32.mrf.mxu1 }
 0xc5a   : > { %p7271_p10 = por %p7270_p9, %p7269_p8 }
 0xc5b   : > { %v6176_v48 = vpop.f32.mrf.mxu1 }
 0xc5c   : > { %v6177_v55 = vadd.f32 %v6176_v48, %v6175_v26  ;;  %p7272_p0 = pnand %p7271_p10, %p7265_p13 }
 0xc5d   : > { %v6178_v43 = vpop.f32.mrf.mxu1 }
 0xc5e   : > { %v4744_v9 = vpack.c.bf16 %v6177_v55, %v6174_v21 }
 0xc5f   : > { %v6179_v25 = vpop.f32.mrf.mxu1 }
 0xc60   : > { %6414 = vmatprep.mubr.msk.bf16.mxu0 %vm1746_vm0, %v4744_v9  ;;  %v6180_v24 = vadd.f32 %v6179_v25, %v6178_v43 }
 0xc61   : > { %v6181_v29 = vpop.f32.mrf.mxu1 }
 0xc63   : > { %v6182_v37 = vpop.f32.mrf.mxu1 }
 0xc64   : > { %v6183_v61 = vadd.f32 %v6182_v37, %v6181_v29 }
 0xc65   : > { %v6184_v18 = vpop.f32.mrf.mxu1 }
 0xc66   : > { %v4745_v50 = vpack.c.bf16 %v6183_v61, %v6180_v24 }
 0xc67   : > { %v6185_v15 = vpop.f32.mrf.mxu1 }
 0xc68   : > { %6415 = vmatmul.mubr.msk.bf16.gmra.mxu0 %vm1746_vm0, %v4745_v50  ;;  %v6186_v60 = vadd.f32 %v6185_v15, %v6184_v18 }
 0xc69   : > { %v6187_v13 = vpop.f32.mrf.mxu1 }
 0xc6b   : > { %v6188_v20 = vpop.f32.mrf.mxu1 }
 0xc6c   : > { %v6189_v14 = vadd.f32 %v6188_v20, %v6187_v13 }
 0xc6d   : > { %v6190_v28 = vpop.f32.mrf.mxu1 }
 0xc6e   : > { %v4746_v63 = vpack.c.bf16 %v6189_v14, %v6186_v60 }
 0xc6f   : > { %v6191_v54 = vpop.f32.mrf.mxu1 }
 0xc70   : > { %6418 = vmatprep.mubr.msk.bf16.mxu1 %vm1746_vm0, %v4746_v63  ;;  %v6192_v39 = vadd.f32 %v6191_v54, %v6190_v28 }
 0xc71   : > { %v6193_v19 = vpop.f32.mrf.mxu1 }
 0xc73   : > { %v6194_v36 = vpop.f32.mrf.mxu1 }
 0xc74   : > { %v6195_v53 = vadd.f32 %v6194_v36, %v6193_v19 }
 0xc75   : > { %v6196_v42 = vpop.f32.mrf.mxu1 }
 0xc76   : > { %v4747_v35 = vpack.c.bf16 %v6195_v53, %v6192_v39 }
 0xc77   : > { %v6197_v41 = vpop.f32.mrf.mxu1 }
 0xc78   : > { %6419 = vmatmul.mubr.msk.bf16.vlgmr.msra.gmra.mxu1 %vm1746_vm0, %v4747_v35  ;;  %v6198_v5 = vadd.f32 %v6197_v41, %v6196_v42 }
 0xc79   : > { %v6199_v58 = vpop.f32.mrf.mxu1 }
 0xc7b   : > { %v6200_v44 = vpop.f32.mrf.mxu1 }
 0xc7c   : > { %v6201_v6 = vadd.f32 %v6200_v44, %v6199_v58 }
 0xc7d   : > { %v6202_v56 = vpop.f32.mrf.mxu1 }
 0xc7e   : > { %v4748_v49 = vpack.c.bf16 %v6201_v6, %v6198_v5 }
 0xc7f   : > { %v6203_v22 = vpop.f32.mrf.mxu1 }
 0xc80   : > { %6422 = vmatprep.mubr.msk.bf16.mxu1 %vm1746_vm0, %v4748_v49  ;;  %v6204_v17 = vadd.f32 %v6203_v22, %v6202_v56 }
 0xc81   : > { %v6205_v1 = vpop.f32.mrf.mxu1 }
 0xc83   : > { %v6206_v7 = vpop.f32.mrf.mxu1 }
 0xc84   : > { %v6207_v62 = vadd.f32 %v6206_v7, %v6205_v1 }
 0xc86   : > { %v4749_v46 = vpack.c.bf16 %v6207_v62, %v6204_v17 }
 0xc88   : > { %6423 = vmatmul.mubr.msk.bf16.gmra.mxu1 %vm1746_vm0, %v4749_v46 }
 0xd18   : > { %v6412_v2 = vpop.f32.mrf.mxu0 }
 0xd19   : > { %v4889_v33 = vadd.f32 %v6412_v2, %v9492_v0 }
 0xd1a   : > { %v4824_v12 = vpop.f32.mrf.mxu0 }
 0xd1b   : > { %v4887_v40 = vadd.f32 %v4824_v12, %v9496_v47  ;;  %v4912_v26 = vadd.f32 %v9564_v32, %v4889_v33 }
 0xd1c   : > { %v6413_v4 = vpop.f32.mrf.mxu0 }
 0xd1d   : > { %v4890_v23 = vadd.f32 %v6413_v4, %v9500_v31  ;;  %v4910_v55 = vadd.f32 %v9564_v32, %v4887_v40 }
 0xd1e   : > { %v4827_v16 = vpop.f32.mrf.mxu0 }
 0xd1f   : > { %v4913_v48 = vadd.f32 %v9564_v32, %v4890_v23  ;;  %v4888_v21 = vadd.f32 %v4827_v16, %v9502_v51 }
 0xd21   : > { %v5661_v0 = vpack.c.bf16 %v4913_v48, %v4912_v26  ;;  %v4911_v43 = vadd.f32 %v9564_v32, %v4888_v21 }
 0xd23   : > { %5723 = vst [vmem:[%s7659_s26 + $0x8] sm:$0xff] %v5661_v0   ;;  %v5656_v9 = vpack.c.bf16 %v4911_v43, %v4910_v55 }
 0xd25   : > { %5657 = vst [vmem:[%s7659_s26] sm:$0xff] %v5656_v9  }
 0xd28   : > { %v6416_v47 = vpop.f32.mrf.mxu0 }
 0xd29   : > { %v4893_v31 = vadd.f32 %v6416_v47, %v9508_v45 }
 0xd2a   : > { %v4840_v25 = vpop.f32.mrf.mxu0 }
 0xd2b   : > { %v4891_v37 = vadd.f32 %v4840_v25, %v9512_v38  ;;  %v4916_v61 = vadd.f32 %v9564_v32, %v4893_v31 }
 0xd2c   : > { %v6417_v29 = vpop.f32.mrf.mxu0 }
 0xd2d   : > { %v4894_v24 = vadd.f32 %v6417_v29, %v9516_v3  ;;  %v4914_v15 = vadd.f32 %v9564_v32, %v4891_v37 }
 0xd2e   : > { %v4843_v51 = vpop.f32.mrf.mxu0 }
 0xd2f   : > { %v4917_v18 = vadd.f32 %v9564_v32, %v4894_v24  ;;  %v4892_v50 = vadd.f32 %v4843_v51, %v9518_v10 }
 0xd31   : > { %v5671_v13 = vpack.c.bf16 %v4917_v18, %v4916_v61  ;;  %v4915_v20 = vadd.f32 %v9564_v32, %v4892_v50 }
 0xd33   : > { %5725 = vst [vmem:[%s7659_s26 + $0x18] sm:$0xff] %v5671_v13   ;;  %v5666_v45 = vpack.c.bf16 %v4915_v20, %v4914_v15 }
 0xd35   : > { %5724 = vst [vmem:[%s7659_s26 + $0x10] sm:$0xff] %v5666_v45  }
 0xd38   : > { %v6420_v38 = vpop.f32.mrf.mxu1 }
 0xd39   : > { %v4897_v3 = vadd.f32 %v6420_v38, %v9524_v8 }
 0xd3a   : > { %v4856_v60 = vpop.f32.mrf.mxu1 }
 0xd3b   : > { %v4895_v28 = vadd.f32 %v4856_v60, %v9528_v11  ;;  %v4920_v54 = vadd.f32 %v9564_v32, %v4897_v3 }
 0xd3c   : > { %v6421_v14 = vpop.f32.mrf.mxu1 }
 0xd3d   : > { %v4898_v10 = vadd.f32 %v6421_v14, %v9532_v52  ;;  %v4918_v39 = vadd.f32 %v9564_v32, %v4895_v28 }
 0xd3e   : > { %v4859_v63 = vpop.f32.mrf.mxu1 }
 0xd3f   : > { %v4921_v19 = vadd.f32 %v9564_v32, %v4898_v10  ;;  %v4896_v36 = vadd.f32 %v4859_v63, %v9534_v27 }
 0xd41   : > { %v5681_v53 = vpack.c.bf16 %v4921_v19, %v4920_v54  ;;  %v4919_v42 = vadd.f32 %v9564_v32, %v4896_v36 }
 0xd43   : > { %5727 = vst [vmem:[%s7659_s26 + $0x28] sm:$0xff] %v5681_v53   ;;  %v5676_v8 = vpack.c.bf16 %v4919_v42, %v4918_v39 }
 0xd45   : > { %5726 = vst [vmem:[%s7659_s26 + $0x20] sm:$0xff] %v5676_v8  }
 0xd48   : > { %v6424_v35 = vpop.f32.mrf.mxu1 }
 0xd49   : > { %v4901_v52 = vadd.f32 %v6424_v35, %v9540_v59 }
 0xd4a   : > { %v4872_v11 = vpop.f32.mrf.mxu1 }
 0xd4b   : > { %v4899_v58 = vadd.f32 %v4872_v11, %v9544_v34  ;;  %v4924_v5 = vadd.f32 %v9564_v32, %v4901_v52 }
 0xd4c   : > { %v6425_v41 = vpop.f32.mrf.mxu1 }
 0xd4d   : > { %v4902_v27 = vadd.f32 %v6425_v41, %v9548_v57  ;;  %v4922_v59 = vadd.f32 %v9564_v32, %v4899_v58 }
 0xd4e   : > { %v4875_v44 = vpop.f32.mrf.mxu1 }
 0xd4f   : > { %v4925_v6 = vadd.f32 %v9564_v32, %v4902_v27  ;;  %v4900_v56 = vadd.f32 %v4875_v44, %v9550_v30 }
 0xd51   : > { %v5691_v49 = vpack.c.bf16 %v4925_v6, %v4924_v5  ;;  %v4923_v34 = vadd.f32 %v9564_v32, %v4900_v56 }
 0xd53   : > { %5729 = vst [vmem:[%s7659_s26 + $0x38] sm:$0xff] %v5691_v49   ;;  %v5686_v57 = vpack.c.bf16 %v4923_v34, %v4922_v59 }
 0xd55   : > { %5728 = vst [vmem:[%s7659_s26 + $0x30] sm:$0xff] %v5686_v57  }
 0xd56   : > { %7275 = shalt.err (!%p7272_p0)
}
 0xd57   : > { %s7276_s2 = scalar_lea.hbm %s9612_s1, 1024  ;;  %s7280_s21 = scalar_lea.hbm %s9929_s27, 4096 }
 0xd58   : > { %p7277_p12 = scmp.ne.s32.totalorder %s9612_s1, %s7276_s2  ;;  %p7281_p7 = scmp.lt.s32.totalorder %s9612_s1, %s9929_s27 }
 0xd59   : > { %p7282_p3 = scmp.lt.s32.totalorder %s7280_s21, %s7276_s2 }
 0xd5a   : > { %p7278_p2 = pnand %p7277_p12, %p7524_p6 }
 0xd5b   : > { %p7283_p4 = por %p7282_p3, %p7281_p7 }
 0xd5c   : > { %p7279_p5 = pneg %p7278_p2 }
 0xd5e   : > { %p7284_p1 = pnand %p7283_p4, %p7279_p5 }
 0xd60   : > { %7287 = shalt.err (!%p7284_p1)
}
 0xd61   : > { %s7403_s5 = smov 4  }
 0xd62   : > { %6480 = dma.vmem_to_hbm [thread:$0]  (%p7524_p6), %s9606_s15, 1024, %s9612_s1, %s9617_s20, %s7400_s24, %s7400_s24, %s7403_s5  }
 0xd63 PF: > { %s9930_s7 = sld [smem:[#allocation18_spill]]  ;;  %p6512_p11 = scmp.ge.s32.totalorder %s7390_s19, 2 }
 0xd64   : > { %s9931_s17 = sld [smem:[#allocation22_spill]] }
 0xd69   : > { %s5037_s16 = sand.u32 1, %s9930_s7  }
 0xd6a   : > { %p9932_p13 = scmp.ne.s32.totalorder %s9931_s17, 0  ;;  %s5038_s8 = scalar_lea.sflag [#allocation6], %s5037_s16 }
 0xd6c   : > { %p6500_p8 = pnand %p6512_p11, %p9932_p13 }
 0xd6e   : > { %p6501_p9 = pneg %p6500_p8 }
 0xd70   : > { %7345 = dma.done.wait (%p6501_p9), %s5038_s8, 1024  }
 0xd71   : > { %7347 = vsyncadd (%p6501_p9), %s5038_s8, 4294966272  ;;  %s27_s19 = sadd.s32 1, %s7390_s19   ;;  %s9933_s15 = sld [smem:[#allocation20_spill]] }
 0xd72   : > { %p24_p10 = scmp.ge.s32.totalorder %s27_s19, 6   ;;  %s9934_s17 = sld [smem:[#allocation23_spill]] }
 0xd73   : > { %s9935_s24 = smov %s9949_s30  ;;  %s9936_s30 = smov %s7354_s10 }
 0xd74   : > { %s9937_s10 = smov %s7358_s11  ;;  %s9938_s11 = smov %s7619_s3 }
 0xd75   : > { %s9939_s12 = smov %s7366_s13  ;;  %s9940_s13 = smov %s7370_s14 }
 0xd76   : > { %s9941_s14 = smov %s7616_s25  ;;  %s9942_s16 = smov %s7386_s18 }
 0xd77   : > { %s9943_s18 = smov %s9935_s24  ;;  %26 = sbr.rel (!%p24_p10) target bundleno = 19 (0x13), region = 122 }
 0xd7c   :  { %5043 = vsyncpa [#allocation5], 1 }
 0xd7d   :  { %5045 = vsyncpa [#allocation5 + $0x1], 1 }
 0xd7e   :  { %5046 = vsyncpa [#allocation8], 1 }
 0xd7f   :  { %5047 = vsyncpa [#allocation11], 1 }
 0xd80   :  { %5048 = vsyncpa [#allocation6], 1 }
 0xd81   :  { %5050 = vsyncpa [#allocation6 + $0x1], 1 }

</bundles_post_ra>
